<compile_context>
chip_gen: v6e
topology: v6e:2x2x1
jax: 0.10.0
libtpu: 0.0.40
codegen_flags: <defaults>
</compile_context>

<pallas_src>
import functools

import jax
import jax.numpy as jnp
from jax import lax
from jax.experimental import pallas as pl
from jax.experimental.pallas import tpu as pltpu


def _fill_halo(x_ref, xpad_ref, padding, H, W):
    """Zero only the padding border (interior is overwritten every step)."""
    C_in = x_ref.shape[1]
    H_pad, W_pad = xpad_ref.shape[1], xpad_ref.shape[2]
    if padding > 0:
        zrow = jnp.zeros((C_in, padding, W_pad), xpad_ref.dtype)
        xpad_ref[:, :padding, :] = zrow
        xpad_ref[:, H + padding:, :] = zrow
        zcol = jnp.zeros((C_in, H_pad, padding), xpad_ref.dtype)
        xpad_ref[:, :, :padding] = zcol
        xpad_ref[:, :, W + padding:] = zcol
    xpad_ref[:, padding:padding + H, padding:padding + W] = (
        x_ref[0].astype(xpad_ref.dtype))


def _tap2d(xpad_ref, kh, kw, *, stride, dilation, H_out, W_out):
    """Shifted (C_in, H_out, W_out) window of the padded image, flattened to (C_in, HW)."""
    C_in = xpad_ref.shape[0]
    h0, w0 = kh * dilation, kw * dilation
    if stride == 1:
        tap = xpad_ref[:, h0:h0 + H_out, w0:w0 + W_out]
    else:
        # TODO(synk): confirm strided pl.ds lowers as a strided read on all generations.
        tap = xpad_ref[:, pl.ds(h0, H_out, stride), pl.ds(w0, W_out, stride)]
    return tap.reshape(C_in, H_out * W_out)


def _conv_stats_fused_kernel(x_ref, wft_ref, conv_ref, stats_ref, xpad_ref, *,
                             K, stride, dilation, padding, H_out, W_out):
    """Fused-weights path: K*K accumulating bf16 MXU matmuls + per-image BN partials."""
    C_in, H, W = x_ref.shape[1], x_ref.shape[2], x_ref.shape[3]
    HW = H_out * W_out
    C_out = wft_ref.shape[0]

    _fill_halo(x_ref, xpad_ref, padding, H, W)

    # K*K accumulating MXU matmuls (bf16 x bf16 -> f32); no im2col materialization.
    acc = jnp.zeros((C_out, HW), jnp.float32)
    for kh in range(K):
        for kw in range(K):
            t = kh * K + kw
            w_t = wft_ref[:, t * C_in:(t + 1) * C_in]        # (C_out, C_in) bf16
            tap = _tap2d(xpad_ref, kh, kw, stride=stride, dilation=dilation,
                         H_out=H_out, W_out=W_out)           # (C_in, HW) bf16
            acc = acc + jnp.dot(w_t, tap, preferred_element_type=jnp.float32)

    conv_ref[...] = acc[None].astype(conv_ref.dtype)          # bf16, lane-dense HW

    # Per-image BN partials from the f32 accumulator, lane-dense over C_out.
    s = jnp.sum(acc, axis=1)[None, :]                         # (1, C_out)
    ss = jnp.sum(acc * acc, axis=1)[None, :]                  # (1, C_out)
    stats_ref[...] = jnp.concatenate([s, ss], axis=0)[None]


def _conv_stats_split_kernel(x_ref, wpw_ref, wdw_ref, conv_ref, stats_ref, xpad_ref, *,
                             K, stride, dilation, padding, H_out, W_out):
    """Split path (large C_out / v5e): f32 VPU depthwise, then ONE pointwise MXU matmul."""
    C_in, H, W = x_ref.shape[1], x_ref.shape[2], x_ref.shape[3]
    HW = H_out * W_out

    _fill_halo(x_ref, xpad_ref, padding, H, W)

    dw = jnp.zeros((C_in, HW), jnp.float32)
    for kh in range(K):
        for kw in range(K):
            t = kh * K + kw
            tap = _tap2d(xpad_ref, kh, kw, stride=stride, dilation=dilation,
                         H_out=H_out, W_out=W_out)            # (C_in, HW) f32
            dw = dw + tap * wdw_ref[:, t:t + 1]               # per-channel scaled add (VPU)

    acc = jnp.dot(wpw_ref[...], dw.astype(jnp.bfloat16),
                  preferred_element_type=jnp.float32)         # (C_out, HW) f32

    conv_ref[...] = acc[None].astype(conv_ref.dtype)
    s = jnp.sum(acc, axis=1)[None, :]
    ss = jnp.sum(acc * acc, axis=1)[None, :]
    stats_ref[...] = jnp.concatenate([s, ss], axis=0)[None]


def _bn_relu_kernel(conv_ref, a_ref, b_ref, o_ref):
    """Folded BN affine + ReLU: y = max(conv * a + b, 0) in f32 (v5e-safe VPU math)."""
    y = conv_ref[...].astype(jnp.float32) * a_ref[...] + b_ref[...]
    o_ref[...] = jnp.maximum(y, 0.0).astype(o_ref.dtype)


def _pick_image_block(n, bytes_per_image, target_bytes=4 << 20):
    """Largest divisor of n whose pass-2 block stays under target_bytes."""
    best = 1
    for d in range(1, n + 1):
        if n % d == 0 and d * bytes_per_image <= target_bytes:
            best = d
    return best


def depthwise_conv_block(x_nchw, w_dw, w_pw, gamma, beta, *,
                         kernel_size, stride=1, padding=0, dilation=1,
                         eps=4e-5, fuse_taps=None):
    """Forward pass of DepthwiseConvBlock.

    x_nchw: (N, C_in, H, W)      w_dw: (C_in, 1, K, K)
    w_pw:   (C_out, C_in, 1, 1)  gamma/beta: (C_out,)
    Returns (N, C_out, H_out, W_out), matching the PyTorch module (training-mode BN).
    """
    N, C_in, H, W = x_nchw.shape
    C_out = w_pw.shape[0]
    K = kernel_size

    H_out = (H + 2 * padding - dilation * (K - 1) - 1) // stride + 1
    W_out = (W + 2 * padding - dilation * (K - 1) - 1) // stride + 1
    HW = H_out * W_out
    H_pad, W_pad = H + 2 * padding, W + 2 * padding

    if fuse_taps is None:
        # Folding taps into the pointwise weights amplifies MXU FLOPs by
        # ~K^2*C_out/(K^2+C_out); keep the fold only while C_out is small (v5e).
        fuse_taps = C_out <= 2 * K * K

    wd = w_dw[:, 0, :, :].reshape(C_in, K * K).astype(jnp.float32)   # (C_in, KK)
    wp = w_pw[:, :, 0, 0].astype(jnp.float32)                        # (C_out, C_in)

    if fuse_taps:
        # wft[c_out, t*C_in + c_in] = w_pw[c_out, c_in] * w_dw[c_in, t]  (bf16 MXU weights)
        wft = (wp[:, None, :] * jnp.transpose(wd)[None, :, :]).reshape(
            C_out, K * K * C_in).astype(jnp.bfloat16)
        weight_args = (wft,)
        weight_specs = [pl.BlockSpec((C_out, K * K * C_in), lambda n: (0, 0))]
        xpad_dtype = jnp.bfloat16        # feeds the MXU directly
        kernel = functools.partial(_conv_stats_fused_kernel, K=K, stride=stride,
                                   dilation=dilation, padding=padding,
                                   H_out=H_out, W_out=W_out)
    else:
        weight_args = (wp.astype(jnp.bfloat16), wd)   # pointwise bf16 (MXU), depthwise f32 (VPU)
        weight_specs = [pl.BlockSpec((C_out, C_in), lambda n: (0, 0)),
                        pl.BlockSpec((C_in, K * K), lambda n: (0, 0))]
        xpad_dtype = jnp.float32
        kernel = functools.partial(_conv_stats_split_kernel, K=K, stride=stride,
                                   dilation=dilation, padding=padding,
                                   H_out=H_out, W_out=W_out)

    # Explicit VMEM budget (scoped default is only 32 MiB): double-buffered blocks
    # + halo scratch with headroom, clamped to a range safe on v5e/v6e/v7x.
    xpad_bytes = C_in * H_pad * W_pad * jnp.dtype(xpad_dtype).itemsize
    blk_bytes = (C_in * H * W * x_nchw.dtype.itemsize + C_out * HW * 2 + 2 * C_out * 4
                 + sum(int(w.size) * w.dtype.itemsize for w in weight_args))
    vmem_bytes = int(min(96 << 20, max(32 << 20, 4 * (2 * blk_bytes + xpad_bytes))))

    # TODO(synk): tile over (N, H_out row-tiles) with a (K-1)*dilation halo for
    # large feature maps (v7x 64 MiB VMEM, longer grid for both TensorCores).

    # ---- pass 1: conv (bf16 intermediate) + per-image BN partials, tiled over N ----
    conv, stats = pl.pallas_call(
        kernel,
        out_shape=(jax.ShapeDtypeStruct((N, C_out, HW), jnp.bfloat16),
                   jax.ShapeDtypeStruct((N, 2, C_out), jnp.float32)),
        grid=(N,),
        in_specs=[pl.BlockSpec((1, C_in, H, W), lambda n: (n, 0, 0, 0))] + weight_specs,
        out_specs=(pl.BlockSpec((1, C_out, HW), lambda n: (n, 0, 0)),
                   pl.BlockSpec((1, 2, C_out), lambda n: (n, 0, 0))),
        scratch_shapes=[pltpu.VMEM((C_in, H_pad, W_pad), xpad_dtype)],
        compiler_params=pltpu.CompilerParams(
            dimension_semantics=("parallel",), vmem_limit_bytes=vmem_bytes),
    )(x_nchw, *weight_args)

    # Tiny cross-image reduction + BN affine fold (plain JAX, a few KB).
    # NOTE: var = E[x^2] - mean^2 can cancel for large means; fine at these magnitudes.
    totals = jnp.sum(stats, axis=0)                    # (2, C_out)
    count = jnp.float32(N * HW)
    mean = totals[0] / count
    var = totals[1] / count - mean * mean              # biased var (training-mode BN)
    a = gamma.astype(jnp.float32) * lax.rsqrt(var + eps)
    b = beta.astype(jnp.float32) - mean * a

    # ---- pass 2: y = max(conv*a + b, 0); several images per lane-dense block ----
    img_blk = _pick_image_block(N, C_out * HW * (2 + 4))
    out = pl.pallas_call(
        _bn_relu_kernel,
        out_shape=jax.ShapeDtypeStruct((N, C_out, HW), jnp.float32),
        grid=(N // img_blk,),
        in_specs=[pl.BlockSpec((img_blk, C_out, HW), lambda n: (n, 0, 0)),
                  pl.BlockSpec((C_out, 1), lambda n: (0, 0)),
                  pl.BlockSpec((C_out, 1), lambda n: (0, 0))],
        out_specs=pl.BlockSpec((img_blk, C_out, HW), lambda n: (n, 0, 0)),
        compiler_params=pltpu.CompilerParams(
            dimension_semantics=("parallel",), vmem_limit_bytes=vmem_bytes),
    )(conv, a.reshape(C_out, 1), b.reshape(C_out, 1))

    # NCHW output without any HBM transpose: just un-flatten the spatial axis.
    return out.reshape(N, C_out, H_out, W_out)


def _reference(x, w_dw, w_pw, gamma, beta, *, stride, padding, dilation, eps=4e-5):
    """Pure-JAX f32 reference reproducing the PyTorch forward (training-mode BN)."""
    C_in = x.shape[1]
    y = lax.conv_general_dilated(
        x, w_dw, window_strides=(stride, stride),
        padding=[(padding, padding), (padding, padding)],
        rhs_dilation=(dilation, dilation),
        dimension_numbers=('NCHW', 'OIHW', 'NCHW'),
        feature_group_count=C_in)
    y = lax.conv_general_dilated(
        y, w_pw, window_strides=(1, 1), padding=[(0, 0), (0, 0)],
        dimension_numbers=('NCHW', 'OIHW', 'NCHW'))
    mean = jnp.mean(y, axis=(0, 2, 3), keepdims=True)
    var = jnp.mean((y - mean) ** 2, axis=(0, 2, 3), keepdims=True)
    y = (y - mean) * lax.rsqrt(var + eps)
    y = y * gamma.reshape(1, -1, 1, 1) + beta.reshape(1, -1, 1, 1)
    return jnp.maximum(y, 0.0)


if __name__ == "__main__":
    key = jax.random.PRNGKey(0)
    k1, k2, k3, k4, k5 = jax.random.split(key, 5)

    # Small shapes consistent with the module: in_channels=4, out_channels=8,
    # kernel_size=3, stride=1, padding=1, dilation=1 (typical BiFPN usage).
    N, C_in, H, W = 2, 4, 16, 16
    C_out = 8
    K, stride, padding, dilation = 3, 1, 1, 1

    x = jax.random.normal(k1, (N, C_in, H, W), jnp.float32)
    w_dw = 0.3 * jax.random.normal(k2, (C_in, 1, K, K), jnp.float32)      # depthwise.weight
    w_pw = 0.3 * jax.random.normal(k3, (C_out, C_in, 1, 1), jnp.float32)  # pointwise.weight
    gamma = 1.0 + 0.1 * jax.random.normal(k4, (C_out,), jnp.float32)      # bn.weight
    beta = 0.1 * jax.random.normal(k5, (C_out,), jnp.float32)             # bn.bias

    ref = _reference(x, w_dw, w_pw, gamma, beta,
                     stride=stride, padding=padding, dilation=dilation)

    # Fused-weights path (small C_out; default gate).  bf16 MXU + bf16 intermediate,
    # so tolerances are bf16-level.
    out = jax.block_until_ready(depthwise_conv_block(
        x, w_dw, w_pw, gamma, beta, kernel_size=K, stride=stride,
        padding=padding, dilation=dilation))
    assert out.shape == ref.shape == (N, C_out, H, W)
    err = float(jnp.max(jnp.abs(out - ref)))
    assert jnp.allclose(out, ref, atol=5e-2, rtol=5e-2), f"fused path max abs err = {err}"

    # Split depthwise(VPU) + pointwise(MXU) path (large-C_out / v5e gate), forced on.
    out2 = jax.block_until_ready(depthwise_conv_block(
        x, w_dw, w_pw, gamma, beta, kernel_size=K, stride=stride,
        padding=padding, dilation=dilation, fuse_taps=False))
    err2 = float(jnp.max(jnp.abs(out2 - ref)))
    assert jnp.allclose(out2, ref, atol=5e-2, rtol=5e-2), f"split path max abs err = {err2}"

    print("KERNEL_OK")
</pallas_src>

<mosaic_0001>
module attributes {stable_mosaic.version = 11 : i64} {
  func.func @_conv_stats_fused_kernel(%arg0: i32, %arg1: memref<1x4x16x16xf32, #tpu.memory_space<vmem>>, %arg2: memref<8x36xbf16, #tpu.memory_space<vmem>>, %arg3: memref<1x8x256xbf16, #tpu.memory_space<vmem>>, %arg4: memref<1x2x8xf32, #tpu.memory_space<vmem>>, %arg5: memref<4x18x18xbf16, #tpu.memory_space<vmem>>) attributes {dimension_semantics = [#tpu.dimension_semantics<parallel>], iteration_bounds = array<i64: 2>, scalar_prefetch = 0 : i64, scratch_operands = 1 : i64, tpu.core_type = #tpu.core_type<tc>, window_params = [{transform_indices = @transform_0, window_bounds = array<i64: 1, 4, 16, 16>}, {pipeline_mode = #tpu.pipeline_mode<synchronous>, transform_indices = @transform_1, window_bounds = array<i64: 8, 36>}, {transform_indices = @transform_2, window_bounds = array<i64: 1, 8, 256>}, {transform_indices = @transform_3, window_bounds = array<i64: 1, 2, 8>}]} {
    %cst = arith.constant 0.000000e+00 : bf16
    %0 = vector.broadcast %cst : bf16 to vector<4x1x18xbf16>
    %c0 = arith.constant 0 : index
    %c0_0 = arith.constant 0 : index
    %c0_1 = arith.constant 0 : index
    %1 = vector.load %arg5[%c0, %c0_0, %c0_1] : memref<4x18x18xbf16, #tpu.memory_space<vmem>>, vector<4x1x18xbf16>
    tpu.vector_store %arg5[%c0, %c0_0, %c0_1], %0 {strides = array<i32>} : memref<4x18x18xbf16, #tpu.memory_space<vmem>>, vector<4x1x18xbf16>,
    %c0_2 = arith.constant 0 : index
    %c17 = arith.constant 17 : index
    %c0_3 = arith.constant 0 : index
    %2 = vector.load %arg5[%c0_2, %c17, %c0_3] : memref<4x18x18xbf16, #tpu.memory_space<vmem>>, vector<4x1x18xbf16>
    tpu.vector_store %arg5[%c0_2, %c17, %c0_3], %0 {strides = array<i32>} : memref<4x18x18xbf16, #tpu.memory_space<vmem>>, vector<4x1x18xbf16>,
    %cst_4 = arith.constant 0.000000e+00 : bf16
    %3 = vector.broadcast %cst_4 : bf16 to vector<4x18x1xbf16>
    %c0_5 = arith.constant 0 : index
    %c0_6 = arith.constant 0 : index
    %c0_7 = arith.constant 0 : index
    %4 = vector.load %arg5[%c0_5, %c0_6, %c0_7] : memref<4x18x18xbf16, #tpu.memory_space<vmem>>, vector<4x18x1xbf16>
    tpu.vector_store %arg5[%c0_5, %c0_6, %c0_7], %3 {strides = array<i32>} : memref<4x18x18xbf16, #tpu.memory_space<vmem>>, vector<4x18x1xbf16>,
    %c0_8 = arith.constant 0 : index
    %c0_9 = arith.constant 0 : index
    %c17_10 = arith.constant 17 : index
    %5 = vector.load %arg5[%c0_8, %c0_9, %c17_10] : memref<4x18x18xbf16, #tpu.memory_space<vmem>>, vector<4x18x1xbf16>
    tpu.vector_store %arg5[%c0_8, %c0_9, %c17_10], %3 {strides = array<i32>} : memref<4x18x18xbf16, #tpu.memory_space<vmem>>, vector<4x18x1xbf16>,
    %c0_11 = arith.constant 0 : index
    %c0_12 = arith.constant 0 : index
    %c0_13 = arith.constant 0 : index
    %c0_14 = arith.constant 0 : index
    %6 = vector.load %arg1[%c0_11, %c0_12, %c0_13, %c0_14] : memref<1x4x16x16xf32, #tpu.memory_space<vmem>>, vector<1x4x16x16xf32>
    %7 = vector.shape_cast %6 : vector<1x4x16x16xf32> to vector<4x16x16xf32>
    %8 = arith.truncf %7 : vector<4x16x16xf32> to vector<4x16x16xbf16>
    %c0_15 = arith.constant 0 : index
    %c1 = arith.constant 1 : index
    %c1_16 = arith.constant 1 : index
    %9 = vector.load %arg5[%c0_15, %c1, %c1_16] : memref<4x18x18xbf16, #tpu.memory_space<vmem>>, vector<4x16x16xbf16>
    tpu.vector_store %arg5[%c0_15, %c1, %c1_16], %8 {strides = array<i32>} : memref<4x18x18xbf16, #tpu.memory_space<vmem>>, vector<4x16x16xbf16>,
    %cst_17 = arith.constant 0.000000e+00 : f32
    %10 = vector.broadcast %cst_17 : f32 to vector<8x256xf32>
    %c0_18 = arith.constant 0 : index
    %c0_19 = arith.constant 0 : index
    %11 = vector.load %arg2[%c0_18, %c0_19] : memref<8x36xbf16, #tpu.memory_space<vmem>>, vector<8x4xbf16>
    %c0_20 = arith.constant 0 : index
    %c0_21 = arith.constant 0 : index
    %c0_22 = arith.constant 0 : index
    %12 = vector.load %arg5[%c0_20, %c0_21, %c0_22] : memref<4x18x18xbf16, #tpu.memory_space<vmem>>, vector<4x16x16xbf16>
    %13 = vector.shape_cast %12 : vector<4x16x16xbf16> to vector<4x256xbf16>
    %cst_23 = arith.constant dense<0.000000e+00> : vector<8x256xf32>
    %14 = tpu.matmul %11, %13, %cst_23 {dimension_numbers = #tpu.dot_dimension_numbers<[1], [0], [0], [1], [0, 0, 1, 1], [], []>} : vector<8x4xbf16>, vector<4x256xbf16>, vector<8x256xf32> -> vector<8x256xf32>
    %15 = arith.addf %10, %14 : vector<8x256xf32>
    %c0_24 = arith.constant 0 : index
    %c4 = arith.constant 4 : index
    %16 = vector.load %arg2[%c0_24, %c4] : memref<8x36xbf16, #tpu.memory_space<vmem>>, vector<8x4xbf16>
    %c0_25 = arith.constant 0 : index
    %c0_26 = arith.constant 0 : index
    %c1_27 = arith.constant 1 : index
    %17 = vector.load %arg5[%c0_25, %c0_26, %c1_27] : memref<4x18x18xbf16, #tpu.memory_space<vmem>>, vector<4x16x16xbf16>
    %18 = vector.shape_cast %17 : vector<4x16x16xbf16> to vector<4x256xbf16>
    %cst_28 = arith.constant dense<0.000000e+00> : vector<8x256xf32>
    %19 = tpu.matmul %16, %18, %cst_28 {dimension_numbers = #tpu.dot_dimension_numbers<[1], [0], [0], [1], [0, 0, 1, 1], [], []>} : vector<8x4xbf16>, vector<4x256xbf16>, vector<8x256xf32> -> vector<8x256xf32>
    %20 = arith.addf %15, %19 : vector<8x256xf32>
    %c0_29 = arith.constant 0 : index
    %c8 = arith.constant 8 : index
    %21 = vector.load %arg2[%c0_29, %c8] : memref<8x36xbf16, #tpu.memory_space<vmem>>, vector<8x4xbf16>
    %c0_30 = arith.constant 0 : index
    %c0_31 = arith.constant 0 : index
    %c2 = arith.constant 2 : index
    %22 = vector.load %arg5[%c0_30, %c0_31, %c2] : memref<4x18x18xbf16, #tpu.memory_space<vmem>>, vector<4x16x16xbf16>
    %23 = vector.shape_cast %22 : vector<4x16x16xbf16> to vector<4x256xbf16>
    %cst_32 = arith.constant dense<0.000000e+00> : vector<8x256xf32>
    %24 = tpu.matmul %21, %23, %cst_32 {dimension_numbers = #tpu.dot_dimension_numbers<[1], [0], [0], [1], [0, 0, 1, 1], [], []>} : vector<8x4xbf16>, vector<4x256xbf16>, vector<8x256xf32> -> vector<8x256xf32>
    %25 = arith.addf %20, %24 : vector<8x256xf32>
    %c0_33 = arith.constant 0 : index
    %c12 = arith.constant 12 : index
    %26 = vector.load %arg2[%c0_33, %c12] : memref<8x36xbf16, #tpu.memory_space<vmem>>, vector<8x4xbf16>
    %c0_34 = arith.constant 0 : index
    %c1_35 = arith.constant 1 : index
    %c0_36 = arith.constant 0 : index
    %27 = vector.load %arg5[%c0_34, %c1_35, %c0_36] : memref<4x18x18xbf16, #tpu.memory_space<vmem>>, vector<4x16x16xbf16>
    %28 = vector.shape_cast %27 : vector<4x16x16xbf16> to vector<4x256xbf16>
    %cst_37 = arith.constant dense<0.000000e+00> : vector<8x256xf32>
    %29 = tpu.matmul %26, %28, %cst_37 {dimension_numbers = #tpu.dot_dimension_numbers<[1], [0], [0], [1], [0, 0, 1, 1], [], []>} : vector<8x4xbf16>, vector<4x256xbf16>, vector<8x256xf32> -> vector<8x256xf32>
    %30 = arith.addf %25, %29 : vector<8x256xf32>
    %c0_38 = arith.constant 0 : index
    %c16 = arith.constant 16 : index
    %31 = vector.load %arg2[%c0_38, %c16] : memref<8x36xbf16, #tpu.memory_space<vmem>>, vector<8x4xbf16>
    %c0_39 = arith.constant 0 : index
    %c1_40 = arith.constant 1 : index
    %c1_41 = arith.constant 1 : index
    %32 = vector.load %arg5[%c0_39, %c1_40, %c1_41] : memref<4x18x18xbf16, #tpu.memory_space<vmem>>, vector<4x16x16xbf16>
    %33 = vector.shape_cast %32 : vector<4x16x16xbf16> to vector<4x256xbf16>
    %cst_42 = arith.constant dense<0.000000e+00> : vector<8x256xf32>
    %34 = tpu.matmul %31, %33, %cst_42 {dimension_numbers = #tpu.dot_dimension_numbers<[1], [0], [0], [1], [0, 0, 1, 1], [], []>} : vector<8x4xbf16>, vector<4x256xbf16>, vector<8x256xf32> -> vector<8x256xf32>
    %35 = arith.addf %30, %34 : vector<8x256xf32>
    %c0_43 = arith.constant 0 : index
    %c20 = arith.constant 20 : index
    %36 = vector.load %arg2[%c0_43, %c20] : memref<8x36xbf16, #tpu.memory_space<vmem>>, vector<8x4xbf16>
    %c0_44 = arith.constant 0 : index
    %c1_45 = arith.constant 1 : index
    %c2_46 = arith.constant 2 : index
    %37 = vector.load %arg5[%c0_44, %c1_45, %c2_46] : memref<4x18x18xbf16, #tpu.memory_space<vmem>>, vector<4x16x16xbf16>
    %38 = vector.shape_cast %37 : vector<4x16x16xbf16> to vector<4x256xbf16>
    %cst_47 = arith.constant dense<0.000000e+00> : vector<8x256xf32>
    %39 = tpu.matmul %36, %38, %cst_47 {dimension_numbers = #tpu.dot_dimension_numbers<[1], [0], [0], [1], [0, 0, 1, 1], [], []>} : vector<8x4xbf16>, vector<4x256xbf16>, vector<8x256xf32> -> vector<8x256xf32>
    %40 = arith.addf %35, %39 : vector<8x256xf32>
    %c0_48 = arith.constant 0 : index
    %c24 = arith.constant 24 : index
    %41 = vector.load %arg2[%c0_48, %c24] : memref<8x36xbf16, #tpu.memory_space<vmem>>, vector<8x4xbf16>
    %c0_49 = arith.constant 0 : index
    %c2_50 = arith.constant 2 : index
    %c0_51 = arith.constant 0 : index
    %42 = vector.load %arg5[%c0_49, %c2_50, %c0_51] : memref<4x18x18xbf16, #tpu.memory_space<vmem>>, vector<4x16x16xbf16>
    %43 = vector.shape_cast %42 : vector<4x16x16xbf16> to vector<4x256xbf16>
    %cst_52 = arith.constant dense<0.000000e+00> : vector<8x256xf32>
    %44 = tpu.matmul %41, %43, %cst_52 {dimension_numbers = #tpu.dot_dimension_numbers<[1], [0], [0], [1], [0, 0, 1, 1], [], []>} : vector<8x4xbf16>, vector<4x256xbf16>, vector<8x256xf32> -> vector<8x256xf32>
    %45 = arith.addf %40, %44 : vector<8x256xf32>
    %c0_53 = arith.constant 0 : index
    %c28 = arith.constant 28 : index
    %46 = vector.load %arg2[%c0_53, %c28] : memref<8x36xbf16, #tpu.memory_space<vmem>>, vector<8x4xbf16>
    %c0_54 = arith.constant 0 : index
    %c2_55 = arith.constant 2 : index
    %c1_56 = arith.constant 1 : index
    %47 = vector.load %arg5[%c0_54, %c2_55, %c1_56] : memref<4x18x18xbf16, #tpu.memory_space<vmem>>, vector<4x16x16xbf16>
    %48 = vector.shape_cast %47 : vector<4x16x16xbf16> to vector<4x256xbf16>
    %cst_57 = arith.constant dense<0.000000e+00> : vector<8x256xf32>
    %49 = tpu.matmul %46, %48, %cst_57 {dimension_numbers = #tpu.dot_dimension_numbers<[1], [0], [0], [1], [0, 0, 1, 1], [], []>} : vector<8x4xbf16>, vector<4x256xbf16>, vector<8x256xf32> -> vector<8x256xf32>
    %50 = arith.addf %45, %49 : vector<8x256xf32>
    %c0_58 = arith.constant 0 : index
    %c32 = arith.constant 32 : index
    %51 = vector.load %arg2[%c0_58, %c32] : memref<8x36xbf16, #tpu.memory_space<vmem>>, vector<8x4xbf16>
    %c0_59 = arith.constant 0 : index
    %c2_60 = arith.constant 2 : index
    %c2_61 = arith.constant 2 : index
    %52 = vector.load %arg5[%c0_59, %c2_60, %c2_61] : memref<4x18x18xbf16, #tpu.memory_space<vmem>>, vector<4x16x16xbf16>
    %53 = vector.shape_cast %52 : vector<4x16x16xbf16> to vector<4x256xbf16>
    %cst_62 = arith.constant dense<0.000000e+00> : vector<8x256xf32>
    %54 = tpu.matmul %51, %53, %cst_62 {dimension_numbers = #tpu.dot_dimension_numbers<[1], [0], [0], [1], [0, 0, 1, 1], [], []>} : vector<8x4xbf16>, vector<4x256xbf16>, vector<8x256xf32> -> vector<8x256xf32>
    %55 = arith.addf %50, %54 : vector<8x256xf32>
    %56 = vector.shape_cast %55 : vector<8x256xf32> to vector<1x8x256xf32>
    %57 = arith.truncf %56 : vector<1x8x256xf32> to vector<1x8x256xbf16>
    %c0_63 = arith.constant 0 : index
    %c0_64 = arith.constant 0 : index
    %c0_65 = arith.constant 0 : index
    %58 = vector.load %arg3[%c0_63, %c0_64, %c0_65] : memref<1x8x256xbf16, #tpu.memory_space<vmem>>, vector<1x8x256xbf16>
    tpu.vector_store %arg3[%c0_63, %c0_64, %c0_65], %57 {strides = array<i32>} : memref<1x8x256xbf16, #tpu.memory_space<vmem>>, vector<1x8x256xbf16>,
    %cst_66 = arith.constant dense<0.000000e+00> : vector<8xf32>
    %59 = vector.multi_reduction <add>, %55, %cst_66 [1] : vector<8x256xf32> to vector<8xf32>
    %60 = vector.shape_cast %59 : vector<8xf32> to vector<1x8xf32>
    %61 = arith.mulf %55, %55 : vector<8x256xf32>
    %cst_67 = arith.constant dense<0.000000e+00> : vector<8xf32>
    %62 = vector.multi_reduction <add>, %61, %cst_67 [1] : vector<8x256xf32> to vector<8xf32>
    %63 = vector.shape_cast %62 : vector<8xf32> to vector<1x8xf32>
    %64 = tpu.concatenate %60, %63 in 0 : vector<1x8xf32>, vector<1x8xf32> -> vector<2x8xf32>
    %65 = vector.shape_cast %64 : vector<2x8xf32> to vector<1x2x8xf32>
    %c0_68 = arith.constant 0 : index
    %c0_69 = arith.constant 0 : index
    %c0_70 = arith.constant 0 : index
    %66 = vector.load %arg4[%c0_68, %c0_69, %c0_70] : memref<1x2x8xf32, #tpu.memory_space<vmem>>, vector<1x2x8xf32>
    tpu.vector_store %arg4[%c0_68, %c0_69, %c0_70], %65 {strides = array<i32>} : memref<1x2x8xf32, #tpu.memory_space<vmem>>, vector<1x2x8xf32>,
    return
  }
  func.func @transform_0(%arg0: i32) -> (i32, i32, i32, i32) {
    %c0_i32 = arith.constant 0 : i32
    %c0_i32_0 = arith.constant 0 : i32
    %c0_i32_1 = arith.constant 0 : i32
    %c0_i32_2 = arith.constant 0 : i32
    return %arg0, %c0_i32, %c0_i32_0, %c0_i32_1 : i32, i32, i32, i32
  }
  func.func @transform_1(%arg0: i32) -> (i32, i32) {
    %c0_i32 = arith.constant 0 : i32
    %c0_i32_0 = arith.constant 0 : i32
    %c0_i32_1 = arith.constant 0 : i32
    return %c0_i32, %c0_i32_0 : i32, i32
  }
  func.func @transform_2(%arg0: i32) -> (i32, i32, i32) {
    %c0_i32 = arith.constant 0 : i32
    %c0_i32_0 = arith.constant 0 : i32
    %c0_i32_1 = arith.constant 0 : i32
    return %arg0, %c0_i32, %c0_i32_0 : i32, i32, i32
  }
  func.func @transform_3(%arg0: i32) -> (i32, i32, i32) {
    %c0_i32 = arith.constant 0 : i32
    %c0_i32_0 = arith.constant 0 : i32
    %c0_i32_1 = arith.constant 0 : i32
    return %arg0, %c0_i32, %c0_i32_0 : i32, i32, i32
  }
}

</mosaic_0001>

<bundles_post_ra>
// kernel: tpu_custom_call.1
= control target key start
LH: loop header
LB: loop body
LE: loop exit
PB: predicated region body
PF: predicated region fallthrough
CT: control target
= control target key end

     0   :  { %9 = vsyncpa [#allocation4], 0  ;;  %s6576_s0 = inlined_call_operand.hbm [shape: f32[2,4,16,16], index: 0, kind: input, shape index: {}]   ;;  %s6577_s1 = inlined_call_operand.hbm [shape: bf16[8,36], index: 1, kind: input, shape index: {}]   ;;  %s6578_s2 = inlined_call_operand.hbm [shape: bf16[2,8,256], index: 2, kind: output, shape index: {0}]   ;;  %s6579_s3 = inlined_call_operand.hbm [shape: f32[2,2,8], index: 3, kind: output, shape index: {1}]  }
   0x1   :  { %11 = vsyncpa [#allocation4 + $0x1], 0 }
   0x2   :  { %12 = vsyncpa [#allocation7], 0 }
   0x3   :  { %13 = vsyncpa [#allocation5], 0 }
   0x4   :  { %15 = vsyncpa [#allocation5 + $0x1], 0 }
   0x5   :  { %16 = vsyncpa [#allocation10], 0 }
   0x6   :  { %18 = vsyncpa [#allocation10 + $0x1], 0  ;;  %s4645_s12 = smov 0   ;;  %s4647_s13 = smov 0  }
   0x7   :  { %s4649_s14 = smov 0   ;;  %s4651_s15 = smov 0  }
   0x8 LB: > { %s4666_s16 = sadd.s32 4294967295, %s4598_s15   ;;  %s4079_s17 = sadd.s32 4294967294, %s4598_s15   ;;  %s4598_s15 = sphi %s4651_s15, %s6670_s15   ;;  %s4594_s14 = sphi %s4649_s14, %s6669_s14   ;;  %s4590_s13 = sphi %s4647_s13, %s6668_s13   ;;  %s4586_s12 = sphi %s4645_s12, %s6667_s12  }
   0x9   : > { %s4670_s18 = sadd.s32 1, %s4598_s15   ;;  %s31_s19 = sadd.s32 1, %s4594_s14 }
   0xa   : > { %s28_s20 = ssub.s32 %s4598_s15, %s4670_s18  ;;  %p38_p0 = scmp.ne.s32.totalorder %s4594_s14, %s4590_s13 }
   0xb   : > { %p29_p1 = scmp.eq.s32.totalorder %s28_s20, 0  ;;  %p39_p2 = scmp.eq.s32.totalorder %s4598_s15, 0 }
   0xc   : > { %p44_p3 = scmp.ne.s32.totalorder %s4590_s13, %s4586_s12  ;;  %p6580_p4 = scmp.eq.s32.totalorder %s4666_s16, 0 }
   0xd   : > { %s4682_s21 = scalar_select %p29_p1, %s4594_s14, %s31_s19  }
   0xe   : > { %p4684_p5 = por %p39_p2, %p38_p0  ;;  %p4690_p6 = por %p6580_p4, %p44_p3 }
   0xf   : > { %p89_p7 = scmp.eq.s32.totalorder %s4666_s16, 1  ;;  %p95_p8 = scmp.eq.s32.totalorder %s4079_s17, 1 }
  0x10   : > { %s6600_s23 = scalar_select %p4690_p6, 1, 0 }
  0x11   : > { %p4080_p9 = scmp.ge.s32.totalorder %s4598_s15, 1  ;;  %p128_p10 = scmp.lt.s32.totalorder %s4598_s15, 3 }
  0x12   : > { %p4697_p11 = por %p89_p7, %p38_p0  ;;  %p4701_p12 = por %p95_p8, %p44_p3 }
  0x13   : > { %p4705_p13 = pnand %p4080_p9, %p128_p10  ;;  %s4600_s27 = smov [#allocation6]  }
  0x14   : > { %s6601_s24 = scalar_select %p4697_p11, 1, 0 }
  0x15   : > { %s6602_s25 = scalar_select %p4701_p12, 1, 0 }
  0x16   : > { %s6603_s26 = scalar_select %p4705_p13, 1, 0 }
  0x17   : > { %p4364_p2 = pneg %p4705_p13  ;;  %s141_s28 = sshll.u32 %s4600_s27, 4  ;;  %s142_s28 = int_to_ptr.vmem [resolvable:$true] %s141_s28 }
  0x18   : > { %p4380_p4 = scmp.lt.s32.totalorder %s4598_s15, 2  ;;  %p6604_p0 = scmp.eq.s32.totalorder %s4666_s16, 0 }
  0x19   : > { %s152_s30 = sand.u32 1, %s4594_s14   ;;  %s4457_s6 = scalar_lea.vmem %s142_s28, 64 }
  0x1a   : > { %p4715_p7 = pnand %p4364_p2, %p6604_p0  ;;  %p4722_p3 = pnand %p4380_p4, %p4684_p5 }
  0x1b   : > { %s4083_s5 = sshll.u32 %s152_s30, 6  ;;  %p4458_p9 = scmp.ne.s32.totalorder %s142_s28, %s4457_s6 }
  0x1c   : > { %p4448_p8 = pneg %p4715_p7  ;;  %p4465_p12 = scmp.lt.s32.totalorder %s142_s28, %s142_s28 }
  0x1d   : > { %p4466_p11 = scmp.lt.s32.totalorder %s4457_s6, %s4457_s6 }
  0x1e   : > { %p4460_p10 = pnand %p4458_p9, %p4448_p8 }
  0x1f   : > { %p4467_p2 = por %p4466_p11, %p4465_p12 }
  0x20   : > { %p4461_p1 = pneg %p4460_p10 }
  0x22   : > { %p4468_p0 = pnand %p4467_p2, %p4461_p1 }
  0x24   : > { %4471 = shalt.err (!%p4468_p0)
}
  0x25   : > { %4367 = dma.hbm_to_vmem [thread:$0]  (!%p4715_p7), %s6577_s1, 64, %s142_s28, [#allocation7]  }
  0x26   : > { %s4271_s9 = sshll.u32 %s4598_s15, 10  ;;  %s156_s10 = scalar_lea.vmem [#allocation3], %s4083_s5 }
  0x27   : > { %s163_s11 = sshll.u32 %s156_s10, 4  ;;  %s4737_s20 = scalar_lea.hbm %s6576_s0, %s4271_s9  ;;  %s4739_s11 = int_to_ptr.vmem [resolvable:$true] %s163_s11 }
  0x28   : > { %s4741_s22 = scalar_lea.sflag [#allocation4], %s152_s30  ;;  %s4472_s27 = scalar_lea.hbm %s4737_s20, 1024 }
  0x29   : > { %p4473_p4 = scmp.ne.s32.totalorder %s4737_s20, %s4472_s27  ;;  %p4474_p5 = pneg %p4722_p3 }
  0x2a   : > { %s4477_s5 = scalar_lea.hbm %s6576_s0, 2048  ;;  %p4478_p1 = scmp.lt.s32.totalorder %s4737_s20, %s6576_s0 }
  0x2b   : > { %p4475_p11 = pnand %p4474_p5, %p4473_p4  ;;  %p4479_p7 = scmp.lt.s32.totalorder %s4477_s5, %s4472_s27 }
  0x2d   : > { %p4476_p12 = pneg %p4475_p11  ;;  %p4480_p8 = por %p4479_p7, %p4478_p1 }
  0x2f   : > { %p4481_p9 = pnand %p4480_p8, %p4476_p12 }
  0x31   : > { %4484 = shalt.err (!%p4481_p9)
}
  0x32   : > { %s4485_s30 = scalar_lea.vmem %s4739_s11, 1024  ;;  %s4601_s8 = smov [#allocation3]  }
  0x33   : > { %p4486_p10 = scmp.ne.s32.totalorder %s4739_s11, %s4485_s30  ;;  %s4490_s9 = sshll.u32 %s4601_s8, 4  ;;  %s4491_s9 = int_to_ptr.vmem [resolvable:$false] %s4490_s9 }
  0x34   : > { %s4492_s10 = scalar_lea.vmem %s4491_s9, 2048  ;;  %p4493_p4 = scmp.lt.s32.totalorder %s4739_s11, %s4491_s9 }
  0x35   : > { %p4488_p2 = pnand %p4486_p10, %p4474_p5  ;;  %p4494_p11 = scmp.lt.s32.totalorder %s4492_s10, %s4485_s30 }
  0x37   : > { %p4489_p0 = pneg %p4488_p2  ;;  %p4495_p6 = por %p4494_p11, %p4493_p4 }
  0x39   : > { %p4496_p13 = pnand %p4495_p6, %p4489_p0 }
  0x3b   : > { %4499 = shalt.err (!%p4496_p13)
}
  0x3c   : > { %s4602_s17 = smov 128   ;;  %s4603_s19 = smov 8  }
  0x3d   : > { %4371 = dma.hbm_to_vmem [thread:$0]  (!%p4722_p3), %s4737_s20, 1024, %s4739_s11, %s4741_s22, %s4602_s17, %s4602_s17, %s4603_s19  }
  0x3e   : > { %p6607_p5 = scmp.ne.s32.totalorder %s6603_s26, 0 }
  0x40   : > { %175 = sbr.rel (%p6607_p5) target bundleno = 1053 (0x41d), region = 28 }
  0x45   : > { %s4765_s27 = sand.u32 1, %s4590_s13   ;;  %p6608_p6 = scmp.ne.s32.totalorder %s6600_s23, 0 }
  0x46   : > { %s4087_s28 = sshll.u32 %s4765_s27, 6  ;;  %s178_s29 = scalar_lea.sflag [#allocation4], %s4765_s27 }
  0x47   : > { %s4769_s5 = scalar_lea.vmem [#allocation3], %s4087_s28 }
  0x48   : > { %4569 = dma.done.wait (%p6608_p6), %s178_s29, 1024  }
  0x49   : > { %4571 = vsyncadd (%p6608_p6), %s178_s29, 4294966272  ;;  %p6609_p13 = scmp.eq.s32.totalorder %s4666_s16, 0 }
  0x4b   : > { %4573 = dma.done.wait (%p6609_p13), [#allocation7], 64   ;;  %p6610_p3 = pmov %p6609_p13 }
  0x4c   : > { %vm243_vm0 = vcmask 3072   ;;  %vm257_vm1 = vcmask 142472   ;;  %v6585_v0 = vmov 0   ;;  %v275_v1 = vld [vmem:[%s4769_s5 + $0x20] sm:$0xff]  ;;  %v277_v3 = vld [vmem:[%s4769_s5 + $0x30] sm:$0xff]  ;;  %v274_v8 = vld [vmem:[%s4769_s5 + $0x18] sm:$0xff] }
  0x4d   : > { %4575 = vsyncadd (%p6610_p3), [#allocation7], 4294967232  ;;  %245 = vst.msk [vmem:[#allocation2 + $0x4] sm:$0xf] %vm243_vm0, %v6585_v0  ;;  %1096 = vmatprep.mubr.bf16.mxu1 %v6585_v0  ;;  %1048 = vmatprep.mubr.bf16.mxu0 %v6585_v0  ;;  %v271_v2 = vld [vmem:[%s4769_s5] sm:$0xff]  ;;  %v4276_v4 = vpack.c.bf16 %v275_v1, %v275_v1  ;;  %v4278_v6 = vpack.c.bf16 %v277_v3, %v277_v3  ;;  %v273_v7 = vld [vmem:[%s4769_s5 + $0x10] sm:$0xff] }
  0x4e   : > { %249 = vst.msk [vmem:[#allocation2 + $0x10] sm:$0xf] %vm243_vm0, %v6585_v0  ;;  %252 = vst.msk [vmem:[#allocation2 + $0x1c] sm:$0xf] %vm243_vm0, %v6585_v0  ;;  %vm215_vm2 = vsmask.f32 256  ;;  %v4272_v5 = vpack.c.bf16 %v271_v2, %v271_v2  ;;  %v4274_v10 = vpack.c.bf16 %v273_v7, %v273_v7  ;;  %v4275_v11 = vpack.c.bf16 %v274_v8, %v274_v8 }
  0x4f   : > { %255 = vst.msk [vmem:[#allocation2 + $0x28] sm:$0xf] %vm243_vm0, %v6585_v0  ;;  %v272_v9 = vld [vmem:[%s4769_s5 + $0x8] sm:$0xff]  ;;  %vm214_vm3 = vcmask 139264   ;;  %vm229_vm4 = vsmask.f32 7938 }
  0x50   : > { %259 = vst.msk [vmem:[#allocation2 + $0x4] sm:$0xf] %vm257_vm1, %v6585_v0  ;;  %263 = vst.msk [vmem:[#allocation2 + $0x10] sm:$0xf] %vm257_vm1, %v6585_v0  ;;  %v4273_v12 = vpack.c.bf16 %v272_v9, %v272_v9  ;;  %v340_v13 = vshrl.u32 %v4276_v4, 16  ;;  %v343_v14 = vshll.u32 %v4276_v4, 16 }
  0x51   : > { %266 = vst.msk [vmem:[#allocation2 + $0x1c] sm:$0xf] %vm257_vm1, %v6585_v0  ;;  %269 = vst.msk [vmem:[#allocation2 + $0x28] sm:$0xf] %vm257_vm1, %v6585_v0  ;;  %v306_v15 = vshrl.u32 %v4272_v5, 16  ;;  %v309_v16 = vshll.u32 %v4272_v5, 16 }
  0x52   : > { %v357_v17 = vshrl.u32 %v4278_v6, 16  ;;  %v360_v18 = vshll.u32 %v4278_v6, 16  ;;  %v323_v19 = vshrl.u32 %v4274_v10, 16  ;;  %v326_v20 = vshll.u32 %v4274_v10, 16  ;;  %v278_v27 = vld [vmem:[%s4769_s5 + $0x38] sm:$0xff]  ;;  %v276_v28 = vld [vmem:[%s4769_s5 + $0x28] sm:$0xff]  ;;  %vm4823_vm8 = vmand %vm214_vm3, %vm215_vm2 }
  0x53   : > { %vm303_vm5 = vsmask.f32 4368  ;;  %v4803_v21 = vrot.slane %v340_v13, 7  ;;  %v4805_v22 = vrot.slane %v306_v15, 7  ;;  %v331_v23 = vshrl.u32 %v4275_v11, 16  ;;  %s4605_s23 = smov 1   ;;  %vm4829_vm9 = vmand %vm214_vm3, %vm229_vm4 }
  0x54   : > { %v314_v24 = vshrl.u32 %v4273_v12, 16  ;;  %v4807_v25 = vrot.slane %v357_v17, 7  ;;  %v4809_v26 = vrot.slane %v323_v19, 7  ;;  %vm246_vm6 = vcmask 0   ;;  %v217_v33 = vld [vmem:[#allocation2] sm:$0x1]  ;;  %vm4857_vm10 = vmor %vm215_vm2, %vm303_vm5 }
  0x55   : > { %vm260_vm7 = vcmask 139400   ;;  %v345_v29 = vor.u32 %v343_v14, %v4803_v21  ;;  %v311_v30 = vor.u32 %v309_v16, %v4805_v22  ;;  %v334_v31 = vshll.u32 %v4275_v11, 16  ;;  %v220_v34 = vld [vmem:[#allocation2 + $0xc] sm:$0x1]  ;;  %v223_v39 = vld [vmem:[#allocation2 + $0x18] sm:$0x1] }
  0x56   : > { %v317_v32 = vshll.u32 %v4273_v12, 16  ;;  %v312_v35 = vrot.slane %v4805_v22, 4  ;;  %v362_v36 = vor.u32 %v360_v18, %v4807_v25  ;;  %v333_v37 = vrot.slane %v331_v23, 7  ;;  %v226_v40 = vld [vmem:[#allocation2 + $0x24] sm:$0x1]  ;;  %s4606_s26 = smov 124  }
  0x57   : > { %v316_v38 = vrot.slane %v314_v24, 7  ;;  %385 = vrot.lane.b32.xlu1 %v345_v29, %s4605_s23  ;;  %373 = vrot.lane.b32.xlu0 %v311_v30, %s4605_s23  ;;  %v328_v41 = vor.u32 %v326_v20, %v4809_v26  ;;  %v329_v42 = vrot.slane %v4809_v26, 4  ;;  %v4279_v43 = vpack.c.bf16 %v278_v27, %v278_v27  ;;  %v231_v46 = vld [vmem:[#allocation2 + $0x8] sm:$0x1]  ;;  %v234_v47 = vld [vmem:[#allocation2 + $0x14] sm:$0x1] }
  0x58   : > { %v4277_v44 = vpack.c.bf16 %v276_v28, %v276_v28  ;;  %v237_v48 = vld [vmem:[#allocation2 + $0x20] sm:$0x1]  ;;  %v240_v49 = vld [vmem:[#allocation2 + $0x2c] sm:$0x1]  ;;  %v338_v50 = vrot.slane %v333_v37, 4  ;;  %v336_v57 = vor.u32 %v334_v31, %v333_v37  ;;  %v218_v59 = vsel %vm4823_vm8, 0, %v217_v33 }
  0x59   : > { %v321_v51 = vrot.slane %v316_v38, 4  ;;  %v365_v52 = vshrl.u32 %v4279_v43, 16  ;;  %v368_v53 = vshll.u32 %v4279_v43, 16  ;;  %v319_v58 = vor.u32 %v317_v32, %v316_v38  ;;  %219 = vst [vmem:[#allocation2] sm:$0x1] %v218_v59  ;;  %s4608_s4 = smov 127  }
  0x5a   : > { %v348_v54 = vshrl.u32 %v4277_v44, 16  ;;  %v351_v55 = vshll.u32 %v4277_v44, 16  ;;  %v221_v60 = vsel %vm4823_vm8, 0, %v220_v34  ;;  %v224_v63 = vsel %vm4823_vm8, 0, %v223_v39  ;;  %244 = vst.msk [vmem:[#allocation2] sm:$0xf] %vm243_vm0, %v6585_v0 }
  0x5b   : > { %391 = vrot.lane.b32.xlu1 %v362_v36, %s4605_s23  ;;  %379 = vrot.lane.b32.xlu0 %v328_v41, %s4605_s23  ;;  %v367_v61 = vrot.slane %v365_v52, 7  ;;  %222 = vst [vmem:[#allocation2 + $0xc] sm:$0x1] %v221_v60  ;;  %v227_v1 = vsel %vm4823_vm8, 0, %v226_v40  ;;  %225 = vst [vmem:[#allocation2 + $0x18] sm:$0x1] %v224_v63  ;;  %v337_v9 = vsel %vm4857_vm10, %v329_v42, %v336_v57  ;;  %v6584_v32 = vlaneseq }
  0x5c   : > { %v350_v62 = vrot.slane %v348_v54, 7  ;;  %228 = vst [vmem:[#allocation2 + $0x24] sm:$0x1] %v227_v1  ;;  %v232_v2 = vsel %vm4829_vm9, 0, %v231_v46  ;;  %v235_v3 = vsel %vm4829_vm9, 0, %v234_v47  ;;  %v238_v4 = vsel %vm4829_vm9, 0, %v237_v48 }
  0x5d   : > { %v241_v5 = vsel %vm4829_vm9, 0, %v240_v49  ;;  %248 = vst.msk [vmem:[#allocation2 + $0xc] sm:$0xf] %vm243_vm0, %v6585_v0  ;;  %233 = vst [vmem:[#allocation2 + $0x8] sm:$0x1] %v232_v2  ;;  %v346_v7 = vrot.slane %v4803_v21, 4  ;;  %v320_v10 = vsel %vm4857_vm10, %v312_v35, %v319_v58  ;;  %v370_v11 = vor.u32 %v368_v53, %v367_v61 }
  0x5e   : > { %236 = vst [vmem:[#allocation2 + $0x14] sm:$0x1] %v235_v3  ;;  %239 = vst [vmem:[#allocation2 + $0x20] sm:$0x1] %v238_v4  ;;  %v363_v8 = vrot.slane %v4807_v25, 4  ;;  %v353_v12 = vor.u32 %v351_v55, %v350_v62  ;;  %v372_v15 = vrot.slane %v367_v61, 4 }
  0x5f   : > { %242 = vst [vmem:[#allocation2 + $0x2c] sm:$0x1] %v241_v5  ;;  %251 = vst.msk [vmem:[#allocation2 + $0x18] sm:$0xf] %vm243_vm0, %v6585_v0  ;;  %383 = vrot.lane.b32.xlu1 %v338_v50, %s4605_s23  ;;  %377 = vrot.lane.b32.xlu0 %v321_v51, %s4605_s23  ;;  %v355_v16 = vrot.slane %v350_v62, 4  ;;  %vm409_vm11 = vcmask 134152  }
  0x60   : > { %254 = vst.msk [vmem:[#allocation2 + $0x24] sm:$0xf] %vm243_vm0, %v6585_v0  ;;  %v371_v13 = vsel %vm4857_vm10, %v363_v8, %v370_v11  ;;  %v354_v14 = vsel %vm4857_vm10, %v346_v7, %v353_v12  ;;  %v442_v17 = vld [vmem:[#allocation6] sm:$0xf]  ;;  %vm4911_vm12 = vmand %vm409_vm11, %vm229_vm4  ;;  %vm416_vm13 = vcmask 131080   ;;  %v4929_v41 = vshrl.u32 %v6584_v32, 7 }
  0x61   : > { %258 = vst.msk [vmem:[#allocation2] sm:$0xf] %vm257_vm1, %v6585_v0  ;;  %262 = vst.msk [vmem:[#allocation2 + $0xc] sm:$0xf] %vm257_vm1, %v6585_v0  ;;  %v4127_v18 = vcombine.low %v442_v17, %v442_v17  ;;  %v4607_v30 = vmov 1983009808  }
  0x62   : > { %247 = vst.msk [vmem:[#allocation2 + $0x8] sm:$0x1] %vm246_vm6, %v6585_v0  ;;  %250 = vst.msk [vmem:[#allocation2 + $0x14] sm:$0x1] %vm246_vm6, %v6585_v0  ;;  %v477_v31 = vunpack.c.l.s4 %v4607_v30  ;;  %s4609_s11 = smov 126   ;;  %vm2785_vm15 = vcmask 1042432  }
  0x63   : > { %253 = vst.msk [vmem:[#allocation2 + $0x20] sm:$0x1] %vm246_vm6, %v6585_v0  ;;  %256 = vst.msk [vmem:[#allocation2 + $0x2c] sm:$0x1] %vm246_vm6, %v6585_v0  ;;  %381 = vrot.lane.b32.xlu1 %v337_v9, %s4605_s23  ;;  %375 = vrot.lane.b32.xlu0 %v320_v10, %s4605_s23  ;;  %vm2786_vm0 = vcmask 1046532   ;;  %s4611_s20 = smov 32  }
  0x64   : > { %265 = vst.msk [vmem:[#allocation2 + $0x18] sm:$0xf] %vm257_vm1, %v6585_v0  ;;  %268 = vst.msk [vmem:[#allocation2 + $0x24] sm:$0xf] %vm257_vm1, %v6585_v0  ;;  %v478_v40 = vunpack.c.0.s8 %v477_v31  ;;  %vm1467_vm3 = vsmask.f32 7440 }
  0x65   : > { %264 = vst.msk [vmem:[#allocation2 + $0x14] sm:$0x1] %vm260_vm7, %v6585_v0  ;;  %261 = vst.msk [vmem:[#allocation2 + $0x8] sm:$0x1] %vm260_vm7, %v6585_v0  ;;  %s4612_s22 = smov 64   ;;  %s4613_s6 = smov 96  }
  0x66   : > { %267 = vst.msk [vmem:[#allocation2 + $0x20] sm:$0x1] %vm260_vm7, %v6585_v0  ;;  %270 = vst.msk [vmem:[#allocation2 + $0x2c] sm:$0x1] %vm260_vm7, %v6585_v0  ;;  %v4937_v48 = vsub.s32 %v478_v40, %v4929_v41  ;;  %s4614_s7 = smov 16   ;;  %s4615_s30 = smov 48  }
  0x67   : > { %393 = vrot.lane.b32.xlu1 %v371_v13, %s4605_s23  ;;  %387 = vrot.lane.b32.xlu0 %v354_v14, %s4605_s23  ;;  %vm4924_vm14 = vmand %vm416_vm13, %vm215_vm2  ;;  %6621 = vst [vmem:[#allocation15_spill] sm:$0xff] %v4929_v41  ;;  %vm1466_vm2 = vsmask.f32 3328  ;;  %s4616_s8 = smov 80   ;;  %s4617_s9 = smov 112   ;;  %vm681_vm5 = vcmask 130048  }
  0x68   : > { %v411_v21 = vld [vmem:[#allocation2] sm:$0xf]  ;;  %v421_v27 = vld [vmem:[#allocation2 + $0xc] sm:$0xf]  ;;  %vm5007_vm1 = vmor %vm2785_vm15, %vm2786_vm0  ;;  %s4618_s10 = smov 120   ;;  %vm685_vm6 = vcmask 261120  }
  0x69   : > { %vm5133_vm4 = vmor %vm1466_vm2, %vm1467_vm3  ;;  %vm688_vm7 = vcmask 392192   ;;  %vm691_vm8 = vcmask 523264   ;;  %vm694_vm9 = vcmask 654336   ;;  %vm697_vm10 = vcmask 785408   ;;  %s4619_s17 = smov 116   ;;  %s4620_s19 = smov 108  }
  0x6a   : > { %vm1007_vm13 = vcmask 31744   ;;  %s4621_s28 = smov 104   ;;  %s4622_s29 = smov 100  }
  0x6b   : > { %395 = vrot.lane.b32.xlu1 %v372_v15, %s4605_s23  ;;  %389 = vrot.lane.b32.xlu0 %v355_v16, %s4605_s23  ;;  %v428_v20 = vld [vmem:[#allocation2 + $0x18] sm:$0xf]  ;;  %v435_v26 = vld [vmem:[#allocation2 + $0x24] sm:$0xf]  ;;  %s4089_s5 = sshll.u32 %s4765_s27, 3  ;;  %p6662_p1 = scmp.ne.s32.totalorder %s6601_s24, 0 }
  0x6c   : > { %v425_v36 = vld [vmem:[#allocation2 + $0x14] sm:$0x1]  ;;  %v418_v37 = vld [vmem:[#allocation2 + $0x8] sm:$0x1]  ;;  %s205_s23 = scalar_lea.vmem [#allocation8], %s4089_s5 }
  0x6d   : > { %v439_v1 = vld [vmem:[#allocation2 + $0x2c] sm:$0x1]  ;;  %v432_v2 = vld [vmem:[#allocation2 + $0x20] sm:$0x1] }
  0x6f   : > { %1005 = vrot.lane.b32.xlu0 %v4127_v18, %s4606_s26  ;;  %s4353_s26 = sshll.u32 %s4666_s16, 7 }
  0xc9   : > { %v386_v22 = vpop.permute.xlu1 %385  ;;  %v374_v23 = vpop.permute.xlu0 %373 }
  0xca   : > { %v429_v24 = vsel %vm4911_vm12, %v386_v22, %v428_v20  ;;  %v412_v25 = vsel %vm4911_vm12, %v374_v23, %v411_v21 }
  0xcb   : > { %430 = vst [vmem:[#allocation2 + $0x18] sm:$0xf] %v429_v24  ;;  %413 = vst [vmem:[#allocation2] sm:$0xf] %v412_v25 }
  0xcd   : > { %v392_v28 = vpop.permute.xlu1 %391  ;;  %v380_v29 = vpop.permute.xlu0 %379 }
  0xce   : > { %v436_v33 = vsel %vm4911_vm12, %v392_v28, %v435_v26  ;;  %v422_v34 = vsel %vm4911_vm12, %v380_v29, %v421_v27  ;;  %v4610_v26 = vmov 1934713408   ;;  %vm1011_vm12 = vcmask 1041408  }
  0xcf   : > { %437 = vst [vmem:[#allocation2 + $0x24] sm:$0xf] %v436_v33  ;;  %423 = vst [vmem:[#allocation2 + $0xc] sm:$0xf] %v422_v34  ;;  %v494_v27 = vunpack.c.l.s4 %v4610_v26 }
  0xd1   : > { %v384_v38 = vpop.permute.xlu1 %383  ;;  %v378_v39 = vpop.permute.xlu0 %377  ;;  %v495_v35 = vunpack.c.0.s8 %v494_v27 }
  0xd2   : > { %v426_v42 = vsel %vm4924_vm14, %v384_v38, %v425_v36  ;;  %v419_v43 = vsel %vm4924_vm14, %v378_v39, %v418_v37  ;;  %v443_v44 = vld [vmem:[#allocation2] sm:$0xf]  ;;  %v447_v45 = vld [vmem:[#allocation2 + $0x18] sm:$0xf] }
  0xd3   : > { %427 = vst [vmem:[#allocation2 + $0x14] sm:$0x1] %v426_v42  ;;  %420 = vst [vmem:[#allocation2 + $0x8] sm:$0x1] %v419_v43  ;;  %726 = vrot.lane.b32.xlu0 %v443_v44, %s4608_s4  ;;  %v460_v49 = vshrl.u32 %v447_v45, 16  ;;  %v454_v50 = vshrl.u32 %v443_v44, 16 }
  0xd4   : > { %v1106_v20 = vld [vmem:[#allocation2] sm:$0xf]  ;;  %v1110_v28 = vld [vmem:[#allocation2 + $0x18] sm:$0xf] }
  0xd5   : > { %v382_v46 = vpop.permute.xlu1 %381  ;;  %v376_v47 = vpop.permute.xlu0 %375  ;;  %v3132_v29 = vld [vmem:[#allocation2] sm:$0xe]  ;;  %v5001_v31 = vld [vmem:[#allocation2 + $0x18] sm:$0xe] }
  0xd6   : > { %424 = vst.msk [vmem:[#allocation2 + $0x10] sm:$0xf] %vm409_vm11, %v382_v46  ;;  %415 = vst.msk [vmem:[#allocation2 + $0x4] sm:$0xf] %vm409_vm11, %v376_v47  ;;  %v445_v51 = vld [vmem:[#allocation2 + $0xc] sm:$0xf] }
  0xd7   : > { %v449_v52 = vld [vmem:[#allocation2 + $0x24] sm:$0xf]  ;;  %v455_v53 = vshrl.u32 %v445_v51, 16  ;;  %730 = vrot.lane.b32.xlu0 %v445_v51, %s4608_s4  ;;  %v453_v54 = vpack.i.b16 %v445_v51, %v443_v44  ;;  %v1108_v25 = vld [vmem:[#allocation2 + $0xc] sm:$0xf]  ;;  %v4221_v37 = vrot.slane %v3132_v29, 9 }
  0xd8   : > { %v459_v55 = vpack.i.b16 %v449_v52, %v447_v45  ;;  %v461_v56 = vshrl.u32 %v449_v52, 16  ;;  %v5003_v33 = vld [vmem:[#allocation2] sm:$0xe]  ;;  %v1112_v36 = vld [vmem:[#allocation2 + $0x24] sm:$0xf]  ;;  %v4223_v43 = vrot.slane %v5001_v31, 9 }
  0xd9   : > { %v456_v57 = vpack.i.b16 %v455_v53, %v454_v50  ;;  %v4943_v58 = vrot.slane %v453_v54, %v4937_v48  ;;  %v394_v59 = vpop.permute.xlu1 %393  ;;  %v388_v60 = vpop.permute.xlu0 %387  ;;  %v3135_v40 = vld [vmem:[#allocation2 + $0xc] sm:$0xe]  ;;  %v4242_v44 = vrot.slane %v5003_v33, 9  ;;  %v5015_v46 = vld [vmem:[#allocation2 + $0x18] sm:$0xe] }
  0xda   : > { %v462_v61 = vpack.i.b16 %v461_v56, %v460_v49  ;;  %v4946_v62 = vrot.slane %v459_v55, %v4937_v48  ;;  %438 = vst.msk [vmem:[#allocation2 + $0x28] sm:$0xf] %vm409_vm11, %v394_v59  ;;  %431 = vst.msk [vmem:[#allocation2 + $0x1c] sm:$0xf] %vm409_vm11, %v388_v60  ;;  %v5017_v47 = vld [vmem:[#allocation2] sm:$0xf] }
  0xdb   : > { %v4951_v63 = vrot.slane %v456_v57, %v4937_v48  ;;  %734 = vrot.lane.b32.xlu0 %v447_v45, %s4608_s4  ;;  %v5013_v45 = vld [vmem:[#allocation2 + $0x24] sm:$0xe]  ;;  %v3134_v50 = vld [vmem:[#allocation2 + $0x8] sm:$0x1]  ;;  %v5019_v51 = vld [vmem:[#allocation2 + $0xc] sm:$0xe] }
  0xdc   : > { %v4955_v3 = vrot.slane %v462_v61, %v4937_v48  ;;  %v491_v8 = vcombine.low %v4943_v58, %v4946_v62  ;;  %v492_v9 = vcombine.high %v4943_v58, %v4946_v62  ;;  %v4222_v54 = vrot.slane %v3135_v40, 9  ;;  %v3137_v56 = vld [vmem:[#allocation2 + $0x14] sm:$0x1]  ;;  %v5027_v57 = vld [vmem:[#allocation2 + $0x8] sm:$0x1] }
  0xdd   : > { %v396_v4 = vpop.permute.xlu1 %395  ;;  %v390_v5 = vpop.permute.xlu0 %389  ;;  %v4957_v6 = vld [vmem:[#allocation2 + $0x4] sm:$0xf]  ;;  %v4959_v7 = vld [vmem:[#allocation2 + $0x10] sm:$0xf]  ;;  %v5032_v61 = vld [vmem:[#allocation2 + $0x14] sm:$0x1] }
  0xde   : > { %v525_v10 = vcombine.low %v4951_v63, %v4955_v3  ;;  %v526_v11 = vcombine.high %v4951_v63, %v4955_v3  ;;  %v440_v12 = vsel %vm4924_vm14, %v396_v4, %v439_v1  ;;  %v433_v13 = vsel %vm4924_vm14, %v390_v5, %v432_v2  ;;  %728 = vrot.lane.b32.xlu1 %v4957_v6, %s4608_s4  ;;  %v3133_v30 = vld [vmem:[#allocation2 + $0x4] sm:$0xf]  ;;  %v3136_v42 = vld [vmem:[#allocation2 + $0x10] sm:$0xf] }
  0xdf   : > { %v466_v14 = vshrl.u32 %v4957_v6, 16  ;;  %v467_v15 = vshrl.u32 %v4959_v7, 16  ;;  %441 = vst [vmem:[#allocation2 + $0x2c] sm:$0x1] %v440_v12  ;;  %434 = vst [vmem:[#allocation2 + $0x20] sm:$0x1] %v433_v13  ;;  %738 = vrot.lane.b32.xlu0 %v449_v52, %s4608_s4  ;;  %v465_v16 = vpack.i.b16 %v4959_v7, %v4957_v6  ;;  %v5022_v52 = vsub.s32 %v495_v35, %v4929_v41 }
  0xe0   : > { %v1107_v34 = vld [vmem:[#allocation2 + $0x4] sm:$0xf]  ;;  %v3158_v38 = vrot.slane %v3133_v30, 5  ;;  %v1109_v49 = vld [vmem:[#allocation2 + $0x10] sm:$0xf]  ;;  %v3165_v55 = vrot.slane %v3136_v42, 5 }
  0xe1   : > { %v4980_v17 = vpack.i.b16 %v467_v15, %v466_v14  ;;  %v4982_v18 = vld [vmem:[#allocation2 + $0x1c] sm:$0xf]  ;;  %v4984_v19 = vld [vmem:[#allocation2 + $0x28] sm:$0xf]  ;;  %v5030_v60 = vld [vmem:[#allocation2 + $0x24] sm:$0xe]  ;;  %v5076_v58 = vrot.slane %v525_v10, %v5022_v52 }
  0xe2   : > { %732 = vrot.lane.b32.xlu1 %v4959_v7, %s4608_s4  ;;  %v472_v21 = vshrl.u32 %v4982_v18, 16  ;;  %v471_v22 = vpack.i.b16 %v4984_v19, %v4982_v18  ;;  %v473_v23 = vshrl.u32 %v4984_v19, 16  ;;  %v3159_v53 = vsel %vm5007_vm1, %v4221_v37, %v3158_v38  ;;  %v3139_v59 = vld [vmem:[#allocation2 + $0x1c] sm:$0xf]  ;;  %v3517_v2 = vld [vmem:[#allocation2 + $0x4] sm:$0xf] }
  0xe3   : > { %1122 = vrot.lane.b32.xlu0 %v1106_v20, %s4609_s11  ;;  %v4224_v1 = vrot.slane %v5013_v45, 9  ;;  %v4243_v4 = vrot.slane %v5019_v51, 9  ;;  %v4244_v5 = vrot.slane %v5015_v46, 9  ;;  %v1894_v12 = vshrl.u32 %v5017_v47, 16  ;;  %v1111_v13 = vld [vmem:[#allocation2 + $0x1c] sm:$0xf] }
  0xe4   : > { %v4993_v24 = vpack.i.b16 %v473_v23, %v472_v21  ;;  %v3161_v14 = vrot.slane %v3134_v50, 5  ;;  %v3168_v15 = vrot.slane %v3137_v56, 5  ;;  %v3545_v20 = vrot.slane %v5027_v57, 5  ;;  %v3142_v29 = vld [vmem:[#allocation2 + $0x28] sm:$0xf] }
  0xe5   : > { %v5043_v21 = vrot.slane %v491_v8, %v5022_v52  ;;  %v3166_v23 = vsel %vm5007_vm1, %v4222_v54, %v3165_v55  ;;  %v4245_v26 = vrot.slane %v5030_v60, 9  ;;  %v3552_v27 = vrot.slane %v5032_v61, 5  ;;  %v3520_v31 = vld [vmem:[#allocation2 + $0x10] sm:$0xf]  ;;  %v1113_v33 = vld [vmem:[#allocation2 + $0x28] sm:$0xf] }
  0xe6   : > { %736 = vrot.lane.b32.xlu1 %v4982_v18, %s4608_s4  ;;  %v3542_v30 = vrot.slane %v3517_v2, 5  ;;  %v5055_v8 = vrot.slane %v465_v16, %v4937_v48  ;;  %v3140_v35 = vld [vmem:[#allocation2 + $0x20] sm:$0x1]  ;;  %v5063_v37 = vrot.slane %v492_v9, %v5022_v52  ;;  %v3143_v40 = vld [vmem:[#allocation2 + $0x2c] sm:$0x1]  ;;  %v1897_v6 = vshll.u32 %v5017_v47, 16 }
  0xe7   : > { %1126 = vrot.lane.b32.xlu0 %v1108_v25, %s4609_s11  ;;  %v3172_v25 = vrot.slane %v3139_v59, 5  ;;  %v3523_v42 = vld [vmem:[#allocation2 + $0x1c] sm:$0xf]  ;;  %v4280_v7 = vcombine.high %v5043_v21, %v5043_v21  ;;  %v5082_v62 = vrot.slane %v471_v22, %v4937_v48  ;;  %v3179_v16 = vrot.slane %v3142_v29, 5  ;;  %v1884_v45 = vld [vmem:[#allocation2 + $0xc] sm:$0xf] }
  0xe8   : > { %v3543_v47 = vsel %vm5007_vm1, %v4242_v44, %v3542_v30  ;;  %v3175_v18 = vrot.slane %v3140_v35, 5  ;;  %v3182_v51 = vrot.slane %v3143_v40, 5  ;;  %v3544_v54 = vrot.slane %v3542_v30, 4  ;;  %v1887_v2 = vld [vmem:[#allocation2 + $0x18] sm:$0xf] }
  0xe9   : > { %v3173_v9 = vsel %vm5007_vm1, %v4223_v43, %v3172_v25  ;;  %v3181_v50 = vrot.slane %v3179_v16, 4  ;;  %v3556_v43 = vrot.slane %v3523_v42, 5  ;;  %v1918_v56 = vshrl.u32 %v1884_v45, 16  ;;  %v5119_v42 = vld [vmem:[#allocation2 + $0x1c] sm:$0xf] }
  0xea   : > { %740 = vrot.lane.b32.xlu1 %v4984_v19, %s4608_s4  ;;  %v3526_v19 = vld [vmem:[#allocation2 + $0x28] sm:$0xf]  ;;  %v1921_v59 = vshll.u32 %v1884_v45, 16  ;;  %v3180_v44 = vsel %vm5007_vm1, %v4224_v1, %v3179_v16  ;;  %vm700_vm11 = vcmask 916480  }
  0xeb   : > { %1130 = vrot.lane.b32.xlu0 %v1110_v28, %s4609_s11  ;;  %v3160_v28 = vrot.slane %v3158_v38, 4  ;;  %v5067_v38 = vrot.slane %v4980_v17, %v4937_v48  ;;  %v3549_v17 = vrot.slane %v3520_v31, 5  ;;  %v3183_v30 = vsel %vm5007_vm1, %v3181_v50, %v3182_v51  ;;  %v1883_v45 = vld [vmem:[#allocation2 + $0x8] sm:$0x1] }
  0xec   : > { %v3557_v1 = vsel %vm5007_vm1, %v4244_v5, %v3556_v43  ;;  %v1945_v31 = vshll.u32 %v1887_v2, 16  ;;  %v1920_v35 = vrot.slane %v1918_v56, 4  ;;  %v1923_v40 = vrot.slane %v1921_v59, 5 }
  0xed   : > { %v3162_v10 = vsel %vm5007_vm1, %v3160_v28, %v3161_v14  ;;  %v3563_v14 = vrot.slane %v3526_v19, 5  ;;  %v3558_v57 = vrot.slane %v3556_v43, 4  ;;  %v1951_v51 = vshll.u32 %v5119_v42, 16  ;;  %v1891_v43 = vld [vmem:[#allocation2 + $0x28] sm:$0xf] }
  0xee   : > { %1124 = vrot.lane.b32.xlu1 %v1107_v34, %s4609_s11  ;;  %v3167_v34 = vrot.slane %v3165_v55, 4  ;;  %v1899_v55 = vrot.slane %v1897_v6, 5  ;;  %v1890_v6 = vld [vmem:[#allocation2 + $0x24] sm:$0xf]  ;;  %v1924_v50 = vor.u32 %v1923_v40, %v1920_v35  ;;  %v1913_v56 = vshll.u32 %v1883_v45, 16 }
  0xef   : > { %1134 = vrot.lane.b32.xlu0 %v1112_v36, %s4609_s11  ;;  %v5057_v36 = vrot.slane %v1894_v12, 4  ;;  %v5096_v12 = vrot.slane %v4993_v24, %v4937_v48  ;;  %v3524_v24 = vld [vmem:[#allocation2 + $0x20] sm:$0x1]  ;;  %v5126_v46 = vsel %vm5007_vm1, %v4245_v26, %v3563_v14  ;;  %v1969_v19 = vshll.u32 %v1890_v6, 16  ;;  %v2322_v35 = vld [vmem:[#allocation2 + $0x4] sm:$0xf] }
  0xf0   : > { %v3169_v22 = vsel %vm5007_vm1, %v3167_v34, %v3168_v15  ;;  %v1885_v15 = vld [vmem:[#allocation2 + $0x10] sm:$0xf]  ;;  %v3559_v5 = vrot.slane %v3524_v24, 5  ;;  %v1886_v24 = vld [vmem:[#allocation2 + $0x14] sm:$0x1]  ;;  %v2343_v45 = vshll.u32 %v2322_v35, 16 }
  0xf1   : > { %v1900_v34 = vor.u32 %v1899_v55, %v5057_v36  ;;  %v1931_v16 = vshrl.u32 %v1885_v15, 16 }
  0xf2   : > { %1128 = vrot.lane.b32.xlu1 %v1109_v49, %s4609_s11  ;;  %v3174_v49 = vrot.slane %v3172_v25, 4  ;;  %v3551_v25 = vrot.slane %v3549_v17, 4 }
  0xf3   : > { %3184 = vrot.lane.b32.xlu0 %v3159_v53, %s4608_s4  ;;  %v1882_v53 = vld [vmem:[#allocation2 + $0x4] sm:$0xf] }
  0xf4   : > { %v1903_v28 = vshll.u32 %v1882_v53, 16  ;;  %v1907_v29 = vshrl.u32 %v1882_v53, 16  ;;  %v3553_v53 = vsel %vm5007_vm1, %v3551_v25, %v3552_v27  ;;  %v2321_v27 = vld [vmem:[#allocation2] sm:$0xf]  ;;  %v1975_v25 = vshll.u32 %v1891_v43, 16 }
  0xf5   : > { %v2334_v40 = vshrl.u32 %v2321_v27, 16 }
  0xf6   : > { %1132 = vrot.lane.b32.xlu1 %v1111_v13, %s4609_s11  ;;  %v3550_v13 = vsel %vm5007_vm1, %v4243_v4, %v3549_v17  ;;  %v1942_v4 = vshrl.u32 %v1887_v2, 16  ;;  %v5129_v36 = vrot.slane %v1903_v28, 5  ;;  %v3565_v17 = vrot.slane %v3563_v14, 4 }
  0xf7   : > { %3188 = vrot.lane.b32.xlu0 %v3166_v23, %s4608_s4  ;;  %v3176_v23 = vsel %vm5007_vm1, %v3174_v49, %v3175_v18  ;;  %v1947_v49 = vrot.slane %v1945_v31, 5  ;;  %v1966_v18 = vshrl.u32 %v1890_v6, 16  ;;  %v1955_v2 = vshrl.u32 %v5119_v42, 16 }
  0xf8   : > { %v1944_v26 = vrot.slane %v1942_v4, 4  ;;  %v5158_v28 = vrot.slane %v1924_v50, 4  ;;  %v559_v4 = vcombine.low %v5055_v8, %v5082_v62  ;;  %v5169_v31 = vrot.slane %v1913_v56, 5 }
  0xf9   : > { %v2337_v42 = vshll.u32 %v2321_v27, 16  ;;  %v2325_v27 = vld [vmem:[#allocation2 + $0x10] sm:$0xf] }
  0xfa   : > { %1136 = vrot.lane.b32.xlu1 %v1113_v33, %s4609_s11  ;;  %v5116_v33 = vsel %vm5007_vm1, %v3544_v54, %v3545_v20  ;;  %v3527_v20 = vld [vmem:[#allocation2 + $0x2c] sm:$0x1]  ;;  %v5147_v54 = vsel %vm5007_vm1, %v3558_v57, %v3559_v5  ;;  %v1948_v14 = vor.u32 %v1947_v49, %v1944_v26  ;;  %v1889_v26 = vld [vmem:[#allocation2 + $0x20] sm:$0x1] }
  0xfb   : > { %3192 = vrot.lane.b32.xlu0 %v3173_v9, %s4608_s4  ;;  %v1927_v9 = vshll.u32 %v1885_v15, 16  ;;  %v1968_v15 = vrot.slane %v1966_v18, 4 }
  0xfd   : > { %v5149_v55 = vrot.slane %v1927_v9, 5  ;;  %v2324_v9 = vld [vmem:[#allocation2 + $0xc] sm:$0xf] }
  0xfe   : > { %3186 = vrot.lane.b32.xlu1 %v3162_v10, %s4608_s4  ;;  %v1909_v10 = vrot.slane %v1907_v29, 4  ;;  %v5164_v29 = vrot.slane %v1951_v51, 5  ;;  %v2358_v50 = vshrl.u32 %v2324_v9, 16 }
  0xff   : > { %3196 = vrot.lane.b32.xlu0 %v3180_v44, %s4608_s4  ;;  %v1933_v44 = vrot.slane %v1931_v16, 4  ;;  %v1930_v6 = vsel %vm5133_vm4, %v5158_v28, %v5149_v55  ;;  %v5183_v16 = vrot.slane %v1975_v25, 5 }
 0x100   : > { %v1910_v61 = vor.u32 %v1909_v10, %v5129_v36  ;;  %v2347_v10 = vshrl.u32 %v2322_v35, 16 }
 0x101   : > { %v1934_v5 = vor.u32 %v1933_v44, %v5149_v55 }
 0x102   : > { %3190 = vrot.lane.b32.xlu1 %v3169_v22, %s4608_s4  ;;  %v5137_v22 = vrot.slane %v1900_v34, 4  ;;  %v1979_v34 = vshrl.u32 %v1891_v43, 16  ;;  %v5176_v57 = vrot.slane %v1910_v61, 4  ;;  %v1957_v43 = vrot.slane %v1955_v2, 4 }
 0x103   : > { %3568 = vrot.lane.b32.xlu0 %v3543_v47, %s4609_s11  ;;  %v3566_v47 = vrot.slane %v3527_v20, 5  ;;  %v5181_v20 = vrot.slane %v1948_v14, 4  ;;  %v5193_v51 = vrot.slane %v1934_v5, 4  ;;  %v5207_v2 = vrot.slane %v2343_v45, 5 }
 0x104   : > { %v1906_v59 = vsel %vm5133_vm4, %v5137_v22, %v5129_v36  ;;  %v2339_v22 = vrot.slane %v2337_v42, 5  ;;  %v1916_v61 = vsel %vm5133_vm4, %v5176_v57, %v5169_v31  ;;  %v1981_v14 = vrot.slane %v1979_v34, 4  ;;  %v2330_v42 = vld [vmem:[#allocation2 + $0x24] sm:$0xf] }
 0x105   : > { %v2349_v25 = vrot.slane %v2347_v10, 4  ;;  %v2360_v34 = vrot.slane %v2358_v50, 4  ;;  %v2323_v10 = vld [vmem:[#allocation2 + $0x8] sm:$0x1]  ;;  %v2409_v50 = vshll.u32 %v2330_v42, 16  ;;  %v4102_v31 = vcombine.low %v5063_v37, %v5063_v37 }
 0x106   : > { %3194 = vrot.lane.b32.xlu1 %v3176_v23, %s4608_s4  ;;  %v1971_v23 = vrot.slane %v1969_v19, 5  ;;  %v2336_v19 = vrot.slane %v2334_v40, 4  ;;  %v2328_v40 = vld [vmem:[#allocation2 + $0x1c] sm:$0xf] }
 0x107   : > { %3572 = vrot.lane.b32.xlu0 %v3550_v13, %s4609_s11  ;;  %v5162_v13 = vsel %vm5007_vm1, %v3565_v17, %v3566_v47  ;;  %v1937_v17 = vshll.u32 %v1886_v24, 16  ;;  %v2361_v47 = vshll.u32 %v2324_v9, 16  ;;  %v1958_v9 = vor.u32 %v1957_v43, %v5164_v29 }
 0x108   : > { %v1972_v36 = vor.u32 %v1971_v23, %v1968_v15  ;;  %v1892_v23 = vld [vmem:[#allocation2 + $0x2c] sm:$0x1]  ;;  %v2340_v24 = vor.u32 %v2339_v22, %v2336_v19  ;;  %v2350_v19 = vor.u32 %v2349_v25, %v5207_v2  ;;  %v2406_v22 = vshrl.u32 %v2330_v42, 16 }
 0x109   : > { %v5205_v15 = vrot.slane %v1937_v17, 5  ;;  %v2363_v35 = vrot.slane %v2361_v47, 5  ;;  %v2367_v17 = vshll.u32 %v2325_v27, 16  ;;  %v1985_v45 = vshll.u32 %v1892_v23, 16 }
 0x10a   : > { %3198 = vrot.lane.b32.xlu1 %v3183_v30, %s4608_s4  ;;  %v560_v30 = vcombine.high %v5055_v8, %v5082_v62  ;;  %v5199_v44 = vrot.slane %v1972_v36, 4  ;;  %v5226_v47 = vrot.slane %v2340_v24, 4  ;;  %v2371_v43 = vshrl.u32 %v2325_v27, 16  ;;  %v2770_v62 = vld [vmem:[#allocation2 + $0x24] sm:$0xe] }
 0x10b   : > { %3576 = vrot.lane.b32.xlu0 %v3557_v1, %s4609_s11  ;;  %v2327_v1 = vld [vmem:[#allocation2 + $0x18] sm:$0xf]  ;;  %v1940_v5 = vsel %vm5133_vm4, %v5193_v51, %v5205_v15  ;;  %v5231_v32 = vrot.slane %v2367_v17, 5  ;;  %v5235_v42 = vrot.slane %v1985_v45, 5  ;;  %v2408_v27 = vrot.slane %v2406_v22, 4 }
 0x10c   : > { %v2382_v55 = vshrl.u32 %v2327_v1, 16  ;;  %v2385_v56 = vshll.u32 %v2327_v1, 16  ;;  %v1978_v28 = vsel %vm5133_vm4, %v5199_v44, %v5183_v16  ;;  %v1982_v1 = vor.u32 %v1981_v14, %v5183_v16  ;;  %v1456_v15 = vld [vmem:[#allocation2 + $0x8] sm:$0x1] }
 0x10d   : > { %v2353_v14 = vshll.u32 %v2323_v10, 16  ;;  %v5322_v51 = vrot.slane %v559_v4, %v5022_v52  ;;  %v1489_v18 = vshll.u32 %v1456_v15, 16 }
 0x10e   : > { %3570 = vrot.lane.b32.xlu1 %v5116_v33, %s4609_s11  ;;  %v1961_v33 = vshll.u32 %v1889_v26, 16  ;;  %v2391_v26 = vshll.u32 %v2328_v40, 16  ;;  %v5233_v25 = vrot.slane %v1982_v1, 4 }
 0x10f   : > { %3580 = vrot.lane.b32.xlu0 %v5126_v46, %s4609_s11  ;;  %v1954_v46 = vsel %vm5133_vm4, %v5181_v20, %v5164_v29  ;;  %v2387_v20 = vrot.slane %v2385_v56, 5  ;;  %v2364_v29 = vor.u32 %v2363_v35, %v2360_v34  ;;  %v5229_v56 = vrot.slane %v1958_v9, 4 }
 0x110   : > { %v5220_v36 = vrot.slane %v1961_v33, 5  ;;  %v5237_v24 = vrot.slane %v2391_v26, 5  ;;  %v5239_v34 = vrot.slane %v2350_v19, 4  ;;  %v2411_v35 = vrot.slane %v2409_v50, 5  ;;  %v1461_v26 = vld [vmem:[#allocation2 + $0x1c] sm:$0xf] }
 0x111   : > { %v2373_v9 = vrot.slane %v2371_v43, 4  ;;  %v5252_v1 = vrot.slane %v2353_v14, 5  ;;  %v1458_v43 = vld [vmem:[#allocation2 + $0x10] sm:$0xf]  ;;  %v1531_v14 = vshrl.u32 %v1461_v26, 16 }
 0x112   : > { %3574 = vrot.lane.b32.xlu1 %v3553_v53, %s4609_s11  ;;  %v2384_v53 = vrot.slane %v2382_v55, 4  ;;  %v2395_v55 = vshrl.u32 %v2328_v40, 16  ;;  %v5247_v40 = vrot.slane %v2364_v29, 4  ;;  %v2412_v50 = vor.u32 %v2411_v35, %v2408_v27  ;;  %v1455_v29 = vld [vmem:[#allocation2 + $0x4] sm:$0xf] }
 0x113   : > { %1989 = vrot.lane.b32.xlu0 %v1906_v59, %s4608_s4  ;;  %v2331_v59 = vld [vmem:[#allocation2 + $0x28] sm:$0xf]  ;;  %v1503_v27 = vshll.u32 %v1458_v43, 16  ;;  %v1507_v35 = vshrl.u32 %v1458_v43, 16 }
 0x114   : > { %v2388_v33 = vor.u32 %v2387_v20, %v2384_v53  ;;  %v2419_v23 = vshrl.u32 %v2331_v59, 16  ;;  %v2415_v0 = vshll.u32 %v2331_v59, 16  ;;  %v2329_v53 = vld [vmem:[#allocation2 + $0x20] sm:$0x1]  ;;  %v2397_v20 = vrot.slane %v2395_v55, 4 }
 0x115   : > { %v2332_v59 = vld [vmem:[#allocation2 + $0x2c] sm:$0x1]  ;;  %v1509_v43 = vrot.slane %v1507_v35, 4 }
 0x116   : > { %3578 = vrot.lane.b32.xlu1 %v5147_v54, %s4609_s11  ;;  %v2326_v54 = vld [vmem:[#allocation2 + $0x14] sm:$0x1]  ;;  %v5250_v17 = vrot.slane %v2388_v33, 4  ;;  %v2421_v10 = vrot.slane %v2419_v23, 4  ;;  %v5266_v19 = vrot.slane %v2415_v0, 5  ;;  %v2374_v0 = vor.u32 %v2373_v9, %v5231_v32 }
 0x117   : > { %1993 = vrot.lane.b32.xlu0 %v1930_v6, %s4608_s4  ;;  %v2346_v6 = vsel %vm5133_vm4, %v5226_v47, %v5207_v2  ;;  %v2377_v45 = vshll.u32 %v2326_v54, 16  ;;  %v2370_v2 = vsel %vm5133_vm4, %v5247_v40, %v5231_v32  ;;  %v2401_v47 = vshll.u32 %v2329_v53, 16 }
 0x118   : > { %v2394_v22 = vsel %vm5133_vm4, %v5250_v17, %v5237_v24  ;;  %v2398_v55 = vor.u32 %v2397_v20, %v5237_v24  ;;  %v1527_v33 = vshll.u32 %v1461_v26, 16  ;;  %v2422_v57 = vor.u32 %v2421_v10, %v5266_v19 }
 0x119   : > { %v5290_v23 = vrot.slane %v2377_v45, 5  ;;  %v2425_v32 = vshll.u32 %v2332_v59, 16  ;;  %v1483_v54 = vshrl.u32 %v1455_v29, 16  ;;  %v5295_v40 = vrot.slane %v2412_v50, 4 }
 0x11a   : > { %3582 = vrot.lane.b32.xlu1 %v5162_v13, %s4609_s11  ;;  %v1964_v13 = vsel %vm5133_vm4, %v5229_v56, %v5220_v36  ;;  %v2356_v36 = vsel %vm5133_vm4, %v5239_v34, %v5252_v1  ;;  %v1464_v56 = vld [vmem:[#allocation2 + $0x28] sm:$0xf]  ;;  %v5297_v9 = vrot.slane %v2401_v47, 5  ;;  %v5305_v16 = vrot.slane %v2374_v0, 4 }
 0x11b   : > { %1997 = vrot.lane.b32.xlu0 %v1954_v46, %s4608_s4  ;;  %v1988_v46 = vsel %vm5133_vm4, %v5233_v25, %v5235_v42  ;;  %v1551_v53 = vshll.u32 %v1464_v56, 16  ;;  %v1555_v20 = vshrl.u32 %v1464_v56, 16  ;;  %v5307_v44 = vrot.slane %v2398_v55, 4  ;;  %v1465_v55 = vld [vmem:[#allocation2 + $0x2c] sm:$0x1] }
 0x11c   : > { %v5309_v45 = vrot.slane %v1527_v33, 5  ;;  %v1533_v10 = vrot.slane %v1531_v14, 4  ;;  %v5312_v26 = vrot.slane %v2422_v57, 4  ;;  %v5314_v59 = vrot.slane %v2425_v32, 5 }
 0x11d   : > { %v4282_v50 = vcombine.high %v5063_v37, %v5063_v37  ;;  %v2418_v0 = vsel %vm5133_vm4, %v5295_v40, %v5266_v19  ;;  %v5334_v33 = vrot.slane %v1551_v53, 5  ;;  %v1557_v4 = vrot.slane %v1555_v20, 4  ;;  %v2767_v20 = vld [vmem:[#allocation2 + $0x18] sm:$0xe] }
 0x11e   : > { %1991 = vrot.lane.b32.xlu1 %v1916_v61, %s4608_s4  ;;  %v1479_v61 = vshll.u32 %v1455_v29, 16  ;;  %v1485_v29 = vrot.slane %v1483_v54, 4  ;;  %v2380_v14 = vsel %vm5133_vm4, %v5305_v16, %v5290_v23  ;;  %v2404_v57 = vsel %vm5133_vm4, %v5307_v44, %v5297_v9  ;;  %v2762_v54 = vld [vmem:[#allocation2 + $0x4] sm:$0xf] }
 0x11f   : > { %2001 = vrot.lane.b32.xlu0 %v1978_v28, %s4608_s4  ;;  %v1462_v28 = vld [vmem:[#allocation2 + $0x20] sm:$0x1]  ;;  %v1534_v32 = vor.u32 %v1533_v10, %v5309_v45  ;;  %v5359_v40 = vrot.slane %v560_v30, %v5022_v52  ;;  %v5365_v53 = vrot.slane %v526_v11, %v5022_v52  ;;  %v5374_v30 = vld [vmem:[#allocation2 + $0x28] sm:$0xf]  ;;  %v1558_v63 = vor.u32 %v1557_v4, %v5334_v33 }
 0x120   : > { %v5326_v47 = vrot.slane %v1479_v61, 5  ;;  %v1537_v56 = vshll.u32 %v1462_v28, 16  ;;  %v2761_v61 = vld [vmem:[#allocation2] sm:$0xe]  ;;  %v5369_v28 = vld [vmem:[#allocation2 + $0x1c] sm:$0xf] }
 0x121   : > { %v1561_v3 = vshll.u32 %v1465_v55, 16  ;;  %v1454_v11 = vld [vmem:[#allocation2] sm:$0xf]  ;;  %v2790_v35 = vrot.slane %v2762_v54, 5  ;;  %v1535_v15 = vrot.slane %v1534_v32, 4  ;;  %v4203_v54 = vrot.slane %v2770_v62, 9 }
 0x122   : > { %1995 = vrot.lane.b32.xlu1 %v1940_v5, %s4608_s4  ;;  %v5324_v5 = vld [vmem:[#allocation2 + $0x14] sm:$0x1]  ;;  %v1486_v10 = vor.u32 %v1485_v29, %v5326_v47  ;;  %v1539_v19 = vrot.slane %v1537_v56, 5  ;;  %v5391_v55 = vld [vmem:[#allocation2 + $0xc] sm:$0xf]  ;;  %v4200_v56 = vrot.slane %v2761_v61, 9 }
 0x123   : > { %2429 = vrot.lane.b32.xlu0 %v2346_v6, %s4609_s11  ;;  %v5328_v6 = vrot.slane %v1503_v27, 5  ;;  %v2764_v27 = vld [vmem:[#allocation2 + $0xc] sm:$0xe]  ;;  %v1513_v8 = vshll.u32 %v5324_v5, 16  ;;  %v4202_v5 = vrot.slane %v2767_v20, 9  ;;  %v2811_v25 = vrot.slane %v5374_v30, 5 }
 0x124   : > { %v4201_v4 = vrot.slane %v2764_v27, 9  ;;  %v1487_v42 = vrot.slane %v1486_v10, 4  ;;  %v1470_v32 = vshrl.u32 %v1454_v11, 16  ;;  %v1473_v20 = vshll.u32 %v1454_v11, 16  ;;  %v2763_v10 = vld [vmem:[#allocation2 + $0x8] sm:$0x1] }
 0x125   : > { %v1510_v49 = vor.u32 %v1509_v43, %v5328_v6  ;;  %v2804_v43 = vrot.slane %v5369_v28, 5  ;;  %v5400_v28 = vsel %vm5007_vm1, %v4200_v56, %v2790_v35  ;;  %v5408_v17 = vsel %vm5007_vm1, %v4203_v54, %v2811_v25  ;;  %v1460_v11 = vld [vmem:[#allocation2 + $0x18] sm:$0xf] }
 0x126   : > { %1999 = vrot.lane.b32.xlu1 %v1964_v13, %s4608_s4  ;;  %v2428_v13 = vsel %vm5133_vm4, %v5312_v26, %v5314_v59  ;;  %v1563_v61 = vrot.slane %v1561_v3, 5  ;;  %v1494_v27 = vshrl.u32 %v5391_v55, 16  ;;  %v1515_v62 = vrot.slane %v1513_v8, 5  ;;  %v2769_v3 = vld [vmem:[#allocation2 + $0x20] sm:$0x1] }
 0x127   : > { %2433 = vrot.lane.b32.xlu0 %v2370_v2, %s4609_s11  ;;  %v5367_v2 = vld [vmem:[#allocation2 + $0x10] sm:$0xf]  ;;  %v5420_v30 = vsel %vm5133_vm4, %v1535_v15, %v1539_v19  ;;  %v2826_v56 = vshrl.u32 %v5408_v17, 16  ;;  %v2819_v34 = vshrl.u32 %v5400_v28, 16  ;;  %v5434_v19 = vrot.slane %v1470_v32, 4 }
 0x128   : > { %v2797_v29 = vrot.slane %v5367_v2, 5  ;;  %v5396_v2 = vsel %vm5007_vm1, %v4202_v5, %v2804_v43  ;;  %v2793_v15 = vrot.slane %v2763_v10, 5  ;;  %v5449_v54 = vrot.slane %v1494_v27, 4  ;;  %v1463_v32 = vld [vmem:[#allocation2 + $0x24] sm:$0xf] }
 0x129   : > { %v2825_v5 = vshrl.u32 %v5396_v2, 16  ;;  %v2806_v27 = vrot.slane %v2804_v43, 4  ;;  %v2807_v10 = vrot.slane %v2769_v3, 5  ;;  %v1545_v43 = vshll.u32 %v1463_v32, 16 }
 0x12a   : > { %2003 = vrot.lane.b32.xlu1 %v1988_v46, %s4608_s4  ;;  %v1511_v46 = vrot.slane %v1510_v49, 4  ;;  %v5404_v24 = vsel %vm5007_vm1, %v4201_v4, %v2797_v29  ;;  %v1491_v49 = vrot.slane %v1489_v18, 5 }
 0x12b   : > { %2437 = vrot.lane.b32.xlu0 %v2394_v22, %s4609_s11  ;;  %v1559_v22 = vrot.slane %v1558_v63, 4  ;;  %v2820_v1 = vshrl.u32 %v5404_v24, 16  ;;  %v5436_v63 = vrot.slane %v1473_v20, 5  ;;  %v2827_v23 = vpack.i.b16 %v2826_v56, %v2825_v5 }
 0x12c   : > { %v5426_v18 = vsel %vm5133_vm4, %v1487_v42, %v1491_v49  ;;  %v5432_v8 = vsel %vm5133_vm4, %v1511_v46, %v1515_v62  ;;  %v1497_v42 = vshll.u32 %v5391_v55, 16  ;;  %v2772_v46 = vld [vmem:[#allocation2 + $0x2c] sm:$0x1]  ;;  %v1518_v49 = vshrl.u32 %v1460_v11, 16 }
 0x12d   : > { %v2813_v62 = vrot.slane %v2811_v25, 4  ;;  %v2814_v4 = vrot.slane %v2772_v46, 5  ;;  %v5473_v25 = vrot.slane %v2827_v23, %v4937_v48  ;;  %v2808_v9 = vsel %vm5007_vm1, %v2806_v27, %v2807_v10 }
 0x12e   : > { %2431 = vrot.lane.b32.xlu1 %v2356_v36, %s4609_s11  ;;  %v2766_v36 = vld [vmem:[#allocation2 + $0x14] sm:$0x1]  ;;  %v2824_v46 = vpack.i.b16 %v5408_v17, %v5396_v2  ;;  %v1580_v27 = vshrl.u32 %v5426_v18, 16 }
 0x12f   : > { %2441 = vrot.lane.b32.xlu0 %v2418_v0, %s4609_s11  ;;  %v2792_v0 = vrot.slane %v2790_v35, 4  ;;  %v5446_v35 = vsel %vm5133_vm4, %v1559_v22, %v1563_v61  ;;  %v2800_v20 = vrot.slane %v2766_v36, 5  ;;  %v1521_v22 = vshll.u32 %v1460_v11, 16 }
 0x130   : > { %v2821_v61 = vpack.i.b16 %v2820_v1, %v2819_v34  ;;  %v2815_v44 = vsel %vm5007_vm1, %v2813_v62, %v2814_v4  ;;  %v2837_v34 = vshrl.u32 %v2808_v9, 16  ;;  %v2818_v4 = vpack.i.b16 %v5404_v24, %v5400_v28 }
 0x131   : > { %v2794_v16 = vsel %vm5007_vm1, %v2792_v0, %v2793_v15  ;;  %v2838_v1 = vshrl.u32 %v2815_v44, 16  ;;  %v1523_v36 = vrot.slane %v1521_v22, 5  ;;  %v5514_v37 = vrot.slane %v2824_v46, %v4937_v48 }
 0x132   : > { %2435 = vrot.lane.b32.xlu1 %v2380_v14, %s4609_s11  ;;  %v2799_v14 = vrot.slane %v2797_v29, 4  ;;  %v1542_v29 = vshrl.u32 %v1463_v32, 16  ;;  %v2831_v11 = vshrl.u32 %v2794_v16, 16  ;;  %v5480_v0 = vrot.slane %v2821_v61, %v4937_v48  ;;  %v5537_v61 = vpop.permute.xlu0 %1005 }
 0x133   : > { %619 = vrot.lane.b32.xlu0 %v4280_v7, %s4611_s20  ;;  %v1585_v7 = vpack.i.b16 %v5446_v35, %v5420_v30  ;;  %v2839_v39 = vpack.i.b16 %v2838_v1, %v2837_v34  ;;  %v1547_v32 = vrot.slane %v1545_v43, 5  ;;  %v5511_v28 = vrot.slane %v2818_v4, %v4937_v48  ;;  %6628 = vst [vmem:[#allocation16_spill] sm:$0xff] %v5537_v61 }
 0x134   : > { %v2801_v55 = vsel %vm5007_vm1, %v2799_v14, %v2800_v20  ;;  %v1544_v15 = vrot.slane %v1542_v29, 4  ;;  %v1499_v24 = vrot.slane %v1497_v42, 5  ;;  %v6626_v14 = vcombine.high %v5322_v51, %v5322_v51 }
 0x135   : > { %v2832_v5 = vshrl.u32 %v2801_v55, 16  ;;  %v2830_v3 = vpack.i.b16 %v2801_v55, %v2794_v16  ;;  %v5508_v2 = vrot.slane %v2839_v39, %v4937_v48  ;;  %v1579_v20 = vpack.i.b16 %v5432_v8, %v5426_v18 }
 0x136   : > { %2439 = vrot.lane.b32.xlu1 %v2404_v57, %s4609_s11  ;;  %v1520_v57 = vrot.slane %v1518_v49, 4  ;;  %v6627_v22 = vcombine.low %v5076_v58, %v5076_v58  ;;  %v1581_v55 = vshrl.u32 %v5432_v8, 16  ;;  %v1548_v62 = vor.u32 %v1547_v32, %v1544_v15 }
 0x137   : > { %629 = vrot.lane.b32.xlu0 %v4102_v31, %s4612_s22  ;;  %v2833_v56 = vpack.i.b16 %v2832_v5, %v2831_v11  ;;  %v2836_v31 = vpack.i.b16 %v2815_v44, %v2808_v9  ;;  %v5497_v23 = vrot.slane %v2830_v3, %v4937_v48  ;;  %v4109_v29 = vcombine.low %v5359_v40, %v5359_v40 }
 0x138   : > { %v1524_v10 = vor.u32 %v1523_v36, %v1520_v57  ;;  %v5544_v11 = vrot.slane %v1585_v7, %v4937_v48  ;;  %v1476_v5 = vor.u32 %v5436_v63, %v5434_v19  ;;  %v4281_v43 = vcombine.high %v5076_v58, %v5076_v58 }
 0x139   : > { %v5500_v26 = vrot.slane %v2836_v31, %v4937_v48  ;;  %v6629_v9 = vshrl.u32 %v5420_v30, 16  ;;  %v1500_v18 = vor.u32 %v1499_v24, %v5449_v54  ;;  %v4103_v8 = vcombine.low %v5365_v53, %v5365_v53 }
 0x13a   : > { %2443 = vrot.lane.b32.xlu1 %v2428_v13, %s4609_s11  ;;  %v5505_v13 = vrot.slane %v2833_v56, %v4937_v48  ;;  %v1664_v57 = vrot.slane %v1579_v20, %v4937_v48  ;;  %v4286_v19 = vcombine.high %v5359_v40, %v5359_v40  ;;  %v1582_v63 = vpack.i.b16 %v1581_v55, %v1580_v27 }
 0x13b   : > { %639 = vrot.lane.b32.xlu0 %v4282_v50, %s4613_s6  ;;  %v1587_v50 = vshrl.u32 %v5446_v35, 16  ;;  %v1525_v58 = vrot.slane %v1524_v10, 4  ;;  %v1549_v7 = vrot.slane %v1548_v62, 4  ;;  %v6630_v30 = vcombine.low %v5067_v38, %v5096_v12 }
 0x13c   : > { %v6631_v56 = vcombine.high %v5067_v38, %v5096_v12  ;;  %v1673_v1 = vcombine.low %v1664_v57, %v5544_v11  ;;  %v1477_v36 = vrot.slane %v1476_v5, 4  ;;  %v1501_v31 = vrot.slane %v1500_v18, 4 }
 0x13d   : > { %v1588_v44 = vpack.i.b16 %v1587_v50, %v6629_v9  ;;  %v601_v54 = vrot.slane %v6630_v30, %v5022_v52  ;;  %v1530_v15 = vsel %vm5133_vm4, %v1525_v58, %v5309_v45  ;;  %v1554_v39 = vsel %vm5133_vm4, %v1549_v7, %v5334_v33 }
 0x13e   : > { %654 = vrot.lane.b32.xlu1 %v6626_v14, %s4611_s20  ;;  %v608_v34 = vrot.slane %v6631_v56, %v5022_v52  ;;  %v1698_v38 = vrot.slane %v1582_v63, %v4937_v48  ;;  %v1482_v12 = vsel %vm5133_vm4, %v1477_v36, %v5326_v47  ;;  %v1506_v4 = vsel %vm5133_vm4, %v1501_v31, %v5328_v6 }
 0x13f   : > { %614 = vrot.lane.b32.xlu0 %v6627_v22, %s4614_s7  ;;  %v1706_v40 = vrot.slane %v1588_v44, %v4937_v48  ;;  %v4106_v45 = vcombine.low %v601_v54, %v601_v54  ;;  %v1573_v46 = vpack.i.b16 %v1554_v39, %v1530_v15  ;;  %v5590_v50 = vrot.slane %v1673_v1, %v5022_v52 }
 0x140   : > { %v4287_v33 = vcombine.high %v608_v34, %v608_v34  ;;  %v1567_v14 = vpack.i.b16 %v1506_v4, %v1482_v12  ;;  %v4285_v47 = vcombine.high %v601_v54, %v601_v54  ;;  %v1574_v60 = vshrl.u32 %v1530_v15, 16 }
 0x141   : > { %v1707_v24 = vcombine.low %v1698_v38, %v1706_v40  ;;  %v1604_v20 = vrot.slane %v1573_v46, %v4937_v48  ;;  %v1575_v6 = vshrl.u32 %v1554_v39, 16  ;;  %v4308_v27 = vcombine.high %v5590_v50, %v5590_v50 }
 0x142   : > { %664 = vrot.lane.b32.xlu1 %v4109_v29, %s4612_s22  ;;  %v1596_v10 = vrot.slane %v1567_v14, %v4937_v48  ;;  %v1568_v62 = vshrl.u32 %v1482_v12, 16  ;;  %v1569_v29 = vshrl.u32 %v1506_v4, 16  ;;  %v4283_v7 = vcombine.high %v5365_v53, %v5365_v53 }
 0x143   : > { %624 = vrot.lane.b32.xlu0 %v4281_v43, %s4615_s30  ;;  %v1715_v55 = vrot.slane %v1707_v24, %v5022_v52  ;;  %v4110_v43 = vcombine.low %v608_v34, %v608_v34  ;;  %v1576_v44 = vpack.i.b16 %v1575_v6, %v1574_v60 }
 0x144   : > { %v1605_v9 = vcombine.low %v1596_v10, %v1604_v20  ;;  %v1570_v63 = vpack.i.b16 %v1569_v29, %v1568_v62  ;;  %v1606_v54 = vcombine.high %v1596_v10, %v1604_v20  ;;  %v2890_v29 = vcombine.low %v5480_v0, %v5473_v25 }
 0x145   : > { %v5569_v3 = vpop.permute.xlu0 %726  ;;  %v1638_v56 = vrot.slane %v1576_v44, %v4937_v48  ;;  %v4309_v1 = vcombine.high %v1715_v55, %v1715_v55 }
 0x146   : > { %674 = vrot.lane.b32.xlu1 %v4286_v19, %s4613_s6  ;;  %v1674_v19 = vcombine.high %v1664_v57, %v5544_v11  ;;  %v5615_v30 = vrot.slane %v1605_v9, %v5022_v52  ;;  %v1708_v57 = vcombine.high %v1698_v38, %v1706_v40  ;;  %v1630_v36 = vrot.slane %v1570_v63, %v4937_v48 }
 0x147   : > { %634 = vrot.lane.b32.xlu0 %v4103_v8, %s4616_s8  ;;  %v4156_v8 = vcombine.low %v1715_v55, %v1715_v55  ;;  %v1620_v15 = vrot.slane %v1606_v54, %v5022_v52 }
 0x148   : > { %v5621_v11 = vrot.slane %v1674_v19, %v5022_v52  ;;  %v4304_v31 = vcombine.high %v5615_v30, %v5615_v30  ;;  %v1639_v39 = vcombine.low %v1630_v36, %v1638_v56  ;;  %v5636_v40 = vrot.slane %v1708_v57, %v5022_v52 }
 0x149   : > { %v5587_v32 = vpop.permute.xlu0 %730  ;;  %v4306_v10 = vcombine.high %v1620_v15, %v1620_v15 }
 0x14a   : > { %649 = vrot.lane.b32.xlu1 %v4106_v45, %s4614_s7  ;;  %v4159_v4 = vcombine.low %v5621_v11, %v5621_v11  ;;  %v4152_v45 = vcombine.low %v1620_v15, %v1620_v15  ;;  %v1647_v46 = vrot.slane %v1639_v39, %v5022_v52  ;;  %v4160_v14 = vcombine.low %v5636_v40, %v5636_v40  ;;  %v4438_v39 = vld [vmem:[#allocation6] ss:$0 sps:$4 sm:$0xff]  }
 0x14b   : > { %679 = vrot.lane.b32.xlu0 %v4287_v33, %s4617_s9  ;;  %v744_v20 = vpack.i.b16 %v5587_v32, %v5569_v3 }
 0x14c   : > { %v4149_v6 = vcombine.low %v1647_v46, %v1647_v46  ;;  %v4305_v44 = vcombine.high %v1647_v46, %v1647_v46 }
 0x14d   : > { %v5595_v22 = vpop.permute.xlu0 %734 }
 0x14e   : > { %659 = vrot.lane.b32.xlu1 %v4285_v47, %s4615_s30  ;;  %v1640_v47 = vcombine.high %v1630_v36, %v1638_v56 }
 0x14f   : > { %1768 = vrot.lane.b32.xlu0 %v4308_v27, %s4611_s20 }
 0x150   : > { %v5603_v5 = vpop.permute.xlu1 %728  ;;  %v1654_v62 = vrot.slane %v1640_v47, %v5022_v52 }
 0x151   : > { %v5605_v18 = vpop.permute.xlu0 %738 }
 0x152   : > { %669 = vrot.lane.b32.xlu1 %v4110_v43, %s4616_s8  ;;  %v750_v33 = vpack.i.b16 %v5605_v18, %v5595_v22  ;;  %v773_v43 = vrot.slane %v744_v20, %v4937_v48  ;;  %v4307_v63 = vcombine.high %v1654_v62, %v1654_v62  ;;  %v4153_v56 = vcombine.low %v1654_v62, %v1654_v62 }
 0x153   : > { %1763 = vrot.lane.b32.xlu0 %v4156_v8, %s4614_s7 }
 0x154   : > { %v5610_v58 = vpop.permute.xlu1 %732  ;;  %v781_v27 = vrot.slane %v750_v33, %v4937_v48 }
 0x155   : > { %v5618_v34 = vpop.permute.xlu0 %1122  ;;  %v758_v17 = vshrl.u32 %v5610_v58, 16 }
 0x156   : > { %644 = vrot.lane.b32.xlu1 %v4283_v7, %s4617_s9  ;;  %v782_v8 = vcombine.low %v773_v43, %v781_v27  ;;  %v5669_v7 = vrot.slane %v2890_v29, %v5022_v52 }
 0x157   : > { %1773 = vrot.lane.b32.xlu0 %v4309_v1, %s4615_s30  ;;  %v783_v1 = vcombine.high %v773_v43, %v781_v27  ;;  %v756_v27 = vpack.i.b16 %v5610_v58, %v5603_v5 }
 0x158   : > { %v5626_v53 = vpop.permute.xlu1 %736  ;;  %v5682_v15 = vrot.slane %v782_v8, %v5022_v52  ;;  %v2958_v8 = vcombine.low %v5505_v13, %v5508_v2 }
 0x159   : > { %v5631_v12 = vpop.permute.xlu0 %1126  ;;  %v763_v41 = vshrl.u32 %v5626_v53, 16 }
 0x15a   : > { %1733 = vrot.lane.b32.xlu1 %v4304_v31, %s4611_s20  ;;  %v4204_v31 = vcombine.low %v5669_v7, %v5669_v7  ;;  %6632 = vst [vmem:[#allocation17_spill] sm:$0xff] %v5682_v15  ;;  %v4288_v20 = vcombine.high %v5682_v15, %v5682_v15 }
 0x15b   : > { %1778 = vrot.lane.b32.xlu0 %v4159_v4, %s4612_s22  ;;  %v1140_v4 = vpack.i.b16 %v5631_v12, %v5618_v34 }
 0x15c   : > { %v5640_v38 = vpop.permute.xlu1 %740 }
 0x15d   : > { %v5645_v24 = vpop.permute.xlu0 %1130 }
 0x15e   : > { %1743 = vrot.lane.b32.xlu1 %v4152_v45, %s4612_s22  ;;  %v762_v45 = vpack.i.b16 %v5640_v38, %v5626_v53 }
 0x15f   : > { %1783 = vrot.lane.b32.xlu0 %v4160_v14, %s4616_s8 }
 0x160   : > { %v5653_v60 = vpop.permute.xlu1 %1124  ;;  %v849_v29 = vrot.slane %v762_v45, %v4937_v48 }
 0x161   : > { %v5656_v55 = vpop.permute.xlu0 %1134 }
 0x162   : > { %1728 = vrot.lane.b32.xlu1 %v4149_v6, %s4614_s7  ;;  %v1146_v57 = vpack.i.b16 %v5656_v55, %v5645_v24  ;;  %v797_v6 = vrot.slane %v783_v1, %v5022_v52 }
 0x163   : > { %1753 = vrot.lane.b32.xlu0 %v4306_v10, %s4613_s6  ;;  %v5705_v10 = vrot.slane %v1140_v4, %v4937_v48  ;;  %v746_v4 = vshrl.u32 %v5587_v32, 16 }
 0x164   : > { %v5664_v9 = vpop.permute.xlu1 %1128  ;;  %v5693_v33 = vrot.slane %v1146_v57, %v4937_v48 }
 0x165   : > { %v5666_v19 = vpop.permute.xlu0 %3184  ;;  %v1152_v62 = vpack.i.b16 %v5664_v9, %v5653_v60 }
 0x166   : > { %1738 = vrot.lane.b32.xlu1 %v4305_v44, %s4615_s30  ;;  %v4310_v44 = vcombine.high %v5621_v11, %v5621_v11  ;;  %v751_v11 = vshrl.u32 %v5595_v22, 16  ;;  %v4290_v22 = vcombine.high %v797_v6, %v797_v6 }
 0x167   : > { %1758 = vrot.lane.b32.xlu0 %v4307_v63, %s4617_s9  ;;  %v752_v63 = vshrl.u32 %v5605_v18, 16  ;;  %v1237_v45 = vrot.slane %v1152_v62, %v4937_v48  ;;  %v745_v18 = vshrl.u32 %v5569_v3, 16 }
 0x168   : > { %v5673_v54 = vpop.permute.xlu1 %1132 }
 0x169   : > { %v5677_v36 = vpop.permute.xlu0 %3188  ;;  %v747_v3 = vpack.i.b16 %v746_v4, %v745_v18 }
 0x16a   : > { %1748 = vrot.lane.b32.xlu1 %v4153_v56, %s4616_s8  ;;  %v1178_v56 = vcombine.low %v5705_v10, %v5693_v33 }
 0x16b   : > { %2979 = vrot.lane.b32.xlu0 %v4204_v31, %s4614_s7  ;;  %v4116_v31 = vcombine.low %v797_v6, %v797_v6 }
 0x16c   : > { %v5690_v46 = vpop.permute.xlu1 %1136  ;;  %v5740_v62 = vrot.slane %v1178_v56, %v5022_v52 }
 0x16d   : > { %v1158_v14 = vpack.i.b16 %v5690_v46, %v5673_v54  ;;  %v5697_v47 = vpop.permute.xlu0 %3192 }
 0x16e   : > { %1401 = vrot.lane.b32.xlu1 %v4438_v39, %s4618_s10  ;;  %v841_v39 = vrot.slane %v756_v27, %v4937_v48  ;;  %v5735_v27 = vrot.slane %v2958_v8, %v5022_v52  ;;  %6633 = vst [vmem:[#allocation18_spill] sm:$0xff] %v5740_v62  ;;  %v4296_v56 = vcombine.high %v5740_v62, %v5740_v62 }
 0x16f   : > { %910 = vrot.lane.b32.xlu0 %v4288_v20, %s4611_s20  ;;  %v1245_v1 = vrot.slane %v1158_v14, %v4937_v48  ;;  %v4311_v14 = vcombine.high %v5636_v40, %v5636_v40 }
 0x170   : > { %v5711_v43 = vpop.permute.xlu1 %3186  ;;  %v850_v20 = vcombine.low %v841_v39, %v849_v29  ;;  %v4211_v40 = vcombine.low %v5735_v27, %v5735_v27 }
 0x171   : > { %v5721_v57 = vpop.permute.xlu0 %3196  ;;  %v1247_v16 = vcombine.high %v1237_v45, %v1245_v1 }
 0x172   : > { %1788 = vrot.lane.b32.xlu1 %v4310_v44, %s4613_s6  ;;  %v753_v44 = vpack.i.b16 %v752_v63, %v751_v11  ;;  %v5749_v8 = vrot.slane %v850_v20, %v5022_v52 }
 0x173   : > { %920 = vrot.lane.b32.xlu0 %v4116_v31, %s4612_s22  ;;  %v851_v31 = vcombine.high %v841_v39, %v849_v29  ;;  %v1261_v4 = vrot.slane %v1247_v16, %v5022_v52  ;;  %v807_v29 = vrot.slane %v747_v3, %v4937_v48  ;;  %v764_v16 = vshrl.u32 %v5640_v38, 16 }
 0x174   : > { %v5730_v42 = vpop.permute.xlu1 %3190  ;;  %6634 = vst [vmem:[#allocation19_spill] sm:$0xff] %v5749_v8  ;;  %v815_v63 = vrot.slane %v753_v44, %v4937_v48  ;;  %v4292_v11 = vcombine.high %v5749_v8, %v5749_v8  ;;  %v1142_v38 = vshrl.u32 %v5631_v12, 16 }
 0x175   : > { %v5737_v32 = vpop.permute.xlu0 %3568  ;;  %v865_v18 = vrot.slane %v851_v31, %v5022_v52  ;;  %v4142_v44 = vcombine.low %v1261_v4, %v1261_v4  ;;  %v4302_v49 = vcombine.high %v1261_v4, %v1261_v4 }
 0x176   : > { %1793 = vrot.lane.b32.xlu1 %v4311_v14, %s4617_s9  ;;  %v816_v20 = vcombine.low %v807_v29, %v815_v63  ;;  %v817_v53 = vcombine.high %v807_v29, %v815_v63  ;;  %v1160_v29 = vshrl.u32 %v5690_v46, 16 }
 0x177   : > { %930 = vrot.lane.b32.xlu0 %v4290_v22, %s4613_s6  ;;  %v1246_v22 = vcombine.low %v1237_v45, %v1245_v1  ;;  %v1147_v1 = vshrl.u32 %v5645_v24, 16  ;;  %v1179_v45 = vcombine.high %v5705_v10, %v5693_v33 }
 0x178   : > { %v5744_v59 = vpop.permute.xlu1 %3194  ;;  %v824_v31 = vrot.slane %v816_v20, %v5022_v52  ;;  %v4294_v20 = vcombine.high %v865_v18, %v865_v18 }
 0x179   : > { %v5752_v6 = vpop.permute.xlu0 %3572  ;;  %v5788_v58 = vrot.slane %v1246_v22, %v5022_v52  ;;  %v1193_v63 = vrot.slane %v1179_v45, %v5022_v52 }
 0x17a   : > { %3014 = vrot.lane.b32.xlu1 %v4211_v40, %s4614_s7  ;;  %v4123_v40 = vcombine.low %v865_v18, %v865_v18  ;;  %v4113_v12 = vcombine.low %v824_v31, %v824_v31  ;;  %v4289_v18 = vcombine.high %v824_v31, %v824_v31  ;;  %v1153_v31 = vshrl.u32 %v5653_v60, 16 }
 0x17b   : > { %1306 = vrot.lane.b32.xlu0 %v4296_v56, %s4611_s20  ;;  %v1148_v56 = vshrl.u32 %v5656_v55, 16  ;;  %v765_v55 = vpack.i.b16 %v764_v16, %v763_v41  ;;  %6637 = vst [vmem:[#allocation22_spill] sm:$0xff] %v5788_v58  ;;  %v4300_v10 = vcombine.high %v5788_v58, %v5788_v58  ;;  %v831_v16 = vrot.slane %v817_v53, %v5022_v52 }
 0x17c   : > { %v5760_v39 = vpop.permute.xlu1 %3198 }
 0x17d   : > { %v5765_v14 = vpop.permute.xlu0 %3576 }
 0x17e   : > { %945 = vrot.lane.b32.xlu1 %v4292_v11, %s4611_s20  ;;  %v757_v11 = vshrl.u32 %v5603_v5, 16  ;;  %v1149_v5 = vpack.i.b16 %v1148_v56, %v1147_v1 }
 0x17f   : > { %1351 = vrot.lane.b32.xlu0 %v4142_v44, %s4612_s22  ;;  %v1141_v44 = vshrl.u32 %v5618_v34, 16 }
 0x180   : > { %v5770_v3 = vpop.permute.xlu1 %3570  ;;  %v759_v24 = vpack.i.b16 %v758_v17, %v757_v11  ;;  %v5802_v34 = vrot.slane %v1149_v5, %v4937_v48  ;;  %v1154_v11 = vshrl.u32 %v5664_v9, 16  ;;  %v4298_v5 = vcombine.high %v1193_v63, %v1193_v63 }
 0x181   : > { %6635 = vst [vmem:[#allocation20_spill] sm:$0xff] %v5770_v3  ;;  %v5773_v35 = vpop.permute.xlu0 %3580  ;;  %v1143_v41 = vpack.i.b16 %v1142_v38, %v1141_v44  ;;  %v1159_v38 = vshrl.u32 %v5673_v54, 16  ;;  %v4117_v44 = vcombine.low %v831_v16, %v831_v16 }
 0x182   : > { %955 = vrot.lane.b32.xlu1 %v4123_v40, %s4612_s22  ;;  %v875_v22 = vrot.slane %v759_v24, %v4937_v48  ;;  %v1155_v9 = vpack.i.b16 %v1154_v11, %v1153_v31 }
 0x183   : > { %1361 = vrot.lane.b32.xlu0 %v4302_v49, %s4613_s6  ;;  %v883_v49 = vrot.slane %v765_v55, %v4937_v48  ;;  %v5811_v56 = vrot.slane %v1143_v41, %v4937_v48  ;;  %v4135_v55 = vcombine.low %v1193_v63, %v1193_v63  ;;  %v4291_v41 = vcombine.high %v831_v16, %v831_v16 }
 0x184   : > { %v5785_v4 = vpop.permute.xlu1 %3574 }
 0x185   : > { %6636 = vst [vmem:[#allocation21_spill] sm:$0xff] %v5785_v4  ;;  %v5791_v40 = vpop.permute.xlu0 %1989  ;;  %v884_v1 = vcombine.low %v875_v22, %v883_v49  ;;  %v1212_v45 = vcombine.low %v5811_v56, %v5802_v34 }
 0x186   : > { %965 = vrot.lane.b32.xlu1 %v4294_v20, %s4613_s6  ;;  %v1161_v20 = vpack.i.b16 %v1160_v29, %v1159_v38  ;;  %v1271_v29 = vrot.slane %v1155_v9, %v4937_v48 }
 0x187   : > { %905 = vrot.lane.b32.xlu0 %v4113_v12, %s4614_s7  ;;  %v892_v12 = vrot.slane %v884_v1, %v5022_v52 }
 0x188   : > { %v5796_v33 = vpop.permute.xlu1 %3578  ;;  %v1279_v24 = vrot.slane %v1161_v20, %v4937_v48 }
 0x189   : > { %6638 = vst [vmem:[#allocation23_spill] sm:$0xff] %v5796_v33  ;;  %v5805_v17 = vpop.permute.xlu0 %1993  ;;  %v4120_v38 = vcombine.low %v892_v12, %v892_v12  ;;  %v4293_v31 = vcombine.high %v892_v12, %v892_v12 }
 0x18a   : > { %1341 = vrot.lane.b32.xlu1 %v4300_v10, %s4611_s20  ;;  %v1220_v10 = vrot.slane %v1212_v45, %v5022_v52  ;;  %v2007_v9 = vpack.i.b16 %v5805_v17, %v5791_v40  ;;  %v1280_v12 = vcombine.low %v1271_v29, %v1279_v24 }
 0x18b   : > { %915 = vrot.lane.b32.xlu0 %v4289_v18, %s4615_s30  ;;  %v885_v18 = vcombine.high %v875_v22, %v883_v49 }
 0x18c   : > { %v5816_v46 = vpop.permute.xlu1 %3582  ;;  %v4132_v1 = vcombine.low %v1220_v10, %v1220_v10  ;;  %v4297_v49 = vcombine.high %v1220_v10, %v1220_v10 }
 0x18d   : > { %6639 = vst [vmem:[#allocation24_spill] sm:$0xff] %v5816_v46  ;;  %v5821_v53 = vpop.permute.xlu0 %1997  ;;  %v899_v45 = vrot.slane %v885_v18, %v5022_v52 }
 0x18e   : > { %1316 = vrot.lane.b32.xlu1 %v4135_v55, %s4612_s22  ;;  %v1281_v55 = vcombine.high %v1271_v29, %v1279_v24 }
 0x18f   : > { %925 = vrot.lane.b32.xlu0 %v4117_v44, %s4616_s8  ;;  %v4124_v18 = vcombine.low %v899_v45, %v899_v45  ;;  %v4295_v29 = vcombine.high %v899_v45, %v899_v45 }
 0x190   : > { %v5825_v54 = vpop.permute.xlu1 %1991  ;;  %v1295_v22 = vrot.slane %v1281_v55, %v5022_v52  ;;  %v2036_v55 = vrot.slane %v2007_v9, %v4937_v48 }
 0x191   : > { %v5829_v60 = vpop.permute.xlu0 %2001 }
 0x192   : > { %1326 = vrot.lane.b32.xlu1 %v4298_v5, %s4613_s6  ;;  %v2013_v20 = vpack.i.b16 %v5829_v60, %v5821_v53  ;;  %v4143_v10 = vcombine.low %v1295_v22, %v1295_v22 }
 0x193   : > { %935 = vrot.lane.b32.xlu0 %v4291_v41, %s4617_s9 }
 0x194   : > { %v1996_v11 = vpop.permute.xlu1 %1995 }
 0x195   : > { %v5835_v63 = vpop.permute.xlu0 %2429  ;;  %v2019_v5 = vpack.i.b16 %v1996_v11, %v5825_v54 }
 0x196   : > { %940 = vrot.lane.b32.xlu1 %v4120_v38, %s4614_s7  ;;  %v5851_v38 = vrot.slane %v2013_v20, %v4937_v48  ;;  %v1288_v20 = vrot.slane %v1280_v12, %v5022_v52 }
 0x197   : > { %1301 = vrot.lane.b32.xlu0 %v4132_v1, %s4614_s7 }
 0x198   : > { %v2000_v16 = vpop.permute.xlu1 %1999  ;;  %v4139_v3 = vcombine.low %v1288_v20, %v1288_v20 }
 0x199   : > { %v5842_v44 = vpop.permute.xlu0 %2433  ;;  %v2026_v8 = vshrl.u32 %v2000_v16, 16 }
 0x19a   : > { %950 = vrot.lane.b32.xlu1 %v4293_v31, %s4615_s30  ;;  %v5858_v31 = vrot.slane %v2019_v5, %v4937_v48  ;;  %v4303_v5 = vcombine.high %v1295_v22, %v1295_v22  ;;  %v2447_v45 = vpack.i.b16 %v5842_v44, %v5835_v63  ;;  %v2020_v22 = vshrl.u32 %v5825_v54, 16 }
 0x19b   : > { %1311 = vrot.lane.b32.xlu0 %v4297_v49, %s4615_s30  ;;  %v2046_v49 = vcombine.high %v2036_v55, %v5851_v38  ;;  %v2015_v54 = vshrl.u32 %v5829_v60, 16  ;;  %v2045_v60 = vcombine.low %v2036_v55, %v5851_v38 }
 0x19c   : > { %v2004_v41 = vpop.permute.xlu1 %2003 }
 0x19d   : > { %v2025_v1 = vpack.i.b16 %v2004_v41, %v2000_v16  ;;  %v5853_v61 = vpop.permute.xlu0 %2437  ;;  %v2027_v62 = vshrl.u32 %v2004_v41, 16  ;;  %v1213_v41 = vcombine.high %v5811_v56, %v5802_v34  ;;  %v5896_v34 = vrot.slane %v2447_v45, %v4937_v48 }
 0x19e   : > { %960 = vrot.lane.b32.xlu1 %v4124_v18, %s4616_s8  ;;  %v2009_v45 = vshrl.u32 %v5805_v17, 16 }
 0x19f   : > { %v5861_v58 = vrot.slane %v2025_v1, %v4937_v48  ;;  %1356 = vrot.lane.b32.xlu0 %v4143_v10, %s4616_s8  ;;  %v2021_v10 = vshrl.u32 %v1996_v11, 16  ;;  %v2028_v4 = vpack.i.b16 %v2027_v62, %v2026_v8  ;;  %v4301_v62 = vcombine.high %v1288_v20, %v1288_v20 }
 0x1a0   : > { %v5864_v24 = vpop.permute.xlu1 %2431  ;;  %v1227_v8 = vrot.slane %v1213_v41, %v5022_v52 }
 0x1a1   : > { %v2113_v18 = vcombine.low %v5858_v31, %v5861_v58  ;;  %v5870_v9 = vpop.permute.xlu0 %2441 }
 0x1a2   : > { %v2453_v1 = vpack.i.b16 %v5870_v9, %v5853_v61  ;;  %970 = vrot.lane.b32.xlu1 %v4295_v29, %s4617_s9 }
 0x1a3   : > { %1366 = vrot.lane.b32.xlu0 %v4303_v5, %s4617_s9  ;;  %v5879_v12 = vrot.slane %v2113_v18, %v5022_v52  ;;  %v2060_v18 = vrot.slane %v2046_v49, %v5022_v52  ;;  %v2022_v5 = vpack.i.b16 %v2021_v10, %v2020_v22  ;;  %v2014_v22 = vshrl.u32 %v5821_v53, 16 }
 0x1a4   : > { %v5884_v15 = vpop.permute.xlu1 %2435  ;;  %v5887_v11 = vrot.slane %v2453_v1, %v4937_v48  ;;  %v5904_v1 = vrot.slane %v2028_v4, %v4937_v48  ;;  %v2008_v4 = vshrl.u32 %v5791_v40, 16  ;;  %v2114_v40 = vcombine.high %v5858_v31, %v5861_v58 }
 0x1a5   : > { %6640 = vst [vmem:[#allocation25_spill] sm:$0xff] %v5879_v12  ;;  %v5889_v16 = vpop.permute.xlu0 %619  ;;  %v4316_v29 = vcombine.high %v5879_v12, %v5879_v12  ;;  %v4169_v10 = vcombine.low %v2060_v18, %v2060_v18  ;;  %v5914_v20 = vrot.slane %v2022_v5, %v4937_v48  ;;  %v2016_v12 = vpack.i.b16 %v2015_v54, %v2014_v22 }
 0x1a6   : > { %1336 = vrot.lane.b32.xlu1 %v4139_v3, %s4614_s7  ;;  %v2485_v49 = vcombine.low %v5896_v34, %v5887_v11  ;;  %v4314_v17 = vcombine.high %v2060_v18, %v2060_v18  ;;  %v2010_v5 = vpack.i.b16 %v2009_v45, %v2008_v4  ;;  %v4299_v54 = vcombine.high %v1227_v8, %v1227_v8 }
 0x1a7   : > { %2208 = vrot.lane.b32.xlu0 %v4316_v29, %s4611_s20  ;;  %v4136_v29 = vcombine.low %v1227_v8, %v1227_v8  ;;  %v2078_v18 = vrot.slane %v2016_v12, %v4937_v48  ;;  %v2459_v58 = vpack.i.b16 %v5884_v15, %v5864_v24  ;;  %v2449_v8 = vshrl.u32 %v5842_v44, 16 }
 0x1a8   : > { %v5899_v56 = vpop.permute.xlu1 %2439  ;;  %v5926_v53 = vrot.slane %v2485_v49, %v5022_v52  ;;  %v2455_v49 = vshrl.u32 %v5870_v9, 16  ;;  %v2070_v31 = vrot.slane %v2010_v5, %v4937_v48 }
 0x1a9   : > { %v5908_v3 = vpop.permute.xlu0 %629  ;;  %v5957_v44 = vrot.slane %v2459_v58, %v4937_v48 }
 0x1aa   : > { %1346 = vrot.lane.b32.xlu1 %v4301_v62, %s4615_s30  ;;  %v2147_v62 = vcombine.low %v5914_v20, %v5904_v1  ;;  %6641 = vst [vmem:[#allocation26_spill] sm:$0xff] %v5926_v53  ;;  %v4320_v45 = vcombine.high %v5926_v53, %v5926_v53  ;;  %v2079_v58 = vcombine.low %v2070_v31, %v2078_v18 }
 0x1ab   : > { %2183 = vrot.lane.b32.xlu0 %v4169_v10, %s4612_s22  ;;  %v5935_v10 = vrot.slane %v2045_v60, %v5022_v52  ;;  %v2454_v60 = vshrl.u32 %v5853_v61, 16 }
 0x1ac   : > { %v5919_v41 = vpop.permute.xlu1 %2443  ;;  %v2155_v4 = vrot.slane %v2147_v62, %v5022_v52  ;;  %v2128_v62 = vrot.slane %v2114_v40, %v5022_v52 }
 0x1ad   : > { %v5923_v33 = vpop.permute.xlu0 %639  ;;  %v2465_v38 = vpack.i.b16 %v5919_v41, %v5899_v56  ;;  %6642 = vst [vmem:[#allocation27_spill] sm:$0xff] %v5935_v10  ;;  %v2456_v53 = vpack.i.b16 %v2455_v49, %v2454_v60 }
 0x1ae   : > { %1321 = vrot.lane.b32.xlu1 %v4136_v29, %s4616_s8  ;;  %v4312_v29 = vcombine.high %v5935_v10, %v5935_v10  ;;  %v4173_v46 = vcombine.low %v2155_v4, %v2155_v4  ;;  %v4176_v10 = vcombine.low %v2128_v62, %v2128_v62  ;;  %v4317_v49 = vcombine.high %v2155_v4, %v2155_v4 }
 0x1af   : > { %2193 = vrot.lane.b32.xlu0 %v4314_v17, %s4613_s6  ;;  %v5950_v9 = vrot.slane %v2465_v38, %v4937_v48  ;;  %v2080_v17 = vcombine.high %v2070_v31, %v2078_v18  ;;  %v5964_v40 = vrot.slane %v2456_v53, %v4937_v48 }
 0x1b0   : > { %v655_v55 = vpop.permute.xlu1 %654 }
 0x1b1   : > { %v615_v22 = vpop.permute.xlu0 %614  ;;  %v2553_v38 = vcombine.low %v5957_v44, %v5950_v9  ;;  %v2094_v60 = vrot.slane %v2080_v17, %v5022_v52  ;;  %v2467_v17 = vshrl.u32 %v5919_v41, 16  ;;  %v2461_v41 = vshrl.u32 %v5884_v15, 16 }
 0x1b2   : > { %1331 = vrot.lane.b32.xlu1 %v4299_v54, %s4617_s9  ;;  %v2448_v54 = vshrl.u32 %v5835_v63, 16  ;;  %v684_v4 = vsel %vm681_vm5, %v5043_v21, %v615_v22 }
 0x1b3   : > { %2613 = vrot.lane.b32.xlu0 %v4320_v45, %s4611_s20  ;;  %v4170_v31 = vcombine.low %v2094_v60, %v2094_v60 }
 0x1b4   : > { %v665_v12 = vpop.permute.xlu1 %664  ;;  %v2450_v61 = vpack.i.b16 %v2449_v8, %v2448_v54  ;;  %v5973_v54 = vrot.slane %v2553_v38, %v5022_v52 }
 0x1b5   : > { %v625_v5 = vpop.permute.xlu0 %624 }
 0x1b6   : > { %2173 = vrot.lane.b32.xlu1 %v4312_v29, %s4611_s20  ;;  %v5969_v8 = vrot.slane %v2450_v61, %v4937_v48  ;;  %v4318_v29 = vcombine.high %v2128_v62, %v2128_v62  ;;  %v2087_v62 = vrot.slane %v2079_v58, %v5022_v52  ;;  %v687_v61 = vsel %vm685_vm6, %v684_v4, %v5889_v16 }
 0x1b7   : > { %2203 = vrot.lane.b32.xlu0 %v4173_v46, %s4614_s7  ;;  %v690_v38 = vsel %vm688_vm7, %v687_v61, %v625_v5  ;;  %v2460_v16 = vshrl.u32 %v5864_v24, 16  ;;  %v2148_v5 = vcombine.high %v5914_v20, %v5904_v1 }
 0x1b8   : > { %v675_v45 = vpop.permute.xlu1 %674  ;;  %v2519_v53 = vcombine.low %v5969_v8, %v5964_v40 }
 0x1b9   : > { %v635_v63 = vpop.permute.xlu0 %634 }
 0x1ba   : > { %2218 = vrot.lane.b32.xlu1 %v4176_v10, %s4612_s22  ;;  %v2527_v58 = vrot.slane %v2519_v53, %v5022_v52  ;;  %v693_v53 = vsel %vm691_vm8, %v690_v38, %v5908_v3 }
 0x1bb   : > { %2213 = vrot.lane.b32.xlu0 %v4317_v49, %s4615_s30  ;;  %v696_v4 = vsel %vm694_vm9, %v693_v53, %v635_v63  ;;  %v4313_v63 = vcombine.high %v2087_v62, %v2087_v62 }
 0x1bc   : > { %v650_v46 = vpop.permute.xlu1 %649  ;;  %v4183_v61 = vcombine.low %v2527_v58, %v2527_v58 }
 0x1bd   : > { %v705_v10 = vsel %vm681_vm5, %v5322_v51, %v650_v46  ;;  %v680_v18 = vpop.permute.xlu0 %679  ;;  %v4324_v51 = vcombine.high %v5973_v54, %v5973_v54 }
 0x1be   : > { %2228 = vrot.lane.b32.xlu1 %v4318_v29, %s4613_s6  ;;  %v707_v21 = vsel %vm685_vm6, %v705_v10, %v655_v55  ;;  %v4315_v29 = vcombine.high %v2094_v60, %v2094_v60  ;;  %v4166_v55 = vcombine.low %v2087_v62, %v2087_v62 }
 0x1bf   : > { %2188 = vrot.lane.b32.xlu0 %v4170_v31, %s4616_s8  ;;  %v2466_v31 = vshrl.u32 %v5899_v56, 16 }
 0x1c0   : > { %v660_v22 = vpop.permute.xlu1 %659 }
 0x1c1   : > { %v709_v49 = vsel %vm688_vm7, %v707_v21, %v660_v22  ;;  %v5992_v46 = vpop.permute.xlu0 %1768  ;;  %v2468_v60 = vpack.i.b16 %v2467_v17, %v2466_v31  ;;  %v2462_v21 = vpack.i.b16 %v2461_v41, %v2460_v16  ;;  %v699_v17 = vsel %vm697_vm10, %v696_v4, %v5923_v33  ;;  %v4439_v33 = vld [vmem:[#allocation6] ss:$0 sps:$4 sm:$0xff]  }
 0x1c2   : > { %2648 = vrot.lane.b32.xlu1 %v4324_v51, %s4611_s20  ;;  %v711_v15 = vsel %vm691_vm8, %v709_v49, %v665_v12  ;;  %v2162_v22 = vrot.slane %v2148_v5, %v5022_v52  ;;  %v2554_v51 = vcombine.high %v5957_v44, %v5950_v9  ;;  %v6643_v16 = vmov 0  }
 0x1c3   : > { %2198 = vrot.lane.b32.xlu0 %v4315_v29, %s4617_s9  ;;  %v2586_v20 = vrot.slane %v2468_v60, %v4937_v48  ;;  %v6644_v4 = vcombine.low %v5497_v23, %v5500_v26 }
 0x1c4   : > { %v670_v56 = vpop.permute.xlu1 %669  ;;  %v4177_v31 = vcombine.low %v2162_v22, %v2162_v22  ;;  %v6030_v44 = vrot.slane %v2554_v51, %v5022_v52  ;;  %v4319_v5 = vcombine.high %v2162_v22, %v2162_v22 }
 0x1c5   : > { %v713_v10 = vsel %vm694_vm9, %v711_v15, %v670_v56  ;;  %v6007_v24 = vpop.permute.xlu0 %1763 }
 0x1c6   : > { %2168 = vrot.lane.b32.xlu1 %v4166_v55, %s4614_s7  ;;  %v715_v1 = vsel %vm697_vm10, %v713_v10, %v675_v45  ;;  %v4321_v45 = vcombine.high %v2527_v58, %v2527_v58  ;;  %v4445_v58 = vld [vmem:[#allocation6] sm:$0xf]  ;;  %v4193_v56 = vcombine.low %v6030_v44, %v6030_v44  ;;  %v6042_v10 = vrot.slane %v6644_v4, %v5022_v52 }
 0x1c7   : > { %2608 = vrot.lane.b32.xlu0 %v4183_v61, %s4614_s7  ;;  %v717_v3 = vsel %vm700_vm11, %v715_v1, %v680_v18  ;;  %v2578_v18 = vrot.slane %v2462_v21, %v4937_v48  ;;  %v2486_v61 = vcombine.high %v5896_v34, %v5887_v11 }
 0x1c8   : > { %v645_v12 = vpop.permute.xlu1 %644  ;;  %4130 = vmatprep.subr.msk.bf16.mxu1 %vm1011_vm12, %v717_v3 }
 0x1c9   : > { %v6020_v38 = vpop.permute.xlu0 %1773  ;;  %v702_v49 = vsel %vm700_vm11, %v699_v17, %v645_v12  ;;  %v2587_v62 = vcombine.low %v2578_v18, %v2586_v20  ;;  %v2588_v53 = vcombine.high %v2578_v18, %v2586_v20  ;;  %v4332_v20 = vcombine.high %v6042_v10, %v6042_v10 }
 0x1ca   : > { %2178 = vrot.lane.b32.xlu1 %v4313_v63, %s4615_s30  ;;  %v1060_v29 = vsel %vm1011_vm12, %v702_v49, 0  ;;  %v2500_v22 = vrot.slane %v2486_v61, %v5022_v52 }
 0x1cb   : > { %2618 = vrot.lane.b32.xlu0 %v4321_v45, %s4615_s30  ;;  %1079 = vmatpush1.bf16.msra.mxu1 %v1060_v29  ;;  %v2595_v60 = vrot.slane %v2587_v62, %v5022_v52  ;;  %v6051_v12 = vrot.slane %v2588_v53, %v5022_v52  ;;  %v2520_v45 = vcombine.high %v5969_v8, %v5964_v40 }
 0x1cc   : > { %v1734_v41 = vpop.permute.xlu1 %1733  ;;  %v6645_v29 = vcombine.low %v5511_v28, %v5514_v37 }
 0x1cd   : > { %v6027_v9 = vpop.permute.xlu0 %1778  ;;  %v4190_v1 = vcombine.low %v2595_v60, %v2595_v60  ;;  %v4325_v17 = vcombine.high %v2595_v60, %v2595_v60  ;;  %v4194_v51 = vcombine.low %v6051_v12, %v6051_v12  ;;  %v1812_v60 = vsel %vm681_vm5, %v5590_v50, %v6007_v24 }
 0x1ce   : > { %2223 = vrot.lane.b32.xlu1 %v4177_v31, %s4616_s8  ;;  %4131 = vmatmul.mubr.msk.bf16.vlgmr.msra.gmra.mxu1 %vm1007_vm13, %v4445_v58  ;;  %v4333_v58 = vcombine.high %v5735_v27, %v5735_v27  ;;  %v1814_v61 = vsel %vm685_vm6, %v1812_v60, %v5992_v46  ;;  %v3209_v46 = vshrl.u32 %v5697_v47, 16 }
 0x1cf   : > { %1828 = vrot.lane.b32.xlu0 %v4439_v33, %s4619_s17  ;;  %1869 = vmatprep.mubr.bf16.mxu1 %v6643_v16  ;;  %v6069_v33 = vrot.slane %v6645_v29, %v5022_v52 }
 0x1d0   : > { %v1744_v55 = vpop.permute.xlu1 %1743 }
 0x1d1   : > { %v1784_v15 = vpop.permute.xlu0 %1783 }
 0x1d2   : > { %2233 = vrot.lane.b32.xlu1 %v4319_v5, %s4617_s9  ;;  %v2534_v5 = vrot.slane %v2520_v45, %v5022_v52 }
 0x1d3   : > { %2658 = vrot.lane.b32.xlu0 %v4193_v56, %s4612_s22  ;;  %v4322_v56 = vcombine.high %v2500_v22, %v2500_v22 }
 0x1d4   : > { %v1729_v21 = vpop.permute.xlu1 %1728  ;;  %v4187_v24 = vcombine.low %v2534_v5, %v2534_v5 }
 0x1d5   : > { %v1754_v3 = vpop.permute.xlu0 %1753  ;;  %v1797_v11 = vsel %vm681_vm5, %v5615_v30, %v1729_v21  ;;  %v4186_v30 = vcombine.low %v2500_v22, %v2500_v22 }
 0x1d6   : > { %2643 = vrot.lane.b32.xlu1 %v4190_v1, %s4614_s7  ;;  %v1799_v49 = vsel %vm685_vm6, %v1797_v11, %v1734_v41  ;;  %v4328_v41 = vcombine.high %v6069_v33, %v6069_v33  ;;  %v3210_v1 = vshrl.u32 %v5721_v57, 16 }
 0x1d7   : > { %3019 = vrot.lane.b32.xlu0 %v4332_v20, %s4611_s20  ;;  %v1816_v20 = vsel %vm688_vm7, %v1814_v61, %v6020_v38 }
 0x1d8   : > { %v1739_v63 = vpop.permute.xlu1 %1738 }
 0x1d9   : > { %v1759_v34 = vpop.permute.xlu0 %1758  ;;  %v1801_v62 = vsel %vm688_vm7, %v1799_v49, %v1739_v63  ;;  %v3203_v49 = vshrl.u32 %v5666_v19, 16 }
 0x1da   : > { %2653 = vrot.lane.b32.xlu1 %v4325_v17, %s4615_s30  ;;  %v1803_v40 = vsel %vm691_vm8, %v1801_v62, %v1744_v55  ;;  %v6646_v55 = vcombine.high %v5511_v28, %v5514_v37  ;;  %v1818_v37 = vsel %vm691_vm8, %v1816_v20, %v6027_v9  ;;  %v3204_v17 = vshrl.u32 %v5677_v36, 16 }
 0x1db   : > { %2663 = vrot.lane.b32.xlu0 %v4194_v51, %s4616_s8  ;;  %v4329_v51 = vcombine.high %v5669_v7, %v5669_v7  ;;  %v6647_v9 = vcombine.high %v5480_v0, %v5473_v25  ;;  %v4440_v7 = vld [vmem:[#allocation6] ss:$0 sps:$4 sm:$0xff]   ;;  %v3208_v0 = vpack.i.b16 %v5721_v57, %v5697_v47  ;;  %v4326_v47 = vcombine.high %v6030_v44, %v6030_v44 }
 0x1dc   : > { %v1749_v18 = vpop.permute.xlu1 %1748  ;;  %v2871_v4 = vrot.slane %v6646_v55, %v5022_v52  ;;  %v3205_v62 = vpack.i.b16 %v3204_v17, %v3203_v49  ;;  %v6648_v57 = vcombine.high %v5497_v23, %v5500_v26  ;;  %v3593_v23 = vshrl.u32 %v5765_v14, 16 }
 0x1dd   : > { %v6072_v31 = vpop.permute.xlu0 %2979  ;;  %v1805_v53 = vsel %vm694_vm9, %v1803_v40, %v1749_v18  ;;  %v2905_v45 = vrot.slane %v6647_v9, %v5022_v52  ;;  %v3211_v18 = vpack.i.b16 %v3210_v1, %v3209_v46  ;;  %v6152_v55 = vrot.slane %v3208_v0, %v4937_v48 }
 0x1de   : > { %2623 = vrot.lane.b32.xlu1 %v4186_v30, %s4612_s22  ;;  %v1807_v21 = vsel %vm697_vm10, %v1805_v53, %v1754_v3  ;;  %v4207_v28 = vcombine.low %v2871_v4, %v2871_v4  ;;  %v1820_v3 = vsel %vm694_vm9, %v1818_v37, %v1784_v15  ;;  %v4323_v30 = vcombine.high %v2534_v5, %v2534_v5 }
 0x1df   : > { %3024 = vrot.lane.b32.xlu0 %v4333_v58, %s4615_s30  ;;  %v1809_v22 = vsel %vm700_vm11, %v1807_v21, %v1759_v34  ;;  %v6132_v58 = vrot.slane %v3211_v18, %v4937_v48  ;;  %v3202_v5 = vpack.i.b16 %v5677_v36, %v5666_v19  ;;  %v6140_v60 = vrot.slane %v3205_v62, %v4937_v48 }
 0x1e0   : > { %v6079_v8 = vpop.permute.xlu1 %1401  ;;  %v1833_v34 = vsel %vm1011_vm12, %v1809_v22, 0  ;;  %v3594_v36 = vshrl.u32 %v5773_v35, 16  ;;  %v4330_v21 = vcombine.high %v2871_v4, %v2871_v4  ;;  %v3222_v26 = vshrl.u32 %v5760_v39, 16 }
 0x1e1   : > { %v6088_v27 = vpop.permute.xlu0 %910  ;;  %v3274_v19 = vcombine.low %v6140_v60, %v6132_v58  ;;  %v6161_v44 = vrot.slane %v3202_v5, %v4937_v48  ;;  %v4331_v20 = vcombine.high %v2905_v45, %v2905_v45  ;;  %v3221_v22 = vshrl.u32 %v5744_v59, 16 }
 0x1e2   : > { %2984 = vrot.lane.b32.xlu1 %v4328_v41, %s4611_s20  ;;  %v4208_v41 = vcombine.low %v2905_v45, %v2905_v45  ;;  %v3595_v37 = vpack.i.b16 %v3594_v36, %v3593_v23  ;;  %v4327_v45 = vcombine.high %v6051_v12, %v6051_v12  ;;  %v6649_v49 = vcombine.high %v5505_v13, %v5508_v2 }
 0x1e3   : > { %2633 = vrot.lane.b32.xlu0 %v4322_v56, %s4613_s6  ;;  %v2939_v56 = vrot.slane %v6648_v57, %v5022_v52  ;;  %v3240_v4 = vcombine.low %v6161_v44, %v6152_v55  ;;  %v3282_v46 = vrot.slane %v3274_v19, %v5022_v52  ;;  %v3220_v13 = vpack.i.b16 %v5760_v39, %v5744_v59 }
 0x1e4   : > { %v1789_v50 = vpop.permute.xlu1 %1788  ;;  %v2973_v18 = vrot.slane %v6649_v49, %v5022_v52  ;;  %v3214_v19 = vpack.i.b16 %v5730_v42, %v5711_v43 }
 0x1e5   : > { %v6102_v63 = vpop.permute.xlu0 %920  ;;  %v1822_v38 = vsel %vm697_vm10, %v1820_v3, %v1789_v50  ;;  %v3588_v50 = vshrl.u32 %v5752_v6, 16  ;;  %v4214_v1 = vcombine.low %v2939_v56, %v2939_v56  ;;  %v3216_v3 = vshrl.u32 %v5730_v42, 16 }
 0x1e6   : > { %2628 = vrot.lane.b32.xlu1 %v4187_v24, %s4616_s8  ;;  %v3307_v59 = vrot.slane %v3220_v13, %v4937_v48 }
 0x1e7   : > { %2994 = vrot.lane.b32.xlu0 %v4207_v28, %s4612_s22  ;;  %v3587_v28 = vshrl.u32 %v5737_v32, 16 }
 0x1e8   : > { %v1794_v11 = vpop.permute.xlu1 %1793 }
 0x1e9   : > { %v1824_v15 = vsel %vm700_vm11, %v1822_v38, %v1794_v11  ;;  %v6121_v29 = vpop.permute.xlu0 %930  ;;  %v3589_v38 = vpack.i.b16 %v3588_v50, %v3587_v28  ;;  %v3215_v11 = vshrl.u32 %v5711_v43, 16  ;;  %v3299_v28 = vrot.slane %v3214_v19, %v4937_v48  ;;  %v6654_v19 = vld [vmem:[#allocation17_spill] sm:$0xff] }
 0x1ea   : > { %2989 = vrot.lane.b32.xlu1 %v4329_v51, %s4615_s30  ;;  %4164 = vmatprep.subr.msk.bf16.mxu1 %vm1011_vm12, %v1824_v15  ;;  %v3223_v51 = vpack.i.b16 %v3222_v26, %v3221_v22  ;;  %v6189_v15 = vrot.slane %v3595_v37, %v4937_v48  ;;  %v4334_v26 = vcombine.high %v2939_v56, %v2939_v56  ;;  %v6652_v37 = vld [vmem:[#allocation21_spill] sm:$0xff] }
 0x1eb   : > { %2638 = vrot.lane.b32.xlu0 %v4323_v30, %s4617_s9  ;;  %1852 = vmatpush1.bf16.msra.mxu1 %v1833_v34  ;;  %v4225_v34 = vcombine.low %v3282_v46, %v3282_v46  ;;  %v3217_v62 = vpack.i.b16 %v3216_v3, %v3215_v11  ;;  %v6196_v0 = vrot.slane %v3589_v38, %v4937_v48  ;;  %v3600_v3 = vshrl.u32 %v6652_v37, 16  ;;  %v6653_v38 = vld [vmem:[#allocation20_spill] sm:$0xff] }
 0x1ec   : > { %v6127_v25 = vpop.permute.xlu1 %3014  ;;  %v6202_v2 = vrot.slane %v3223_v51, %v4937_v48  ;;  %v3598_v11 = vpack.i.b16 %v6652_v37, %v6653_v38  ;;  %v4335_v56 = vcombine.high %v2973_v18, %v2973_v18  ;;  %v3308_v51 = vcombine.low %v3299_v28, %v3307_v59 }
 0x1ed   : > { %v6134_v40 = vpop.permute.xlu0 %1306  ;;  %v3658_v5 = vcombine.low %v6196_v0, %v6189_v15  ;;  %v6213_v36 = vrot.slane %v3217_v62, %v4937_v48  ;;  %v3309_v62 = vcombine.high %v3299_v28, %v3307_v59 }
 0x1ee   : > { %2268 = vrot.lane.b32.xlu1 %v4440_v7, %s4617_s9  ;;  %v6192_v7 = vrot.slane %v3240_v4, %v5022_v52 }
 0x1ef   : > { %2999 = vrot.lane.b32.xlu0 %v4208_v41, %s4616_s8  ;;  %v4215_v41 = vcombine.low %v2973_v18, %v2973_v18  ;;  %v3342_v39 = vcombine.low %v6213_v36, %v6202_v2  ;;  %v6226_v4 = vrot.slane %v3658_v5, %v5022_v52  ;;  %v6246_v18 = vrot.slane %v3598_v11, %v4937_v48 }
 0x1f0   : > { %v6143_v53 = vpop.permute.xlu1 %945  ;;  %v4336_v57 = vcombine.high %v6192_v7, %v6192_v7  ;;  %v3592_v11 = vpack.i.b16 %v5773_v35, %v5765_v14  ;;  %v3586_v14 = vpack.i.b16 %v5752_v6, %v5737_v32 }
 0x1f1   : > { %v6157_v61 = vpop.permute.xlu0 %1351  ;;  %v4246_v5 = vcombine.low %v6226_v4, %v6226_v4 }
 0x1f2   : > { %2668 = vrot.lane.b32.xlu1 %v4326_v47, %s4613_s6 }
 0x1f3   : > { %3004 = vrot.lane.b32.xlu0 %v4330_v21, %s4613_s6  ;;  %v6650_v21 = vld [vmem:[#allocation24_spill] sm:$0xff] }
 0x1f4   : > { %v6167_v24 = vpop.permute.xlu1 %955  ;;  %v3606_v50 = vshrl.u32 %v6650_v21, 16 }
 0x1f5   : > { %v6172_v17 = vpop.permute.xlu0 %1361 }
 0x1f6   : > { %3029 = vrot.lane.b32.xlu1 %v4214_v1, %s4612_s22  ;;  %v6651_v1 = vld [vmem:[#allocation23_spill] sm:$0xff] }
 0x1f7   : > { %3009 = vrot.lane.b32.xlu0 %v4331_v20, %s4617_s9  ;;  %v3604_v42 = vpack.i.b16 %v6650_v21, %v6651_v1  ;;  %v4337_v20 = vcombine.high %v3282_v46, %v3282_v46  ;;  %v3605_v22 = vshrl.u32 %v6651_v1, 16  ;;  %v3599_v46 = vshrl.u32 %v6653_v38, 16 }
 0x1f8   : > { %v6180_v9 = vpop.permute.xlu1 %965  ;;  %v6255_v1 = vrot.slane %v3308_v51, %v5022_v52 }
 0x1f9   : > { %v906_v30 = vpop.permute.xlu0 %905  ;;  %v6240_v13 = vrot.slane %v3604_v42, %v4937_v48 }
 0x1fa   : > { %2673 = vrot.lane.b32.xlu1 %v4327_v45, %s4617_s9  ;;  %v3607_v45 = vpack.i.b16 %v3606_v50, %v3605_v22  ;;  %v974_v21 = vsel %vm681_vm5, %v6654_v19, %v906_v30  ;;  %v6262_v30 = vrot.slane %v3309_v62, %v5022_v52 }
 0x1fb   : > { %3363 = vrot.lane.b32.xlu0 %v4225_v34, %s4614_s7  ;;  %v3350_v34 = vrot.slane %v3342_v39, %v5022_v52  ;;  %v4441_v39 = vld [vmem:[#allocation6] ss:$0 sps:$4 sm:$0xff]   ;;  %v3692_v42 = vcombine.low %v6246_v18, %v6240_v13  ;;  %v976_v22 = vsel %vm685_vm6, %v974_v21, %v6088_v27  ;;  %v3343_v27 = vcombine.high %v6213_v36, %v6202_v2 }
 0x1fc   : > { %v6204_v12 = vpop.permute.xlu1 %1341  ;;  %v6252_v59 = vrot.slane %v3607_v45, %v4937_v48  ;;  %v4340_v45 = vcombine.high %v6255_v1, %v6255_v1  ;;  %v3241_v2 = vcombine.high %v6161_v44, %v6152_v55  ;;  %v3615_v44 = vrot.slane %v3586_v14, %v4937_v48 }
 0x1fd   : > { %v916_v47 = vpop.permute.xlu0 %915  ;;  %v6285_v35 = vrot.slane %v3692_v42, %v5022_v52  ;;  %v6304_v55 = vrot.slane %v3343_v27, %v5022_v52  ;;  %v6657_v27 = vld [vmem:[#allocation22_spill] sm:$0xff] }
 0x1fe   : > { %3034 = vrot.lane.b32.xlu1 %v4215_v41, %s4616_s8  ;;  %v978_v38 = vsel %vm688_vm7, %v976_v22, %v916_v47 }
 0x1ff   : > { %3368 = vrot.lane.b32.xlu0 %v4336_v57, %s4611_s20  ;;  %v3601_v57 = vpack.i.b16 %v3600_v3, %v3599_v46 }
 0x200   : > { %v6221_v23 = vpop.permute.xlu1 %1316 }
 0x201   : > { %v926_v43 = vpop.permute.xlu0 %925  ;;  %v6265_v3 = vrot.slane %v3601_v57, %v4937_v48  ;;  %v3623_v57 = vrot.slane %v3592_v11, %v4937_v48 }
 0x202   : > { %3039 = vrot.lane.b32.xlu1 %v4334_v26, %s4613_s6  ;;  %v4232_v26 = vcombine.low %v3350_v34, %v3350_v34 }
 0x203   : > { %3373 = vrot.lane.b32.xlu0 %v4337_v20, %s4615_s30  ;;  %v6655_v20 = vld [vmem:[#allocation19_spill] sm:$0xff] }
 0x204   : > { %v6236_v49 = vpop.permute.xlu1 %1326 }
 0x205   : > { %v936_v41 = vpop.permute.xlu0 %935 }
 0x206   : > { %3044 = vrot.lane.b32.xlu1 %v4335_v56, %s4617_s9  ;;  %v3726_v56 = vcombine.low %v6265_v3, %v6252_v59 }
 0x207   : > { %3747 = vrot.lane.b32.xlu0 %v4246_v5, %s4614_s7  ;;  %v4235_v5 = vcombine.low %v6262_v30, %v6262_v30 }
 0x208   : > { %v941_v50 = vpop.permute.xlu1 %940  ;;  %v3734_v32 = vrot.slane %v3726_v56, %v5022_v52 }
 0x209   : > { %v989_v28 = vsel %vm681_vm5, %v6655_v20, %v941_v50  ;;  %v1302_v37 = vpop.permute.xlu0 %1301  ;;  %v4348_v50 = vcombine.high %v6285_v35, %v6285_v35 }
 0x20a   : > { %3398 = vrot.lane.b32.xlu1 %v4232_v26, %s4614_s7  ;;  %v991_v51 = vsel %vm685_vm6, %v989_v28, %v6143_v53  ;;  %v980_v53 = vsel %vm691_vm8, %v978_v38, %v6102_v63  ;;  %v4253_v42 = vcombine.low %v3734_v32, %v3734_v32  ;;  %v3255_v28 = vrot.slane %v3241_v2, %v5022_v52 }
 0x20b   : > { %2708 = vrot.lane.b32.xlu0 %v4441_v39, %s4620_s19  ;;  %v982_v36 = vsel %vm694_vm9, %v980_v53, %v926_v43  ;;  %v4341_v39 = vcombine.high %v3350_v34, %v3350_v34  ;;  %v3624_v34 = vcombine.low %v3615_v44, %v3623_v57  ;;  %v4236_v38 = vcombine.low %v6304_v55, %v6304_v55  ;;  %v6658_v53 = vld [vmem:[#allocation16_spill] sm:$0xff] }
 0x20c   : > { %v951_v46 = vpop.permute.xlu1 %950  ;;  %v4228_v11 = vcombine.low %v3255_v28, %v3255_v28  ;;  %v4349_v14 = vcombine.high %v3734_v32, %v3734_v32 }
 0x20d   : > { %v993_v47 = vsel %vm688_vm7, %v991_v51, %v951_v46  ;;  %v1312_v62 = vpop.permute.xlu0 %1311  ;;  %v6325_v56 = vrot.slane %v3624_v34, %v5022_v52  ;;  %v3625_v51 = vcombine.high %v3615_v44, %v3623_v57  ;;  %v6656_v46 = vld [vmem:[#allocation18_spill] sm:$0xff] }
 0x20e   : > { %3403 = vrot.lane.b32.xlu1 %v4340_v45, %s4611_s20  ;;  %v995_v19 = vsel %vm691_vm8, %v993_v47, %v6167_v24  ;;  %v984_v24 = vsel %vm697_vm10, %v982_v36, %v6121_v29  ;;  %v1370_v45 = vsel %vm681_vm5, %v6656_v46, %v1302_v37 }
 0x20f   : > { %3413 = vrot.lane.b32.xlu0 %v4235_v5, %s4612_s22  ;;  %v986_v43 = vsel %vm700_vm11, %v984_v24, %v936_v41  ;;  %v4344_v2 = vcombine.high %v6325_v56, %v6325_v56  ;;  %v3639_v32 = vrot.slane %v3625_v51, %v5022_v52  ;;  %v3659_v24 = vcombine.high %v6196_v0, %v6189_v15 }
 0x210   : > { %v961_v21 = vpop.permute.xlu1 %960  ;;  %v1012_v29 = vsel %vm1011_vm12, %v986_v43, 0  ;;  %v4345_v15 = vcombine.high %v6226_v4, %v6226_v4 }
 0x211   : > { %v997_v6 = vsel %vm694_vm9, %v995_v19, %v961_v21  ;;  %v1357_v63 = vpop.permute.xlu0 %1356 }
 0x212   : > { %3408 = vrot.lane.b32.xlu1 %v4341_v39, %s4615_s30  ;;  %v999_v20 = vsel %vm697_vm10, %v997_v6, %v6180_v9  ;;  %v3275_v9 = vcombine.high %v6140_v60, %v6132_v58  ;;  %v1372_v58 = vsel %vm685_vm6, %v1370_v45, %v6134_v40  ;;  %v4338_v39 = vcombine.high %v3255_v28, %v3255_v28 }
 0x213   : > { %3787 = vrot.lane.b32.xlu0 %v4348_v50, %s4611_s20  ;;  %v1374_v57 = vsel %vm688_vm7, %v1372_v58, %v1312_v62  ;;  %v6659_v58 = vld [vmem:[#allocation25_spill] sm:$0xff] }
 0x214   : > { %v971_v26 = vpop.permute.xlu1 %970  ;;  %v3289_v36 = vrot.slane %v3275_v9, %v5022_v52  ;;  %v1376_v62 = vsel %vm691_vm8, %v1374_v57, %v6221_v23  ;;  %v4342_v9 = vcombine.high %v6262_v30, %v6262_v30  ;;  %v4443_v30 = vld [vmem:[#allocation6] ss:$0 sps:$4 sm:$0xff]  }
 0x215   : > { %v1367_v22 = vpop.permute.xlu0 %1366  ;;  %v1001_v48 = vsel %vm700_vm11, %v999_v20, %v971_v26  ;;  %v3673_v20 = vrot.slane %v3659_v24, %v5022_v52 }
 0x216   : > { %3782 = vrot.lane.b32.xlu1 %v4253_v42, %s4614_s7  ;;  %4128 = vmatprep.subr.msk.bf16.mxu0 %vm1011_vm12, %v1001_v48  ;;  %v4229_v50 = vcombine.low %v3289_v36, %v3289_v36  ;;  %v4339_v42 = vcombine.high %v3289_v36, %v3289_v36 }
 0x217   : > { %3418 = vrot.lane.b32.xlu0 %v4236_v38, %s4616_s8  ;;  %1031 = vmatpush1.bf16.msra.mxu0 %v1012_v29  ;;  %v4250_v38 = vcombine.low %v3673_v20, %v3673_v20  ;;  %v4347_v45 = vcombine.high %v3673_v20, %v3673_v20 }
 0x218   : > { %v1337_v41 = vpop.permute.xlu1 %1336 }
 0x219   : > { %v1385_v47 = vsel %vm681_vm5, %v6657_v27, %v1337_v41  ;;  %v6331_v5 = vpop.permute.xlu0 %2208 }
 0x21a   : > { %3378 = vrot.lane.b32.xlu1 %v4228_v11, %s4612_s22  ;;  %4129 = vmatmul.mubr.msk.bf16.vlgmr.msra.gmra.mxu0 %vm1007_vm13, %v6658_v53  ;;  %v1387_v60 = vsel %vm685_vm6, %v1385_v47, %v6204_v12  ;;  %v4343_v47 = vcombine.high %v6304_v55, %v6304_v55 }
 0x21b   : > { %3792 = vrot.lane.b32.xlu0 %v4349_v14, %s4615_s30  ;;  %1442 = vmatprep.mubr.bf16.mxu0 %v6643_v16 }
 0x21c   : > { %v1347_v37 = vpop.permute.xlu1 %1346 }
 0x21d   : > { %v1389_v19 = vsel %vm688_vm7, %v1387_v60, %v1347_v37  ;;  %v6347_v21 = vpop.permute.xlu0 %2183  ;;  %v6660_v37 = vld [vmem:[#allocation27_spill] sm:$0xff] }
 0x21e   : > { %v1391_v40 = vsel %vm691_vm8, %v1389_v19, %v6157_v61  ;;  %3752 = vrot.lane.b32.xlu1 %v4344_v2, %s4611_s20  ;;  %s3952_s20 = scalar_lea.hbm %s6578_s2, %s4353_s26 }
 0x21f   : > { %v1393_v12 = vsel %vm694_vm9, %v1391_v40, %v1357_v63  ;;  %3388 = vrot.lane.b32.xlu0 %v4338_v39, %s4613_s6  ;;  %v4249_v63 = vcombine.low %v3639_v32, %v3639_v32 }
 0x220   : > { %v1322_v6 = vpop.permute.xlu1 %1321  ;;  %v1395_v44 = vsel %vm697_vm10, %v1393_v12, %v6172_v17 }
 0x221   : > { %v1378_v43 = vsel %vm694_vm9, %v1376_v62, %v1322_v6  ;;  %v6362_v61 = vpop.permute.xlu0 %2193  ;;  %v1397_v34 = vsel %vm700_vm11, %v1395_v44, %v1367_v22  ;;  %v4442_v22 = vld [vmem:[#allocation6] ss:$0 sps:$4 sm:$0xff]  }
 0x222   : > { %3383 = vrot.lane.b32.xlu1 %v4229_v50, %s4616_s8  ;;  %4147 = vmatprep.subr.msk.bf16.mxu0 %vm1011_vm12, %v1397_v34  ;;  %v1380_v17 = vsel %vm697_vm10, %v1378_v43, %v6236_v49  ;;  %v3693_v49 = vcombine.high %v6246_v18, %v6240_v13  ;;  %v4346_v13 = vcombine.high %v3639_v32, %v3639_v32  ;;  %v4444_v34 = vld [vmem:[#allocation6] ss:$0 sps:$4 sm:$0xff]  }
 0x223   : > { %3762 = vrot.lane.b32.xlu0 %v4249_v63, %s4612_s22  ;;  %v3727_v18 = vcombine.high %v6265_v3, %v6252_v59 }
 0x224   : > { %v1332_v23 = vpop.permute.xlu1 %1331  ;;  %v3707_v41 = vrot.slane %v3693_v49, %v5022_v52 }
 0x225   : > { %v1382_v0 = vsel %vm700_vm11, %v1380_v17, %v1332_v23  ;;  %v6373_v26 = vpop.permute.xlu0 %2613  ;;  %v3741_v14 = vrot.slane %v3727_v18, %v5022_v52 }
 0x226   : > { %v1406_v28 = vsel %vm1011_vm12, %v1382_v0, 0  ;;  %3757 = vrot.lane.b32.xlu1 %v4345_v15, %s4615_s30  ;;  %v4256_v51 = vcombine.low %v3707_v41, %v3707_v41  ;;  %v4350_v19 = vcombine.high %v3707_v41, %v3707_v41  ;;  %s4623_s30 = smov [#allocation8]  }
 0x227   : > { %3393 = vrot.lane.b32.xlu0 %v4339_v42, %s4617_s9  ;;  %1425 = vmatpush1.bf16.msra.mxu0 %v1406_v28  ;;  %v4257_v3 = vcombine.low %v3741_v14, %v3741_v14 }
 0x228   : > { %v2174_v48 = vpop.permute.xlu1 %2173 }
 0x229   : > { %v2204_v4 = vpop.permute.xlu0 %2203 }
 0x22a   : > { %3079 = vrot.lane.b32.xlu1 %v4442_v22, %s4621_s28  ;;  %4148 = vmatmul.mubr.msk.bf16.vlgmr.msra.gmra.mxu0 %vm1007_vm13, %v6079_v8  ;;  %v2252_v60 = vsel %vm681_vm5, %v6659_v58, %v2204_v4 }
 0x22b   : > { %3767 = vrot.lane.b32.xlu0 %v4250_v38, %s4616_s8  ;;  %2309 = vmatprep.mubr.bf16.mxu0 %v6643_v16  ;;  %v2254_v55 = vsel %vm685_vm6, %v2252_v60, %v6331_v5  ;;  %v4351_v5 = vcombine.high %v3741_v14, %v3741_v14 }
 0x22c   : > { %v2219_v29 = vpop.permute.xlu1 %2218 }
 0x22d   : > { %v2214_v11 = vpop.permute.xlu0 %2213 }
 0x22e   : > { %3423 = vrot.lane.b32.xlu1 %v4342_v9, %s4613_s6  ;;  %v2256_v39 = vsel %vm688_vm7, %v2254_v55, %v2214_v11 }
 0x22f   : > { %3772 = vrot.lane.b32.xlu0 %v4346_v13, %s4613_s6  ;;  %v2258_v50 = vsel %vm691_vm8, %v2256_v39, %v2219_v29  ;;  %v6661_v13 = vld [vmem:[#allocation26_spill] sm:$0xff] }
 0x230   : > { %v2229_v8 = vpop.permute.xlu1 %2228 }
 0x231   : > { %v2189_v46 = vpop.permute.xlu0 %2188 }
 0x232   : > { %3797 = vrot.lane.b32.xlu1 %v4256_v51, %s4612_s22  ;;  %s3954_s22 = sshll.u32 %s205_s23, 4  ;;  %s3955_s22 = int_to_ptr.vmem [resolvable:$true] %s3954_s22 }
 0x233   : > { %3777 = vrot.lane.b32.xlu0 %v4347_v45, %s4617_s9  ;;  %s4500_s7 = scalar_lea.vmem %s3955_s22, 128 }
 0x234   : > { %v2649_v27 = vpop.permute.xlu1 %2648  ;;  %p4501_p12 = scmp.ne.s32.totalorder %s3955_s22, %s4500_s7 }
 0x235   : > { %v2199_v53 = vpop.permute.xlu0 %2198 }
 0x236   : > { %3428 = vrot.lane.b32.xlu1 %v4343_v47, %s4617_s9  ;;  %p4502_p7 = pnand %p4501_p12, %p6662_p1 }
 0x237   : > { %3463 = vrot.lane.b32.xlu0 %v4443_v30, %s4622_s29 }
 0x238   : > { %v2169_v59 = vpop.permute.xlu1 %2168  ;;  %p4503_p8 = pneg %p4502_p7 }
 0x239   : > { %v2237_v2 = vsel %vm681_vm5, %v6660_v37, %v2169_v59  ;;  %v2609_v36 = vpop.permute.xlu0 %2608 }
 0x23a   : > { %3802 = vrot.lane.b32.xlu1 %v4257_v3, %s4616_s8  ;;  %v2239_v52 = vsel %vm685_vm6, %v2237_v2, %v2174_v48  ;;  %v2677_v18 = vsel %vm681_vm5, %v6661_v13, %v2609_v36  ;;  %s4504_s8 = sshll.u32 %s4623_s30, 4  ;;  %s4505_s8 = int_to_ptr.vmem [resolvable:$false] %s4504_s8 }
 0x23b   : > { %p4507_p9 = scmp.lt.s32.totalorder %s3955_s22, %s4505_s8 }
 0x23c   : > { %v2179_v57 = vpop.permute.xlu1 %2178 }
 0x23d   : > { %v2241_v32 = vsel %vm688_vm7, %v2239_v52, %v2179_v57  ;;  %v2619_v40 = vpop.permute.xlu0 %2618 }
 0x23e   : > { %v2243_v12 = vsel %vm691_vm8, %v2241_v32, %v6347_v21  ;;  %3807 = vrot.lane.b32.xlu1 %v4350_v19, %s4613_s6  ;;  %v3048_v19 = vsel %vm681_vm5, %v6069_v33, %v6072_v31 }
 0x23f   : > { %v2245_v6 = vsel %vm694_vm9, %v2243_v12, %v2189_v46  ;;  %v2679_v46 = vsel %vm685_vm6, %v2677_v18, %v6373_v26 }
 0x240   : > { %v2224_v62 = vpop.permute.xlu1 %2223  ;;  %v2247_v44 = vsel %vm697_vm10, %v2245_v6, %v6362_v61  ;;  %v2681_v47 = vsel %vm688_vm7, %v2679_v46, %v2619_v40  ;;  %v3063_v6 = vsel %vm681_vm5, %v6042_v10, %v6127_v25 }
 0x241   : > { %v2260_v24 = vsel %vm694_vm9, %v2258_v50, %v2224_v62  ;;  %v1829_v43 = vpop.permute.xlu0 %1828  ;;  %v2249_v21 = vsel %vm700_vm11, %v2247_v44, %v2199_v53 }
 0x242   : > { %3812 = vrot.lane.b32.xlu1 %v4351_v5, %s4617_s9  ;;  %4165 = vmatmul.mubr.msk.bf16.vlgmr.msra.gmra.mxu1 %vm1007_vm13, %v1829_v43  ;;  %v2262_v23 = vsel %vm697_vm10, %v2260_v24, %v2229_v8  ;;  %v2273_v61 = vsel %vm1011_vm12, %v2249_v21, 0  ;;  %s4506_s9 = scalar_lea.vmem %s4505_s8, 256 }
 0x243   : > { %2749 = vmatprep.mubr.bf16.mxu1 %v6643_v16  ;;  %p4508_p10 = scmp.lt.s32.totalorder %s4506_s9, %s4500_s7 }
 0x244   : > { %v2234_v63 = vpop.permute.xlu1 %2233 }
 0x245   : > { %v2264_v17 = vsel %vm700_vm11, %v2262_v23, %v2234_v63  ;;  %v2659_v15 = vpop.permute.xlu0 %2658  ;;  %p4509_p2 = por %p4508_p10, %p4507_p9 }
 0x246   : > { %4181 = vmatprep.subr.msk.bf16.mxu0 %vm1011_vm12, %v2264_v17  ;;  %3847 = vrot.lane.b32.xlu1 %v4444_v34, %s4613_s6  ;;  %s3935_s6 = scalar_lea.sflag [#allocation5], %s4765_s27 }
 0x247   : > { %2292 = vmatpush1.bf16.msra.mxu0 %v2273_v61  ;;  %p4510_p0 = pnand %p4509_p2, %p4503_p8 }
 0x248   : > { %v2644_v0 = vpop.permute.xlu1 %2643 }
 0x249   : > { %v3020_v42 = vpop.permute.xlu0 %3019  ;;  %v2692_v8 = vsel %vm681_vm5, %v5973_v54, %v2644_v0 }
 0x24a   : > { %v2694_v45 = vsel %vm685_vm6, %v2692_v8, %v2649_v27  ;;  %v3065_v62 = vsel %vm685_vm6, %v3063_v6, %v3020_v42 }
 0x24c   : > { %v2654_v20 = vpop.permute.xlu1 %2653 }
 0x24d   : > { %v2664_v28 = vpop.permute.xlu0 %2663  ;;  %v2696_v14 = vsel %vm688_vm7, %v2694_v45, %v2654_v20 }
 0x24e   : > { %v2698_v3 = vsel %vm691_vm8, %v2696_v14, %v2659_v15 }
 0x24f   : > { %v2700_v26 = vsel %vm694_vm9, %v2698_v3, %v2664_v28 }
 0x250   : > { %v2624_v22 = vpop.permute.xlu1 %2623 }
 0x251   : > { %v3025_v49 = vpop.permute.xlu0 %3024  ;;  %v2683_v59 = vsel %vm691_vm8, %v2681_v47, %v2624_v22 }
 0x252   : > { %v3067_v44 = vsel %vm688_vm7, %v3065_v62, %v3025_v49 }
 0x254   : > { %v2985_v48 = vpop.permute.xlu1 %2984 }
 0x255   : > { %v2634_v4 = vpop.permute.xlu0 %2633  ;;  %v3050_v39 = vsel %vm685_vm6, %v3048_v19, %v2985_v48 }
 0x258   : > { %v2629_v38 = vpop.permute.xlu1 %2628 }
 0x259   : > { %v2995_v29 = vpop.permute.xlu0 %2994  ;;  %v2685_v54 = vsel %vm694_vm9, %v2683_v59, %v2629_v38 }
 0x25a   : > { %v2687_v37 = vsel %vm697_vm10, %v2685_v54, %v2634_v4 }
 0x25c   : > { %v2990_v9 = vpop.permute.xlu1 %2989 }
 0x25d   : > { %v2639_v41 = vpop.permute.xlu0 %2638  ;;  %v3052_v40 = vsel %vm688_vm7, %v3050_v39, %v2990_v9 }
 0x25e   : > { %v2689_v27 = vsel %vm700_vm11, %v2687_v37, %v2639_v41  ;;  %v3054_v50 = vsel %vm691_vm8, %v3052_v40, %v2995_v29 }
 0x25f   : > { %v2713_v57 = vsel %vm1011_vm12, %v2689_v27, 0 }
 0x260   : > { %v2269_v11 = vpop.permute.xlu1 %2268 }
 0x261   : > { %4182 = vmatmul.mubr.msk.bf16.vlgmr.msra.gmra.mxu0 %vm1007_vm13, %v2269_v11  ;;  %v3000_v51 = vpop.permute.xlu0 %2999 }
 0x262   : > { %3120 = vmatprep.mubr.bf16.mxu0 %v6643_v16  ;;  %v3056_v33 = vsel %vm694_vm9, %v3054_v50, %v3000_v51 }
 0x264   : > { %v2669_v30 = vpop.permute.xlu1 %2668 }
 0x265   : > { %v3005_v53 = vpop.permute.xlu0 %3004  ;;  %v2702_v2 = vsel %vm697_vm10, %v2700_v26, %v2669_v30 }
 0x266   : > { %v3058_v24 = vsel %vm697_vm10, %v3056_v33, %v3005_v53 }
 0x268   : > { %v3030_v58 = vpop.permute.xlu1 %3029 }
 0x269   : > { %v3010_v60 = vpop.permute.xlu0 %3009  ;;  %v3069_v43 = vsel %vm691_vm8, %v3067_v44, %v3030_v58 }
 0x26a   : > { %v3060_v34 = vsel %vm700_vm11, %v3058_v24, %v3010_v60 }
 0x26b   : > { %v3084_v17 = vsel %vm1011_vm12, %v3060_v34, 0 }
 0x26c   : > { %v2674_v36 = vpop.permute.xlu1 %2673 }
 0x26d   : > { %v2704_v55 = vsel %vm700_vm11, %v2702_v2, %v2674_v36  ;;  %v3364_v52 = vpop.permute.xlu0 %3363 }
 0x26e   : > { %4198 = vmatprep.subr.msk.bf16.mxu1 %vm1011_vm12, %v2704_v55  ;;  %v3432_v47 = vsel %vm681_vm5, %v6192_v7, %v3364_v52 }
 0x26f   : > { %2732 = vmatpush1.bf16.msra.mxu1 %v2713_v57 }
 0x270   : > { %v3035_v32 = vpop.permute.xlu1 %3034 }
 0x271   : > { %v3369_v12 = vpop.permute.xlu0 %3368  ;;  %v3071_v21 = vsel %vm694_vm9, %v3069_v43, %v3035_v32 }
 0x272   : > { %v3434_v14 = vsel %vm685_vm6, %v3432_v47, %v3369_v12 }
 0x274   : > { %v3040_v5 = vpop.permute.xlu1 %3039 }
 0x275   : > { %v3374_v31 = vpop.permute.xlu0 %3373  ;;  %v3073_v10 = vsel %vm697_vm10, %v3071_v21, %v3040_v5 }
 0x276   : > { %v3436_v59 = vsel %vm688_vm7, %v3434_v14, %v3374_v31 }
 0x278   : > { %v3045_v25 = vpop.permute.xlu1 %3044 }
 0x279   : > { %v3075_v63 = vsel %vm700_vm11, %v3073_v10, %v3045_v25  ;;  %v3748_v23 = vpop.permute.xlu0 %3747 }
 0x27a   : > { %4219 = vmatprep.subr.msk.bf16.mxu0 %vm1011_vm12, %v3075_v63  ;;  %v3816_v39 = vsel %vm681_vm5, %v6325_v56, %v3748_v23 }
 0x27b   : > { %3103 = vmatpush1.bf16.msra.mxu0 %v3084_v17 }
 0x27c   : > { %v3399_v15 = vpop.permute.xlu1 %3398 }
 0x27d   : > { %v2709_v61 = vpop.permute.xlu0 %2708  ;;  %v3447_v54 = vsel %vm681_vm5, %v6255_v1, %v3399_v15 }
 0x27e   : > { %4199 = vmatmul.mubr.msk.bf16.vlgmr.msra.gmra.mxu1 %vm1007_vm13, %v2709_v61 }
 0x27f   : > { %3504 = vmatprep.mubr.bf16.mxu1 %v6643_v16 }
 0x280   : > { %v3404_v0 = vpop.permute.xlu1 %3403 }
 0x281   : > { %v3414_v42 = vpop.permute.xlu0 %3413  ;;  %v3449_v58 = vsel %vm685_vm6, %v3447_v54, %v3404_v0 }
 0x284   : > { %v3409_v20 = vpop.permute.xlu1 %3408 }
 0x285   : > { %v3788_v28 = vpop.permute.xlu0 %3787  ;;  %v3451_v37 = vsel %vm688_vm7, %v3449_v58, %v3409_v20 }
 0x286   : > { %v3453_v7 = vsel %vm691_vm8, %v3451_v37, %v3414_v42 }
 0x288   : > { %v3783_v22 = vpop.permute.xlu1 %3782 }
 0x289   : > { %v3419_v49 = vpop.permute.xlu0 %3418  ;;  %v3831_v6 = vsel %vm681_vm5, %v6285_v35, %v3783_v22 }
 0x28a   : > { %v3455_v2 = vsel %vm694_vm9, %v3453_v7, %v3419_v49  ;;  %v3833_v50 = vsel %vm685_vm6, %v3831_v6, %v3788_v28 }
 0x28c   : > { %v3379_v48 = vpop.permute.xlu1 %3378 }
 0x28d   : > { %v3793_v4 = vpop.permute.xlu0 %3792  ;;  %v3438_v60 = vsel %vm691_vm8, %v3436_v59, %v3379_v48 }
 0x28e   : > { %v6468_v38 = vpop.f32.mrf.mxu1  ;;  %v3835_v33 = vsel %vm688_vm7, %v3833_v50, %v3793_v4 }
 0x290   : > { %v3753_v29 = vpop.permute.xlu1 %3752  ;;  %v6470_v9 = vpop.f32.mrf.mxu1 }
 0x291   : > { %v3389_v41 = vpop.permute.xlu0 %3388  ;;  %v3818_v40 = vsel %vm685_vm6, %v3816_v39, %v3753_v29 }
 0x292   : > { %v1102_v11 = vpop.f32.mrf.mxu1 }
 0x294   : > { %v3384_v13 = vpop.permute.xlu1 %3383  ;;  %v1103_v18 = vpop.f32.mrf.mxu1 }
 0x295   : > { %v3763_v8 = vpop.permute.xlu0 %3762 }
 0x298   : > { %v3758_v51 = vpop.permute.xlu1 %3757 }
 0x299   : > { %v3394_v46 = vpop.permute.xlu0 %3393  ;;  %v3820_v62 = vsel %vm688_vm7, %v3818_v40, %v3758_v51 }
 0x29a   : > { %v3822_v5 = vsel %vm691_vm8, %v3820_v62, %v3763_v8 }
 0x29c   : > { %v3080_v45 = vpop.permute.xlu1 %3079 }
 0x29d   : > { %4220 = vmatmul.mubr.msk.bf16.vlgmr.msra.gmra.mxu0 %vm1007_vm13, %v3080_v45  ;;  %v3768_v30 = vpop.permute.xlu0 %3767 }
 0x29e   : > { %3888 = vmatprep.mubr.bf16.mxu0 %v6643_v16  ;;  %v3440_v16 = vsel %vm694_vm9, %v3438_v60, %v3384_v13  ;;  %v3824_v56 = vsel %vm694_vm9, %v3822_v5, %v3768_v30 }
 0x29f   : > { %v3442_v27 = vsel %vm697_vm10, %v3440_v16, %v3389_v41 }
 0x2a0   : > { %v3424_v53 = vpop.permute.xlu1 %3423  ;;  %v3444_v36 = vsel %vm700_vm11, %v3442_v27, %v3394_v46 }
 0x2a1   : > { %v3773_v3 = vpop.permute.xlu0 %3772  ;;  %v3457_v1 = vsel %vm697_vm10, %v3455_v2, %v3424_v53  ;;  %v3468_v19 = vsel %vm1011_vm12, %v3444_v36, 0 }
 0x2a2   : > { %v3826_v31 = vsel %vm697_vm10, %v3824_v56, %v3773_v3 }
 0x2a4   : > { %v3798_v26 = vpop.permute.xlu1 %3797 }
 0x2a5   : > { %v3778_v55 = vpop.permute.xlu0 %3777  ;;  %v3837_v24 = vsel %vm691_vm8, %v3835_v33, %v3798_v26 }
 0x2a6   : > { %v3828_v43 = vsel %vm700_vm11, %v3826_v31, %v3778_v55 }
 0x2a7   : > { %v3852_v25 = vsel %vm1011_vm12, %v3828_v43, 0 }
 0x2a8   : > { %v3429_v52 = vpop.permute.xlu1 %3428 }
 0x2a9   : > { %v3459_v57 = vsel %vm700_vm11, %v3457_v1, %v3429_v52  ;;  %v3464_v32 = vpop.permute.xlu0 %3463 }
 0x2aa   : > { %4240 = vmatprep.subr.msk.bf16.mxu1 %vm1011_vm12, %v3459_v57 }
 0x2ab   : > { %3487 = vmatpush1.bf16.msra.mxu1 %v3468_v19 }
 0x2ac   : > { %v3803_v12 = vpop.permute.xlu1 %3802 }
 0x2ad   : > { %v3839_v35 = vsel %vm694_vm9, %v3837_v24, %v3803_v12 }
 0x2ae   : > { %4241 = vmatmul.mubr.msk.bf16.vlgmr.msra.gmra.mxu1 %vm1007_vm13, %v3464_v32 }
 0x2b0   : > { %v3808_v44 = vpop.permute.xlu1 %3807 }
 0x2b1   : > { %v3841_v34 = vsel %vm697_vm10, %v3839_v35, %v3808_v44 }
 0x2b4   : > { %v3813_v21 = vpop.permute.xlu1 %3812 }
 0x2b5   : > { %v3843_v10 = vsel %vm700_vm11, %v3841_v34, %v3813_v21 }
 0x2b6   : > { %4261 = vmatprep.subr.msk.bf16.mxu0 %vm1011_vm12, %v3843_v10 }
 0x2b7   : > { %3871 = vmatpush1.bf16.msra.mxu0 %v3852_v25 }
 0x2b8   : > { %v3848_v63 = vpop.permute.xlu1 %3847 }
 0x2ba   : > { %4262 = vmatmul.mubr.msk.bf16.vlgmr.msra.gmra.mxu0 %vm1007_vm13, %v3848_v63 }
 0x2da   : > { %v1050_v23 = vpop.f32.mrf.mxu0 }
 0x2db   : > { %v1099_v0 = vadd.f32 %v6468_v38, %v1050_v23 }
 0x2dc   : > { %v1052_v17 = vpop.f32.mrf.mxu0 }
 0x2dd   : > { %v1101_v20 = vadd.f32 %v6470_v9, %v1052_v17 }
 0x2de   : > { %v1054_v15 = vpop.f32.mrf.mxu0 }
 0x2e0   : > { %v1055_v61 = vpop.f32.mrf.mxu0 }
 0x2ea   : > { %v1444_v42 = vpop.f32.mrf.mxu0 }
 0x2eb   : > { %v1451_v28 = vadd.f32 %v1444_v42, %v1099_v0 }
 0x2ec   : > { %v1446_v22 = vpop.f32.mrf.mxu0 }
 0x2ed   : > { %v1452_v49 = vadd.f32 %v1446_v22, %v1101_v20 }
 0x2ee   : > { %v1448_v48 = vpop.f32.mrf.mxu0 }
 0x2f0   : > { %v1449_v4 = vpop.f32.mrf.mxu0 }
 0x302   : > { %v1871_v29 = vpop.f32.mrf.mxu1 }
 0x303   : > { %v1878_v41 = vadd.f32 %v1871_v29, %v1451_v28 }
 0x304   : > { %v1873_v11 = vpop.f32.mrf.mxu1 }
 0x305   : > { %v1879_v13 = vadd.f32 %v1873_v11, %v1452_v49 }
 0x306   : > { %v1875_v18 = vpop.f32.mrf.mxu1 }
 0x308   : > { %v1876_v8 = vpop.f32.mrf.mxu1 }
 0x321   : > { %v2311_v51 = vpop.f32.mrf.mxu0 }
 0x322   : > { %v2318_v46 = vadd.f32 %v2311_v51, %v1878_v41 }
 0x323   : > { %v2313_v45 = vpop.f32.mrf.mxu0 }
 0x324   : > { %v2319_v30 = vadd.f32 %v2313_v45, %v1879_v13 }
 0x325   : > { %v2315_v47 = vpop.f32.mrf.mxu0 }
 0x327   : > { %v2316_v38 = vpop.f32.mrf.mxu0 }
 0x33e   : > { %v2751_v14 = vpop.f32.mrf.mxu1 }
 0x33f   : > { %v2758_v27 = vadd.f32 %v2751_v14, %v2318_v46 }
 0x340   : > { %v2753_v53 = vpop.f32.mrf.mxu1 }
 0x341   : > { %v2759_v2 = vadd.f32 %v2753_v53, %v2319_v30 }
 0x342   : > { %v2755_v9 = vpop.f32.mrf.mxu1 }
 0x344   : > { %v2756_v59 = vpop.f32.mrf.mxu1 }
 0x35d   : > { %v3122_v54 = vpop.f32.mrf.mxu0 }
 0x35e   : > { %v3129_v36 = vadd.f32 %v3122_v54, %v2758_v27 }
 0x35f   : > { %v3124_v3 = vpop.f32.mrf.mxu0 }
 0x360   : > { %v3130_v55 = vadd.f32 %v3124_v3, %v2759_v2 }
 0x361   : > { %v3126_v58 = vpop.f32.mrf.mxu0 }
 0x363   : > { %v3127_v60 = vpop.f32.mrf.mxu0 }
 0x36e   : > { %v3506_v37 = vpop.f32.mrf.mxu1 }
 0x36f   : > { %v3513_v1 = vadd.f32 %v3506_v37, %v3129_v36 }
 0x370   : > { %v3508_v16 = vpop.f32.mrf.mxu1 }
 0x371   : > { %v3514_v57 = vadd.f32 %v3508_v16, %v3130_v55 }
 0x372   : > { %v3510_v26 = vpop.f32.mrf.mxu1 }
 0x374   : > { %v3511_v7 = vpop.f32.mrf.mxu1 }
 0x37a   : > { %v3890_v52 = vpop.f32.mrf.mxu0 }
 0x37b   : > { %v3897_v19 = vadd.f32 %v3890_v52, %v3513_v1 }
 0x37c   : > { %v3892_v39 = vpop.f32.mrf.mxu0 }
 0x37d   : > { %v3898_v32 = vadd.f32 %v3892_v39, %v3514_v57  ;;  %v3911_v12 = vmul.f32 %v3897_v19, %v3897_v19 }
 0x37e   : > { %v3894_v40 = vpop.f32.mrf.mxu0 }
 0x37f   : > { %v4352_v6 = vpack.c.bf16 %v3898_v32, %v3897_v19  ;;  %v3912_v62 = vmul.f32 %v3898_v32, %v3898_v32  ;;  %v3908_v50 = vadd.f32 %v3898_v32, %v3897_v19 }
 0x380   : > { %v3895_v5 = vpop.f32.mrf.mxu0 }
 0x381   : > { %3909 = vadd.xlane.f32.xlu0 %v3908_v50  ;;  %v3913_v44 = vadd.f32 %v3912_v62, %v3911_v12  ;;  %3907 = vst [vmem:[%s205_s23] sm:$0xff] %v4352_v6 }
 0x383   : > { %3914 = vadd.xlane.f32.xlu1 %v3913_v44 }
 0x384   : > { %4513 = shalt.err (!%p4510_p0)
}
 0x385   : > { %s4514_s10 = scalar_lea.hbm %s3952_s20, 128  ;;  %s4518_s28 = scalar_lea.hbm %s6578_s2, 256 }
 0x386   : > { %p4515_p4 = scmp.ne.s32.totalorder %s3952_s20, %s4514_s10  ;;  %p4519_p6 = scmp.lt.s32.totalorder %s3952_s20, %s6578_s2 }
 0x387   : > { %p4520_p13 = scmp.lt.s32.totalorder %s4518_s28, %s4514_s10 }
 0x388   : > { %p4516_p11 = pnand %p4515_p4, %p6662_p1 }
 0x389   : > { %p4521_p3 = por %p4520_p13, %p4519_p6 }
 0x38a   : > { %p4517_p5 = pneg %p4516_p11 }
 0x38c   : > { %p4522_p12 = pnand %p4521_p3, %p4517_p5 }
 0x38e   : > { %4525 = shalt.err (!%p4522_p12)
}
 0x38f   : > { %4360 = dma.vmem_to_hbm [thread:$0]  (%p6662_p1), %s3955_s22, 128, %s3952_s20, %s3935_s6   ;;  %v6663_v33 = vlaneseq  ;;  %v6664_v31 = vld [vmem:[#allocation15_spill] sm:$0xff]  ;;  %vm3930_vm14 = vcmask 1040384   ;;  %vm3932_vm15 = vcmask 58368  }
 0x390   : > { %s4090_s23 = sshll.u32 %s4765_s27, 1  ;;  %s4268_s26 = sshll.u32 %s4666_s16, 5 }
 0x391   : > { %v3918_v56 = vand.u32 127, %v6663_v33  ;;  %s212_s4 = scalar_lea.vmem [#allocation9], %s4090_s23  ;;  %s6539_s20 = scalar_lea.hbm %s6579_s3, %s4268_s26 }
 0x392   : > { %s3967_s11 = sshll.u32 %s212_s4, 4  ;;  %s3940_s22 = scalar_lea.sflag [#allocation10], %s4765_s27  ;;  %s3968_s11 = int_to_ptr.vmem [resolvable:$true] %s3967_s11 }
 0x393   : > { %v3921_v24 = vsub.s32 %v3918_v56, %v6664_v31  ;;  %s4526_s6 = scalar_lea.vmem %s3968_s11, 32  ;;  %s4624_s16 = smov [#allocation9]  }
 0x394   : > { %p4527_p7 = scmp.ne.s32.totalorder %s3968_s11, %s4526_s6  ;;  %s4530_s8 = sshll.u32 %s4624_s16, 4  ;;  %s4531_s8 = int_to_ptr.vmem [resolvable:$false] %s4530_s8 }
 0x395   : > { %s4532_s9 = scalar_lea.vmem %s4531_s8, 64  ;;  %p4533_p10 = scmp.lt.s32.totalorder %s3968_s11, %s4531_s8 }
 0x396   : > { %p4528_p8 = pnand %p4527_p7, %p6662_p1  ;;  %p4534_p2 = scmp.lt.s32.totalorder %s4532_s9, %s4526_s6 }
 0x398   : > { %p4529_p9 = pneg %p4528_p8  ;;  %p4535_p0 = por %p4534_p2, %p4533_p10 }
 0x39a   : > { %p4536_p4 = pnand %p4535_p0, %p4529_p9 }
 0x40a   : > { %v3910_v43 = vpop.xlane.xlu0 %3909 }
 0x40b   : > { %v3922_v34 = vrot.slane %v3910_v43, %v3921_v24 }
 0x40c   : > { %v3915_v35 = vpop.xlane.xlu1 %3914 }
 0x40d   : > { %v3928_v21 = vrot.slane %v3915_v35, %v3921_v24 }
 0x40f   : > { %v3931_v10 = vsel %vm3930_vm14, %v3922_v34, %v3928_v21 }
 0x410   : > { %3933 = vst.msk [vmem:[%s212_s4] sm:$0x3] %vm3932_vm15, %v3931_v10 }
 0x411   : > { %4539 = shalt.err (!%p4536_p4)
}
 0x412   : > { %s4540_s10 = scalar_lea.hbm %s6539_s20, 32  ;;  %s4544_s19 = scalar_lea.hbm %s6579_s3, 64 }
 0x413   : > { %p4541_p11 = scmp.ne.s32.totalorder %s6539_s20, %s4540_s10  ;;  %p4545_p13 = scmp.lt.s32.totalorder %s6539_s20, %s6579_s3 }
 0x414   : > { %p4546_p3 = scmp.lt.s32.totalorder %s4544_s19, %s4540_s10 }
 0x415   : > { %p4542_p5 = pnand %p4541_p11, %p6662_p1 }
 0x416   : > { %p4547_p12 = por %p4546_p3, %p4545_p13 }
 0x417   : > { %p4543_p6 = pneg %p4542_p5 }
 0x419   : > { %p4548_p7 = pnand %p4547_p12, %p4543_p6 }
 0x41b   : > { %4551 = shalt.err (!%p4548_p7)
}
 0x41c   : > { %4361 = dma.vmem_to_hbm [thread:$0]  (%p6662_p1), %s3968_s11, 32, %s6539_s20, %s3940_s22  }
 0x41d PF: > { %s3979_s5 = sand.u32 1, %s4586_s12   ;;  %p6665_p8 = scmp.ne.s32.totalorder %s6602_s25, 0 }
 0x41e   : > { %p6666_p9 = scmp.ge.s32.totalorder %s4598_s15, 2  ;;  %s3980_s23 = scalar_lea.sflag [#allocation5], %s3979_s5 }
 0x420   : > { %p4373_p10 = pnand %p6666_p9, %p6665_p8 }
 0x422   : > { %p4374_p2 = pneg %p4373_p10 }
 0x424   : > { %4577 = dma.done.wait (%p4374_p2), %s3980_s23, 128  }
 0x425   : > { %4579 = vsyncadd (%p4374_p2), %s3980_s23, 4294967168  ;;  %s3989_s26 = scalar_lea.sflag [#allocation10], %s3979_s5 }
 0x426   : > { %4581 = dma.done.wait (%p4374_p2), %s3989_s26, 32  }
 0x427   : > { %4583 = vsyncadd (%p4374_p2), %s3989_s26, 4294967264  ;;  %p21_p1 = scmp.ge.s32.totalorder %s4670_s18, 4   ;;  %s6667_s12 = smov %s4590_s13 }
 0x428   : > { %s6668_s13 = smov %s4594_s14  ;;  %s6669_s14 = smov %s4682_s21 }
 0x429   : > { %s6670_s15 = smov %s4670_s18  ;;  %23 = sbr.rel (!%p21_p1) target bundleno = 8 (0x8), region = 94 }
 0x42e   :  { %3994 = vsyncpa [#allocation4], 1 }
 0x42f   :  { %3996 = vsyncpa [#allocation4 + $0x1], 1 }
 0x430   :  { %3997 = vsyncpa [#allocation7], 1 }
 0x431   :  { %3998 = vsyncpa [#allocation5], 1 }
 0x432   :  { %4000 = vsyncpa [#allocation5 + $0x1], 1 }
 0x433   :  { %4001 = vsyncpa [#allocation10], 1 }
 0x434   :  { %4003 = vsyncpa [#allocation10 + $0x1], 1 }

</bundles_post_ra>
